<compile_context>
chip_gen: v7x
topology: tpu7x:2x2x1
jax: 0.10.0
libtpu: 0.0.40
codegen_flags: <defaults>
</compile_context>

<pallas_src>
import jax
import jax.numpy as jnp
from jax import lax
from jax.experimental import pallas as pl
from jax.experimental.pallas import tpu as pltpu

# ----------------------------- config (small) ------------------------------
TRANS_DIM = 64          # config.trans_dim (== encoder_dims so tokens concat with cls)
DEPTH = 2               # config.depth
NUM_HEADS = 4           # config.num_heads
CLS_DIM = 8             # config.cls_dim
NUM_HID_CLS_LAYERS = 1  # config.num_hid_cls_layers
GROUP_SIZE = 8          # config.group_size
NUM_GROUP = 8           # config.num_group
ENCODER_DIMS = TRANS_DIM
MLP_RATIO = 4
NT_PAD = 16             # padded token count (G tokens + 1 cls + padding), multiple of 8
OUT_PAD = 128           # class-head output padded to a full lane tile

# --------------------- packed parameter-vector slab layout -------------------
# Each row is one small vector, left-justified and zero-padded to VEC_W lanes.
VEC_W = 512
R_ENC_B1 = 0            # (128,)
R_ENC_B2 = 1            # (256,)
R_ENC_B3 = 2            # (512,)
R_ENC_B4 = 3            # (64,)
R_ENC_W1 = 4            # rows 4,5,6 : Conv(3,128) weight rows (128,)
R_BP1 = 7               # (128,)
R_BP2 = 8               # (64,)
R_WP1 = 9               # rows 9,10,11 : pos_embed Linear(3,128) weight rows (128,)
R_CLS_TOK = 12          # (64,)
R_CLS_POS = 13          # (64,)
R_NORM_G = 14           # (64,)
R_NORM_B = 15           # (64,)
R_BC1 = 16              # (256,)
R_BC2 = 17              # (128,) padded class-head bias
R_BLK = 18              # per-depth rows (7 each): ln1_g, ln1_b, ln2_g, ln2_b, bpj, bfc1, bfc2
N_BLK_ROWS = 7
VEC_ROWS = R_BLK + N_BLK_ROWS * DEPTH   # 32


# --------------------------- in-kernel math helpers --------------------------
def _gelu(x):
    # tanh approximation: transcendental goes to the EUP slot (VPU stays free).
    c = 0.7978845608028654  # sqrt(2/pi)
    return 0.5 * x * (1.0 + jnp.tanh(c * (x + 0.044715 * x * x * x)))


def _layernorm(x, g, b):
    mu = jnp.mean(x, axis=-1, keepdims=True)
    var = jnp.mean(jnp.square(x - mu), axis=-1, keepdims=True)
    return (x - mu) * lax.rsqrt(var + 1e-5) * g + b


def _full(shape):
    # BlockSpec covering the whole (untiled) array, constant across the grid.
    return pl.BlockSpec(shape, lambda *_: (0,) * len(shape))


# --------------------- fused PointTransformer forward kernel ------------------
def _fused_kernel(neigh_ref, ctr_ref, vec_ref,
                  ew2_ref, ew3_ref, ew4_ref, wp2_ref,
                  wqkv_ref, wpj_ref, wfc1_ref, wfc2_ref,
                  wc1_ref, wc2_ref, o_ref):
    GN = neigh_ref.shape[1]          # G * n points of this batch element
    G = ctr_ref.shape[1]             # number of groups / tokens
    n = GN // G                      # points per group
    C = wqkv_ref.shape[1]            # trans_dim
    depth = wqkv_ref.shape[0]
    H = NUM_HEADS
    Dh = C // H
    NTP = NT_PAD

    def row(r, w):                   # static (1, w) slice of the packed vector slab
        return vec_ref[r:r + 1, 0:w]

    def mm(a, b):
        return jnp.dot(a, b, preferred_element_type=jnp.float32)

    def lin3(x3, r0, w):
        # (N,3) x (3,w) contraction as 3 VPU broadcast-FMAs (keeps the MXU free).
        return (x3[:, 0:1] * row(r0, w) + x3[:, 1:2] * row(r0 + 1, w)
                + x3[:, 2:3] * row(r0 + 2, w))

    bf16 = jnp.bfloat16

    # ------------------ Encoder (all G groups of this batch at once) ------------------
    pts = neigh_ref[0]                                                        # (GN, 3)
    h1 = jnp.maximum(lin3(pts, R_ENC_W1, 128) + row(R_ENC_B1, 128), 0.0)      # (GN, 128)
    f = mm(h1.astype(bf16), ew2_ref[...]) + row(R_ENC_B2, 256)                # (GN, 256)
    fg = jnp.max(f.reshape(G, n, 256), axis=1)                                # (G, 256)
    # cat([global, local]) @ W3  ==  global @ W3[:256] + local @ W3[256:]
    glob = mm(fg.astype(bf16), ew3_ref[0:256, :]) + row(R_ENC_B3, 512)        # (G, 512)
    loc = mm(f.astype(bf16), ew3_ref[256:512, :])                             # (GN, 512)
    h2 = jnp.maximum(loc.reshape(G, n, 512) + glob[:, None, :], 0.0).reshape(GN, 512)
    f2 = mm(h2.astype(bf16), ew4_ref[...]) + row(R_ENC_B4, C)                 # (GN, C)
    tokens = jnp.max(f2.reshape(G, n, C), axis=1)                             # (G, C)

    # ------------------ pos_embed: Linear(3,128)-GELU-Linear(128,C) -------------------
    ctr = ctr_ref[0]                                                          # (G, 3)
    pe = _gelu(lin3(ctr, R_WP1, 128) + row(R_BP1, 128))
    pe = mm(pe, wp2_ref[...]) + row(R_BP2, C)                                 # (G, C)

    # --- padded token/pos slabs: rows [0:G)=group tokens, row G=cls, rows >G=padding ---
    pad = jnp.zeros((NTP - G - 1, C), jnp.float32)
    x = jnp.concatenate([tokens, row(R_CLS_TOK, C), pad], axis=0)             # (NTP, C)
    pos = jnp.concatenate([pe, row(R_CLS_POS, C), pad], axis=0)               # (NTP, C)

    # padded-column bias for the softmax (key columns > G are padding)
    col = lax.broadcasted_iota(jnp.int32, (NTP, NTP), 1)
    mask_bias = jnp.where(col <= G, 0.0, -1e9).astype(jnp.float32)

    # ------------------------------ transformer blocks --------------------------------
    for d in range(depth):                               # static unroll (DEPTH=2)
        base = R_BLK + N_BLK_ROWS * d
        xi = x + pos                                     # pos added at every block
        xn = _layernorm(xi, row(base + 0, C), row(base + 1, C))

        qkv = mm(xn, wqkv_ref[d])                        # one lane-dense (NTP,3C) matmul
        wpj_d = wpj_ref[d]                               # (C, C) dense projection weight
        acc = None
        for h in range(H):                               # heads only for tiny products
            lo, hi = h * Dh, (h + 1) * Dh
            qh = qkv[:, lo:hi]                           # scale already folded into Wq
            kh = qkv[:, C + lo:C + hi]
            vh = qkv[:, 2 * C + lo:2 * C + hi]
            s = jnp.einsum('nd,md->nm', qh, kh, preferred_element_type=jnp.float32)
            s = s + mask_bias
            s = s - jnp.max(s, axis=-1, keepdims=True)
            e = jnp.exp(s)
            pattn = e * pl.reciprocal(jnp.sum(e, axis=-1, keepdims=True), approx=True)
            ov = mm(pattn, vh)                           # (NTP, Dh)
            contrib = mm(ov, wpj_d[lo:hi, :])            # head reduction folded into proj
            acc = contrib if acc is None else acc + contrib
        attn = acc + row(base + 4, C)

        x1 = xi + attn
        xn2 = _layernorm(x1, row(base + 2, C), row(base + 3, C))
        hmid = _gelu(mm(xn2, wfc1_ref[d]) + row(base + 5, MLP_RATIO * C))
        x = x1 + mm(hmid, wfc2_ref[d]) + row(base + 6, C)

    # --------------------- final norm, pooling and class head -------------------------
    xn = _layernorm(x, row(R_NORM_G, C), row(R_NORM_B, C))
    cls_f = xn[G:G + 1, :]                               # cls token row         (1, C)
    tok_f = jnp.max(xn[0:G, :], axis=0, keepdims=True)   # max over group tokens (1, C)
    # cat([cls, max]) @ Wc1  ==  cls @ Wc1[:C] + max @ Wc1[C:]
    hcls = jnp.maximum(mm(cls_f, wc1_ref[0:C, :]) + mm(tok_f, wc1_ref[C:2 * C, :])
                       + row(R_BC1, 256), 0.0)
    out = mm(hcls, wc2_ref[...]) + row(R_BC2, OUT_PAD)   # (1, 128) lane-dense store
    o_ref[0] = out.astype(o_ref.dtype)


def pallas_point_transformer(neighborhood, center, p):
    B, G, n, _ = neighborhood.shape
    neigh = neighborhood.reshape(B, G * n, 3)

    out = pl.pallas_call(
        _fused_kernel,
        out_shape=jax.ShapeDtypeStruct((B, 1, OUT_PAD), jnp.float32),
        grid=(B,),
        in_specs=[
            pl.BlockSpec((1, G * n, 3), lambda b: (b, 0, 0)),
            pl.BlockSpec((1, G, 3), lambda b: (b, 0, 0)),
            _full(p["vec"].shape),
            _full(p["enc_w2"].shape), _full(p["enc_w3"].shape), _full(p["enc_w4"].shape),
            _full(p["wp2"].shape),
            _full(p["wqkv"].shape), _full(p["wpj"].shape),
            _full(p["wfc1"].shape), _full(p["wfc2"].shape),
            _full(p["wc1"].shape), _full(p["wc2"].shape),
        ],
        out_specs=pl.BlockSpec((1, 1, OUT_PAD), lambda b: (b, 0, 0)),
        compiler_params=pltpu.CompilerParams(dimension_semantics=("parallel",)),
    )(neigh, center, p["vec"],
      p["enc_w2"], p["enc_w3"], p["enc_w4"], p["wp2"],
      p["wqkv"], p["wpj"], p["wfc1"], p["wfc2"], p["wc1"], p["wc2"])
    return out[:, 0, :CLS_DIM]


# --------------------- grouping (FPS + KNN) — plain JAX glue ----------------
# TODO(synk): pytorch3d knn_points / CUDA fps have no Pallas equivalent; grouping
#             (data-dependent gather) is done in plain JAX here (deterministic FPS start).
def _fps_indices(pts, n_samples):
    Np = pts.shape[0]

    def body(i, state):
        dists, idxs = state
        last = pts[idxs[i - 1]]
        d = jnp.sum(jnp.square(pts - last), axis=-1)
        dists = jnp.minimum(dists, d)
        nxt = jnp.argmax(dists).astype(jnp.int32)
        return dists, idxs.at[i].set(nxt)

    dists0 = jnp.full((Np,), 1e10, jnp.float32)
    idxs0 = jnp.zeros((n_samples,), jnp.int32)
    _, idxs = lax.fori_loop(1, n_samples, body, (dists0, idxs0))
    return idxs


def group_divider(xyz, num_group, group_size):
    fps_idx = jax.vmap(lambda p: _fps_indices(p, num_group))(xyz)        # (B, G)
    center = jax.vmap(lambda p, i: p[i])(xyz, fps_idx)                   # (B, G, 3)
    d = jnp.sum(jnp.square(center[:, :, None, :] - xyz[:, None, :, :]), axis=-1)
    _, knn_idx = lax.top_k(-d, group_size)                               # (B, G, K)
    neighborhood = jax.vmap(lambda p, i: p[i])(xyz, knn_idx)             # (B, G, K, 3)
    neighborhood = neighborhood - center[:, :, None, :]
    return neighborhood, center


# ------------------------------- parameters ---------------------------------
def _fold_bn(w, b, gamma, beta, mean, var, eps=1e-5):
    s = gamma / jnp.sqrt(var + eps)
    return w * s[None, :], b * s + (beta - mean * s)


def init_params(key):
    keys = iter(jax.random.split(key, 64))

    def nrm(shape, std=0.02):
        return std * jax.random.normal(next(keys), shape, jnp.float32)

    C, H = TRANS_DIM, NUM_HEADS
    Dh = C // H
    Hm = C * MLP_RATIO
    scale = float(Dh) ** (-0.5)

    p = {}
    vec = jnp.zeros((VEC_ROWS, VEC_W), jnp.float32)

    def setr(r, v):
        nonlocal vec
        v = jnp.reshape(jnp.asarray(v, jnp.float32), (-1,))
        vec = vec.at[r, :v.shape[0]].set(v)

    # ---- Encoder: Conv(3,128)+BN+ReLU+Conv(128,256); Conv(512,512)+BN+ReLU+Conv(512,Cenc)
    w1, b1 = nrm((3, 128)), jnp.zeros((128,), jnp.float32)
    w1, b1 = _fold_bn(w1, b1, jnp.ones((128,)), jnp.zeros((128,)),
                      jnp.zeros((128,)), jnp.ones((128,)))
    for i in range(3):
        setr(R_ENC_W1 + i, w1[i])
    setr(R_ENC_B1, b1)
    p["enc_w2"] = nrm((128, 256)).astype(jnp.bfloat16)
    setr(R_ENC_B2, jnp.zeros((256,)))
    w3, b3 = nrm((512, 512)), jnp.zeros((512,), jnp.float32)
    w3, b3 = _fold_bn(w3, b3, jnp.ones((512,)), jnp.zeros((512,)),
                      jnp.zeros((512,)), jnp.ones((512,)))
    p["enc_w3"] = w3.astype(jnp.bfloat16)
    setr(R_ENC_B3, b3)
    p["enc_w4"] = nrm((512, ENCODER_DIMS)).astype(jnp.bfloat16)
    setr(R_ENC_B4, jnp.zeros((ENCODER_DIMS,)))

    # ---- pos_embed: Linear(3,128) -> GELU -> Linear(128, C)
    wp1 = nrm((3, 128))
    for i in range(3):
        setr(R_WP1 + i, wp1[i])
    setr(R_BP1, jnp.zeros((128,)))
    p["wp2"] = nrm((128, C))
    setr(R_BP2, jnp.zeros((C,)))

    # ---- cls token / pos, final LayerNorm
    setr(R_CLS_TOK, nrm((C,)))
    setr(R_CLS_POS, nrm((C,)))
    setr(R_NORM_G, jnp.ones((C,)))
    setr(R_NORM_B, jnp.zeros((C,)))

    # ---- transformer blocks (stacked along a leading depth axis, lane-dense weights)
    wqkv, wpj, wfc1, wfc2 = [], [], [], []
    for d in range(DEPTH):
        base = R_BLK + N_BLK_ROWS * d
        setr(base + 0, jnp.ones((C,)))      # ln1 gamma
        setr(base + 1, jnp.zeros((C,)))     # ln1 beta
        setr(base + 2, jnp.ones((C,)))      # ln2 gamma
        setr(base + 3, jnp.zeros((C,)))     # ln2 beta
        setr(base + 4, jnp.zeros((C,)))     # attn proj bias
        setr(base + 5, jnp.zeros((Hm,)))    # mlp fc1 bias
        setr(base + 6, jnp.zeros((C,)))     # mlp fc2 bias
        w = nrm((C, 3 * C))                 # qkv (qkv_bias=False)
        w = w.at[:, :C].multiply(scale)     # attention scale folded into Wq
        wqkv.append(w)
        wpj.append(nrm((C, C)))
        wfc1.append(nrm((C, Hm)))
        wfc2.append(nrm((Hm, C)))
    p["wqkv"] = jnp.stack(wqkv)             # [D, C, 3C]
    p["wpj"] = jnp.stack(wpj)               # [D, C, C]
    p["wfc1"] = jnp.stack(wfc1)             # [D, C, Hm]
    p["wfc2"] = jnp.stack(wfc2)             # [D, Hm, C]

    # ---- class head: Linear(2C,256)+BN+ReLU+Dropout, then Linear(256, cls_dim)
    wc1, bc1 = nrm((2 * C, 256)), jnp.zeros((256,), jnp.float32)
    wc1, bc1 = _fold_bn(wc1, bc1, jnp.ones((256,)), jnp.zeros((256,)),
                        jnp.zeros((256,)), jnp.ones((256,)))
    p["wc1"] = wc1
    setr(R_BC1, bc1)
    wc2 = nrm((256, CLS_DIM))
    p["wc2"] = jnp.zeros((256, OUT_PAD), jnp.float32).at[:, :CLS_DIM].set(wc2)
    setr(R_BC2, jnp.zeros((OUT_PAD,)))

    p["vec"] = vec
    return p


# --------------------------------- forward ----------------------------------
def forward(params, pts):
    neighborhood, center = group_divider(pts, NUM_GROUP, GROUP_SIZE)   # (B,G,K,3), (B,G,3)
    return pallas_point_transformer(neighborhood, center, params)      # (B, CLS_DIM)


# ----------------------------------- main ------------------------------------
if __name__ == "__main__":
    key = jax.random.PRNGKey(0)
    kp, kx = jax.random.split(key)
    params = init_params(kp)

    B, N_PTS = 2, 64
    pts = jax.random.normal(kx, (B, N_PTS, 3), jnp.float32)

    fwd = jax.jit(forward)
    out = jax.block_until_ready(fwd(params, pts))
    assert out.shape == (B, CLS_DIM), out.shape
    assert bool(jnp.all(jnp.isfinite(out)))
    print("KERNEL_OK")
</pallas_src>

<mosaic_0001>
module attributes {stable_mosaic.version = 11 : i64} {
  func.func @_fused_kernel(%arg0: i32, %arg1: memref<1x64x3xf32, #tpu.memory_space<vmem>>, %arg2: memref<1x8x3xf32, #tpu.memory_space<vmem>>, %arg3: memref<32x512xf32, #tpu.memory_space<vmem>>, %arg4: memref<128x256xbf16, #tpu.memory_space<vmem>>, %arg5: memref<512x512xbf16, #tpu.memory_space<vmem>>, %arg6: memref<512x64xbf16, #tpu.memory_space<vmem>>, %arg7: memref<128x64xf32, #tpu.memory_space<vmem>>, %arg8: memref<2x64x192xf32, #tpu.memory_space<vmem>>, %arg9: memref<2x64x64xf32, #tpu.memory_space<vmem>>, %arg10: memref<2x64x256xf32, #tpu.memory_space<vmem>>, %arg11: memref<2x256x64xf32, #tpu.memory_space<vmem>>, %arg12: memref<128x256xf32, #tpu.memory_space<vmem>>, %arg13: memref<256x128xf32, #tpu.memory_space<vmem>>, %arg14: memref<1x1x128xf32, #tpu.memory_space<vmem>>) attributes {dimension_semantics = [#tpu.dimension_semantics<parallel>], iteration_bounds = array<i64: 2>, scalar_prefetch = 0 : i64, scratch_operands = 0 : i64, tpu.core_type = #tpu.core_type<tc>, window_params = [{transform_indices = @transform_0, window_bounds = array<i64: 1, 64, 3>}, {transform_indices = @transform_1, window_bounds = array<i64: 1, 8, 3>}, {pipeline_mode = #tpu.pipeline_mode<synchronous>, transform_indices = @transform_2, window_bounds = array<i64: 32, 512>}, {pipeline_mode = #tpu.pipeline_mode<synchronous>, transform_indices = @transform_3, window_bounds = array<i64: 128, 256>}, {pipeline_mode = #tpu.pipeline_mode<synchronous>, transform_indices = @transform_4, window_bounds = array<i64: 512, 512>}, {pipeline_mode = #tpu.pipeline_mode<synchronous>, transform_indices = @transform_5, window_bounds = array<i64: 512, 64>}, {pipeline_mode = #tpu.pipeline_mode<synchronous>, transform_indices = @transform_6, window_bounds = array<i64: 128, 64>}, {pipeline_mode = #tpu.pipeline_mode<synchronous>, transform_indices = @transform_7, window_bounds = array<i64: 2, 64, 192>}, {pipeline_mode = #tpu.pipeline_mode<synchronous>, transform_indices = @transform_8, window_bounds = array<i64: 2, 64, 64>}, {pipeline_mode = #tpu.pipeline_mode<synchronous>, transform_indices = @transform_9, window_bounds = array<i64: 2, 64, 256>}, {pipeline_mode = #tpu.pipeline_mode<synchronous>, transform_indices = @transform_10, window_bounds = array<i64: 2, 256, 64>}, {pipeline_mode = #tpu.pipeline_mode<synchronous>, transform_indices = @transform_11, window_bounds = array<i64: 128, 256>}, {pipeline_mode = #tpu.pipeline_mode<synchronous>, transform_indices = @transform_12, window_bounds = array<i64: 256, 128>}, {transform_indices = @transform_13, window_bounds = array<i64: 1, 1, 128>}]} {
    %c0 = arith.constant 0 : index
    %c0_0 = arith.constant 0 : index
    %c0_1 = arith.constant 0 : index
    %0 = vector.load %arg1[%c0, %c0_0, %c0_1] : memref<1x64x3xf32, #tpu.memory_space<vmem>>, vector<1x64x3xf32>
    %1 = vector.shape_cast %0 : vector<1x64x3xf32> to vector<64x3xf32>
    %2 = vector.extract_strided_slice %1 {offsets = [0, 0], sizes = [64, 1], strides = [1, 1]} : vector<64x3xf32> to vector<64x1xf32>
    %c4 = arith.constant 4 : index
    %c0_2 = arith.constant 0 : index
    %3 = vector.load %arg3[%c4, %c0_2] : memref<32x512xf32, #tpu.memory_space<vmem>>, vector<1x128xf32>
    %4 = vector.broadcast %2 : vector<64x1xf32> to vector<64x128xf32>
    %5 = vector.broadcast %3 : vector<1x128xf32> to vector<64x128xf32>
    %6 = arith.mulf %4, %5 : vector<64x128xf32>
    %7 = vector.extract_strided_slice %1 {offsets = [0, 1], sizes = [64, 1], strides = [1, 1]} : vector<64x3xf32> to vector<64x1xf32>
    %c5 = arith.constant 5 : index
    %c0_3 = arith.constant 0 : index
    %8 = vector.load %arg3[%c5, %c0_3] : memref<32x512xf32, #tpu.memory_space<vmem>>, vector<1x128xf32>
    %9 = vector.broadcast %7 : vector<64x1xf32> to vector<64x128xf32>
    %10 = vector.broadcast %8 : vector<1x128xf32> to vector<64x128xf32>
    %11 = arith.mulf %9, %10 : vector<64x128xf32>
    %12 = arith.addf %6, %11 : vector<64x128xf32>
    %13 = vector.extract_strided_slice %1 {offsets = [0, 2], sizes = [64, 1], strides = [1, 1]} : vector<64x3xf32> to vector<64x1xf32>
    %c6 = arith.constant 6 : index
    %c0_4 = arith.constant 0 : index
    %14 = vector.load %arg3[%c6, %c0_4] : memref<32x512xf32, #tpu.memory_space<vmem>>, vector<1x128xf32>
    %15 = vector.broadcast %13 : vector<64x1xf32> to vector<64x128xf32>
    %16 = vector.broadcast %14 : vector<1x128xf32> to vector<64x128xf32>
    %17 = arith.mulf %15, %16 : vector<64x128xf32>
    %18 = arith.addf %12, %17 : vector<64x128xf32>
    %c0_5 = arith.constant 0 : index
    %c0_6 = arith.constant 0 : index
    %19 = vector.load %arg3[%c0_5, %c0_6] : memref<32x512xf32, #tpu.memory_space<vmem>>, vector<1x128xf32>
    %20 = vector.broadcast %19 : vector<1x128xf32> to vector<64x128xf32>
    %21 = arith.addf %18, %20 : vector<64x128xf32>
    %cst = arith.constant 0.000000e+00 : f32
    %22 = vector.broadcast %cst : f32 to vector<64x128xf32>
    %23 = arith.maximumf %21, %22 : vector<64x128xf32>
    %24 = arith.truncf %23 : vector<64x128xf32> to vector<64x128xbf16>
    %c0_7 = arith.constant 0 : index
    %c0_8 = arith.constant 0 : index
    %25 = vector.load %arg4[%c0_7, %c0_8] : memref<128x256xbf16, #tpu.memory_space<vmem>>, vector<128x256xbf16>
    %cst_9 = arith.constant dense<0.000000e+00> : vector<64x256xf32>
    %26 = tpu.matmul %24, %25, %cst_9 {dimension_numbers = #tpu.dot_dimension_numbers<[1], [0], [0], [1], [0, 0, 1, 1], [], []>} : vector<64x128xbf16>, vector<128x256xbf16>, vector<64x256xf32> -> vector<64x256xf32>
    %c1 = arith.constant 1 : index
    %c0_10 = arith.constant 0 : index
    %27 = vector.load %arg3[%c1, %c0_10] : memref<32x512xf32, #tpu.memory_space<vmem>>, vector<1x256xf32>
    %28 = vector.broadcast %27 : vector<1x256xf32> to vector<64x256xf32>
    %29 = arith.addf %26, %28 : vector<64x256xf32>
    %30 = vector.shape_cast %29 : vector<64x256xf32> to vector<8x8x256xf32>
    %cst_11 = arith.constant dense<0xFF800000> : vector<8x256xf32>
    %31 = vector.multi_reduction <maximumf>, %30, %cst_11 [1] : vector<8x8x256xf32> to vector<8x256xf32>
    %32 = arith.truncf %31 : vector<8x256xf32> to vector<8x256xbf16>
    %c0_12 = arith.constant 0 : index
    %c0_13 = arith.constant 0 : index
    %33 = vector.load %arg5[%c0_12, %c0_13] : memref<512x512xbf16, #tpu.memory_space<vmem>>, vector<256x512xbf16>
    %cst_14 = arith.constant dense<0.000000e+00> : vector<8x512xf32>
    %34 = tpu.matmul %32, %33, %cst_14 {dimension_numbers = #tpu.dot_dimension_numbers<[1], [0], [0], [1], [0, 0, 1, 1], [], []>} : vector<8x256xbf16>, vector<256x512xbf16>, vector<8x512xf32> -> vector<8x512xf32>
    %c2 = arith.constant 2 : index
    %c0_15 = arith.constant 0 : index
    %35 = vector.load %arg3[%c2, %c0_15] : memref<32x512xf32, #tpu.memory_space<vmem>>, vector<1x512xf32>
    %36 = vector.broadcast %35 : vector<1x512xf32> to vector<8x512xf32>
    %37 = arith.addf %34, %36 : vector<8x512xf32>
    %38 = arith.truncf %29 : vector<64x256xf32> to vector<64x256xbf16>
    %c256 = arith.constant 256 : index
    %c0_16 = arith.constant 0 : index
    %39 = vector.load %arg5[%c256, %c0_16] : memref<512x512xbf16, #tpu.memory_space<vmem>>, vector<256x512xbf16>
    %cst_17 = arith.constant dense<0.000000e+00> : vector<64x512xf32>
    %40 = tpu.matmul %38, %39, %cst_17 {dimension_numbers = #tpu.dot_dimension_numbers<[1], [0], [0], [1], [0, 0, 1, 1], [], []>} : vector<64x256xbf16>, vector<256x512xbf16>, vector<64x512xf32> -> vector<64x512xf32>
    %41 = vector.shape_cast %40 : vector<64x512xf32> to vector<8x8x512xf32>
    %42 = vector.shape_cast %37 : vector<8x512xf32> to vector<8x1x512xf32>
    %43 = vector.broadcast %42 : vector<8x1x512xf32> to vector<8x8x512xf32>
    %44 = arith.addf %41, %43 : vector<8x8x512xf32>
    %cst_18 = arith.constant 0.000000e+00 : f32
    %45 = vector.broadcast %cst_18 : f32 to vector<8x8x512xf32>
    %46 = arith.maximumf %44, %45 : vector<8x8x512xf32>
    %47 = vector.shape_cast %46 : vector<8x8x512xf32> to vector<64x512xf32>
    %48 = arith.truncf %47 : vector<64x512xf32> to vector<64x512xbf16>
    %c0_19 = arith.constant 0 : index
    %c0_20 = arith.constant 0 : index
    %49 = vector.load %arg6[%c0_19, %c0_20] : memref<512x64xbf16, #tpu.memory_space<vmem>>, vector<512x64xbf16>
    %cst_21 = arith.constant dense<0.000000e+00> : vector<64x64xf32>
    %50 = tpu.matmul %48, %49, %cst_21 {dimension_numbers = #tpu.dot_dimension_numbers<[1], [0], [0], [1], [0, 0, 1, 1], [], []>} : vector<64x512xbf16>, vector<512x64xbf16>, vector<64x64xf32> -> vector<64x64xf32>
    %c3 = arith.constant 3 : index
    %c0_22 = arith.constant 0 : index
    %51 = vector.load %arg3[%c3, %c0_22] : memref<32x512xf32, #tpu.memory_space<vmem>>, vector<1x64xf32>
    %52 = vector.broadcast %51 : vector<1x64xf32> to vector<64x64xf32>
    %53 = arith.addf %50, %52 : vector<64x64xf32>
    %54 = vector.shape_cast %53 : vector<64x64xf32> to vector<8x8x64xf32>
    %cst_23 = arith.constant dense<0xFF800000> : vector<8x64xf32>
    %55 = vector.multi_reduction <maximumf>, %54, %cst_23 [1] : vector<8x8x64xf32> to vector<8x64xf32>
    %c0_24 = arith.constant 0 : index
    %c0_25 = arith.constant 0 : index
    %c0_26 = arith.constant 0 : index
    %56 = vector.load %arg2[%c0_24, %c0_25, %c0_26] : memref<1x8x3xf32, #tpu.memory_space<vmem>>, vector<1x8x3xf32>
    %57 = vector.shape_cast %56 : vector<1x8x3xf32> to vector<8x3xf32>
    %58 = vector.extract_strided_slice %57 {offsets = [0, 0], sizes = [8, 1], strides = [1, 1]} : vector<8x3xf32> to vector<8x1xf32>
    %c9 = arith.constant 9 : index
    %c0_27 = arith.constant 0 : index
    %59 = vector.load %arg3[%c9, %c0_27] : memref<32x512xf32, #tpu.memory_space<vmem>>, vector<1x128xf32>
    %60 = vector.broadcast %58 : vector<8x1xf32> to vector<8x128xf32>
    %61 = vector.broadcast %59 : vector<1x128xf32> to vector<8x128xf32>
    %62 = arith.mulf %60, %61 : vector<8x128xf32>
    %63 = vector.extract_strided_slice %57 {offsets = [0, 1], sizes = [8, 1], strides = [1, 1]} : vector<8x3xf32> to vector<8x1xf32>
    %c10 = arith.constant 10 : index
    %c0_28 = arith.constant 0 : index
    %64 = vector.load %arg3[%c10, %c0_28] : memref<32x512xf32, #tpu.memory_space<vmem>>, vector<1x128xf32>
    %65 = vector.broadcast %63 : vector<8x1xf32> to vector<8x128xf32>
    %66 = vector.broadcast %64 : vector<1x128xf32> to vector<8x128xf32>
    %67 = arith.mulf %65, %66 : vector<8x128xf32>
    %68 = arith.addf %62, %67 : vector<8x128xf32>
    %69 = vector.extract_strided_slice %57 {offsets = [0, 2], sizes = [8, 1], strides = [1, 1]} : vector<8x3xf32> to vector<8x1xf32>
    %c11 = arith.constant 11 : index
    %c0_29 = arith.constant 0 : index
    %70 = vector.load %arg3[%c11, %c0_29] : memref<32x512xf32, #tpu.memory_space<vmem>>, vector<1x128xf32>
    %71 = vector.broadcast %69 : vector<8x1xf32> to vector<8x128xf32>
    %72 = vector.broadcast %70 : vector<1x128xf32> to vector<8x128xf32>
    %73 = arith.mulf %71, %72 : vector<8x128xf32>
    %74 = arith.addf %68, %73 : vector<8x128xf32>
    %c7 = arith.constant 7 : index
    %c0_30 = arith.constant 0 : index
    %75 = vector.load %arg3[%c7, %c0_30] : memref<32x512xf32, #tpu.memory_space<vmem>>, vector<1x128xf32>
    %76 = vector.broadcast %75 : vector<1x128xf32> to vector<8x128xf32>
    %77 = arith.addf %74, %76 : vector<8x128xf32>
    %cst_31 = arith.constant 5.000000e-01 : f32
    %78 = vector.broadcast %cst_31 : f32 to vector<8x128xf32>
    %79 = arith.mulf %78, %77 : vector<8x128xf32>
    %cst_32 = arith.constant 4.471500e-02 : f32
    %80 = vector.broadcast %cst_32 : f32 to vector<8x128xf32>
    %81 = arith.mulf %80, %77 : vector<8x128xf32>
    %82 = arith.mulf %81, %77 : vector<8x128xf32>
    %83 = arith.mulf %82, %77 : vector<8x128xf32>
    %84 = arith.addf %77, %83 : vector<8x128xf32>
    %cst_33 = arith.constant 0.797884583 : f32
    %85 = vector.broadcast %cst_33 : f32 to vector<8x128xf32>
    %86 = arith.mulf %85, %84 : vector<8x128xf32>
    %87 = math.tanh %86 : vector<8x128xf32>
    %cst_34 = arith.constant 1.000000e+00 : f32
    %88 = vector.broadcast %cst_34 : f32 to vector<8x128xf32>
    %89 = arith.addf %88, %87 : vector<8x128xf32>
    %90 = arith.mulf %79, %89 : vector<8x128xf32>
    %c0_35 = arith.constant 0 : index
    %c0_36 = arith.constant 0 : index
    %91 = vector.load %arg7[%c0_35, %c0_36] : memref<128x64xf32, #tpu.memory_space<vmem>>, vector<128x64xf32>
    %cst_37 = arith.constant dense<0.000000e+00> : vector<8x64xf32>
    %92 = tpu.matmul %90, %91, %cst_37 {dimension_numbers = #tpu.dot_dimension_numbers<[1], [0], [0], [1], [0, 0, 1, 1], [], []>} : vector<8x128xf32>, vector<128x64xf32>, vector<8x64xf32> -> vector<8x64xf32>
    %c8 = arith.constant 8 : index
    %c0_38 = arith.constant 0 : index
    %93 = vector.load %arg3[%c8, %c0_38] : memref<32x512xf32, #tpu.memory_space<vmem>>, vector<1x64xf32>
    %94 = vector.broadcast %93 : vector<1x64xf32> to vector<8x64xf32>
    %95 = arith.addf %92, %94 : vector<8x64xf32>
    %cst_39 = arith.constant 0.000000e+00 : f32
    %96 = vector.broadcast %cst_39 : f32 to vector<7x64xf32>
    %c12 = arith.constant 12 : index
    %c0_40 = arith.constant 0 : index
    %97 = vector.load %arg3[%c12, %c0_40] : memref<32x512xf32, #tpu.memory_space<vmem>>, vector<1x64xf32>
    %98 = tpu.concatenate %55, %97, %96 in 0 : vector<8x64xf32>, vector<1x64xf32>, vector<7x64xf32> -> vector<16x64xf32>
    %c13 = arith.constant 13 : index
    %c0_41 = arith.constant 0 : index
    %99 = vector.load %arg3[%c13, %c0_41] : memref<32x512xf32, #tpu.memory_space<vmem>>, vector<1x64xf32>
    %100 = tpu.concatenate %95, %99, %96 in 0 : vector<8x64xf32>, vector<1x64xf32>, vector<7x64xf32> -> vector<16x64xf32>
    %101 = tpu.iota {dimensions = array<i32: 1>} : vector<16x16xi32>
    %c8_i32 = arith.constant 8 : i32
    %102 = vector.broadcast %c8_i32 : i32 to vector<16x16xi32>
    %103 = arith.cmpi sle, %101, %102 : vector<16x16xi32>
    %cst_42 = arith.constant 0.000000e+00 : f32
    %cst_43 = arith.constant -1.000000e+09 : f32
    %104 = vector.broadcast %cst_42 : f32 to vector<16x16xf32>
    %105 = vector.broadcast %cst_43 : f32 to vector<16x16xf32>
    %106 = arith.select %103, %104, %105 : vector<16x16xi1>, vector<16x16xf32>
    %107 = arith.addf %98, %100 : vector<16x64xf32>
    %c18 = arith.constant 18 : index
    %c0_44 = arith.constant 0 : index
    %108 = vector.load %arg3[%c18, %c0_44] : memref<32x512xf32, #tpu.memory_space<vmem>>, vector<1x64xf32>
    %c19 = arith.constant 19 : index
    %c0_45 = arith.constant 0 : index
    %109 = vector.load %arg3[%c19, %c0_45] : memref<32x512xf32, #tpu.memory_space<vmem>>, vector<1x64xf32>
    %cst_46 = arith.constant dense<0.000000e+00> : vector<16xf32>
    %110 = vector.multi_reduction <add>, %107, %cst_46 [1] : vector<16x64xf32> to vector<16xf32>
    %111 = vector.shape_cast %110 : vector<16xf32> to vector<16x1xf32>
    %cst_47 = arith.constant 6.400000e+01 : f32
    %112 = vector.broadcast %cst_47 : f32 to vector<16x1xf32>
    %113 = arith.divf %111, %112 : vector<16x1xf32>
    %114 = vector.broadcast %113 : vector<16x1xf32> to vector<16x64xf32>
    %115 = arith.subf %107, %114 : vector<16x64xf32>
    %116 = arith.mulf %115, %115 : vector<16x64xf32>
    %cst_48 = arith.constant dense<0.000000e+00> : vector<16xf32>
    %117 = vector.multi_reduction <add>, %116, %cst_48 [1] : vector<16x64xf32> to vector<16xf32>
    %118 = vector.shape_cast %117 : vector<16xf32> to vector<16x1xf32>
    %cst_49 = arith.constant 6.400000e+01 : f32
    %119 = vector.broadcast %cst_49 : f32 to vector<16x1xf32>
    %120 = arith.divf %118, %119 : vector<16x1xf32>
    %121 = vector.broadcast %113 : vector<16x1xf32> to vector<16x64xf32>
    %122 = arith.subf %107, %121 : vector<16x64xf32>
    %cst_50 = arith.constant 9.99999974E-6 : f32
    %123 = vector.broadcast %cst_50 : f32 to vector<16x1xf32>
    %124 = arith.addf %120, %123 : vector<16x1xf32>
    %125 = math.rsqrt %124 : vector<16x1xf32>
    %126 = vector.broadcast %125 : vector<16x1xf32> to vector<16x64xf32>
    %127 = arith.mulf %122, %126 : vector<16x64xf32>
    %128 = vector.broadcast %108 : vector<1x64xf32> to vector<16x64xf32>
    %129 = arith.mulf %127, %128 : vector<16x64xf32>
    %130 = vector.broadcast %109 : vector<1x64xf32> to vector<16x64xf32>
    %131 = arith.addf %129, %130 : vector<16x64xf32>
    %c0_51 = arith.constant 0 : index
    %c0_52 = arith.constant 0 : index
    %c0_53 = arith.constant 0 : index
    %132 = vector.load %arg8[%c0_51, %c0_52, %c0_53] : memref<2x64x192xf32, #tpu.memory_space<vmem>>, vector<1x64x192xf32>
    %133 = vector.shape_cast %132 : vector<1x64x192xf32> to vector<64x192xf32>
    %cst_54 = arith.constant dense<0.000000e+00> : vector<16x192xf32>
    %134 = tpu.matmul %131, %133, %cst_54 {dimension_numbers = #tpu.dot_dimension_numbers<[1], [0], [0], [1], [0, 0, 1, 1], [], []>} : vector<16x64xf32>, vector<64x192xf32>, vector<16x192xf32> -> vector<16x192xf32>
    %c0_55 = arith.constant 0 : index
    %c0_56 = arith.constant 0 : index
    %c0_57 = arith.constant 0 : index
    %135 = vector.load %arg9[%c0_55, %c0_56, %c0_57] : memref<2x64x64xf32, #tpu.memory_space<vmem>>, vector<1x64x64xf32>
    %136 = vector.shape_cast %135 : vector<1x64x64xf32> to vector<64x64xf32>
    %137 = vector.extract_strided_slice %134 {offsets = [0, 0], sizes = [16, 16], strides = [1, 1]} : vector<16x192xf32> to vector<16x16xf32>
    %138 = vector.extract_strided_slice %134 {offsets = [0, 64], sizes = [16, 16], strides = [1, 1]} : vector<16x192xf32> to vector<16x16xf32>
    %139 = vector.extract_strided_slice %134 {offsets = [0, 128], sizes = [16, 16], strides = [1, 1]} : vector<16x192xf32> to vector<16x16xf32>
    "tpu.trace_start"() <{level = 10 : i32, message = "nd,md->nm"}> : () -> ()
    %cst_58 = arith.constant dense<0.000000e+00> : vector<16x16xf32>
    %140 = tpu.matmul %137, %138, %cst_58 {dimension_numbers = #tpu.dot_dimension_numbers<[1], [1], [0], [0], [0, 0, 1, 0], [], []>} : vector<16x16xf32>, vector<16x16xf32>, vector<16x16xf32> -> vector<16x16xf32>
    "tpu.trace_stop"() : () -> ()
    %141 = arith.addf %140, %106 : vector<16x16xf32>
    %cst_59 = arith.constant dense<0xFF800000> : vector<16xf32>
    %142 = vector.multi_reduction <maximumf>, %141, %cst_59 [1] : vector<16x16xf32> to vector<16xf32>
    %143 = vector.shape_cast %142 : vector<16xf32> to vector<16x1xf32>
    %144 = vector.broadcast %143 : vector<16x1xf32> to vector<16x16xf32>
    %145 = arith.subf %141, %144 : vector<16x16xf32>
    %146 = math.exp %145 : vector<16x16xf32>
    %cst_60 = arith.constant dense<0.000000e+00> : vector<16xf32>
    %147 = vector.multi_reduction <add>, %146, %cst_60 [1] : vector<16x16xf32> to vector<16xf32>
    %148 = vector.shape_cast %147 : vector<16xf32> to vector<16x1xf32>
    %149 = tpu.reciprocal %148 {approx = true} : vector<16x1xf32> -> vector<16x1xf32>
    %150 = vector.broadcast %149 : vector<16x1xf32> to vector<16x16xf32>
    %151 = arith.mulf %146, %150 : vector<16x16xf32>
    %cst_61 = arith.constant dense<0.000000e+00> : vector<16x16xf32>
    %152 = tpu.matmul %151, %139, %cst_61 {dimension_numbers = #tpu.dot_dimension_numbers<[1], [0], [0], [1], [0, 0, 1, 1], [], []>} : vector<16x16xf32>, vector<16x16xf32>, vector<16x16xf32> -> vector<16x16xf32>
    %153 = vector.extract_strided_slice %136 {offsets = [0, 0], sizes = [16, 64], strides = [1, 1]} : vector<64x64xf32> to vector<16x64xf32>
    %cst_62 = arith.constant dense<0.000000e+00> : vector<16x64xf32>
    %154 = tpu.matmul %152, %153, %cst_62 {dimension_numbers = #tpu.dot_dimension_numbers<[1], [0], [0], [1], [0, 0, 1, 1], [], []>} : vector<16x16xf32>, vector<16x64xf32>, vector<16x64xf32> -> vector<16x64xf32>
    %155 = vector.extract_strided_slice %134 {offsets = [0, 16], sizes = [16, 16], strides = [1, 1]} : vector<16x192xf32> to vector<16x16xf32>
    %156 = vector.extract_strided_slice %134 {offsets = [0, 80], sizes = [16, 16], strides = [1, 1]} : vector<16x192xf32> to vector<16x16xf32>
    %157 = vector.extract_strided_slice %134 {offsets = [0, 144], sizes = [16, 16], strides = [1, 1]} : vector<16x192xf32> to vector<16x16xf32>
    "tpu.trace_start"() <{level = 10 : i32, message = "nd,md->nm"}> : () -> ()
    %cst_63 = arith.constant dense<0.000000e+00> : vector<16x16xf32>
    %158 = tpu.matmul %155, %156, %cst_63 {dimension_numbers = #tpu.dot_dimension_numbers<[1], [1], [0], [0], [0, 0, 1, 0], [], []>} : vector<16x16xf32>, vector<16x16xf32>, vector<16x16xf32> -> vector<16x16xf32>
    "tpu.trace_stop"() : () -> ()
    %159 = arith.addf %158, %106 : vector<16x16xf32>
    %cst_64 = arith.constant dense<0xFF800000> : vector<16xf32>
    %160 = vector.multi_reduction <maximumf>, %159, %cst_64 [1] : vector<16x16xf32> to vector<16xf32>
    %161 = vector.shape_cast %160 : vector<16xf32> to vector<16x1xf32>
    %162 = vector.broadcast %161 : vector<16x1xf32> to vector<16x16xf32>
    %163 = arith.subf %159, %162 : vector<16x16xf32>
    %164 = math.exp %163 : vector<16x16xf32>
    %cst_65 = arith.constant dense<0.000000e+00> : vector<16xf32>
    %165 = vector.multi_reduction <add>, %164, %cst_65 [1] : vector<16x16xf32> to vector<16xf32>
    %166 = vector.shape_cast %165 : vector<16xf32> to vector<16x1xf32>
    %167 = tpu.reciprocal %166 {approx = true} : vector<16x1xf32> -> vector<16x1xf32>
    %168 = vector.broadcast %167 : vector<16x1xf32> to vector<16x16xf32>
    %169 = arith.mulf %164, %168 : vector<16x16xf32>
    %cst_66 = arith.constant dense<0.000000e+00> : vector<16x16xf32>
    %170 = tpu.matmul %169, %157, %cst_66 {dimension_numbers = #tpu.dot_dimension_numbers<[1], [0], [0], [1], [0, 0, 1, 1], [], []>} : vector<16x16xf32>, vector<16x16xf32>, vector<16x16xf32> -> vector<16x16xf32>
    %171 = vector.extract_strided_slice %136 {offsets = [16, 0], sizes = [16, 64], strides = [1, 1]} : vector<64x64xf32> to vector<16x64xf32>
    %cst_67 = arith.constant dense<0.000000e+00> : vector<16x64xf32>
    %172 = tpu.matmul %170, %171, %cst_67 {dimension_numbers = #tpu.dot_dimension_numbers<[1], [0], [0], [1], [0, 0, 1, 1], [], []>} : vector<16x16xf32>, vector<16x64xf32>, vector<16x64xf32> -> vector<16x64xf32>
    %173 = arith.addf %154, %172 : vector<16x64xf32>
    %174 = vector.extract_strided_slice %134 {offsets = [0, 32], sizes = [16, 16], strides = [1, 1]} : vector<16x192xf32> to vector<16x16xf32>
    %175 = vector.extract_strided_slice %134 {offsets = [0, 96], sizes = [16, 16], strides = [1, 1]} : vector<16x192xf32> to vector<16x16xf32>
    %176 = vector.extract_strided_slice %134 {offsets = [0, 160], sizes = [16, 16], strides = [1, 1]} : vector<16x192xf32> to vector<16x16xf32>
    "tpu.trace_start"() <{level = 10 : i32, message = "nd,md->nm"}> : () -> ()
    %cst_68 = arith.constant dense<0.000000e+00> : vector<16x16xf32>
    %177 = tpu.matmul %174, %175, %cst_68 {dimension_numbers = #tpu.dot_dimension_numbers<[1], [1], [0], [0], [0, 0, 1, 0], [], []>} : vector<16x16xf32>, vector<16x16xf32>, vector<16x16xf32> -> vector<16x16xf32>
    "tpu.trace_stop"() : () -> ()
    %178 = arith.addf %177, %106 : vector<16x16xf32>
    %cst_69 = arith.constant dense<0xFF800000> : vector<16xf32>
    %179 = vector.multi_reduction <maximumf>, %178, %cst_69 [1] : vector<16x16xf32> to vector<16xf32>
    %180 = vector.shape_cast %179 : vector<16xf32> to vector<16x1xf32>
    %181 = vector.broadcast %180 : vector<16x1xf32> to vector<16x16xf32>
    %182 = arith.subf %178, %181 : vector<16x16xf32>
    %183 = math.exp %182 : vector<16x16xf32>
    %cst_70 = arith.constant dense<0.000000e+00> : vector<16xf32>
    %184 = vector.multi_reduction <add>, %183, %cst_70 [1] : vector<16x16xf32> to vector<16xf32>
    %185 = vector.shape_cast %184 : vector<16xf32> to vector<16x1xf32>
    %186 = tpu.reciprocal %185 {approx = true} : vector<16x1xf32> -> vector<16x1xf32>
    %187 = vector.broadcast %186 : vector<16x1xf32> to vector<16x16xf32>
    %188 = arith.mulf %183, %187 : vector<16x16xf32>
    %cst_71 = arith.constant dense<0.000000e+00> : vector<16x16xf32>
    %189 = tpu.matmul %188, %176, %cst_71 {dimension_numbers = #tpu.dot_dimension_numbers<[1], [0], [0], [1], [0, 0, 1, 1], [], []>} : vector<16x16xf32>, vector<16x16xf32>, vector<16x16xf32> -> vector<16x16xf32>
    %190 = vector.extract_strided_slice %136 {offsets = [32, 0], sizes = [16, 64], strides = [1, 1]} : vector<64x64xf32> to vector<16x64xf32>
    %cst_72 = arith.constant dense<0.000000e+00> : vector<16x64xf32>
    %191 = tpu.matmul %189, %190, %cst_72 {dimension_numbers = #tpu.dot_dimension_numbers<[1], [0], [0], [1], [0, 0, 1, 1], [], []>} : vector<16x16xf32>, vector<16x64xf32>, vector<16x64xf32> -> vector<16x64xf32>
    %192 = arith.addf %173, %191 : vector<16x64xf32>
    %193 = vector.extract_strided_slice %134 {offsets = [0, 48], sizes = [16, 16], strides = [1, 1]} : vector<16x192xf32> to vector<16x16xf32>
    %194 = vector.extract_strided_slice %134 {offsets = [0, 112], sizes = [16, 16], strides = [1, 1]} : vector<16x192xf32> to vector<16x16xf32>
    %195 = vector.extract_strided_slice %134 {offsets = [0, 176], sizes = [16, 16], strides = [1, 1]} : vector<16x192xf32> to vector<16x16xf32>
    "tpu.trace_start"() <{level = 10 : i32, message = "nd,md->nm"}> : () -> ()
    %cst_73 = arith.constant dense<0.000000e+00> : vector<16x16xf32>
    %196 = tpu.matmul %193, %194, %cst_73 {dimension_numbers = #tpu.dot_dimension_numbers<[1], [1], [0], [0], [0, 0, 1, 0], [], []>} : vector<16x16xf32>, vector<16x16xf32>, vector<16x16xf32> -> vector<16x16xf32>
    "tpu.trace_stop"() : () -> ()
    %197 = arith.addf %196, %106 : vector<16x16xf32>
    %cst_74 = arith.constant dense<0xFF800000> : vector<16xf32>
    %198 = vector.multi_reduction <maximumf>, %197, %cst_74 [1] : vector<16x16xf32> to vector<16xf32>
    %199 = vector.shape_cast %198 : vector<16xf32> to vector<16x1xf32>
    %200 = vector.broadcast %199 : vector<16x1xf32> to vector<16x16xf32>
    %201 = arith.subf %197, %200 : vector<16x16xf32>
    %202 = math.exp %201 : vector<16x16xf32>
    %cst_75 = arith.constant dense<0.000000e+00> : vector<16xf32>
    %203 = vector.multi_reduction <add>, %202, %cst_75 [1] : vector<16x16xf32> to vector<16xf32>
    %204 = vector.shape_cast %203 : vector<16xf32> to vector<16x1xf32>
    %205 = tpu.reciprocal %204 {approx = true} : vector<16x1xf32> -> vector<16x1xf32>
    %206 = vector.broadcast %205 : vector<16x1xf32> to vector<16x16xf32>
    %207 = arith.mulf %202, %206 : vector<16x16xf32>
    %cst_76 = arith.constant dense<0.000000e+00> : vector<16x16xf32>
    %208 = tpu.matmul %207, %195, %cst_76 {dimension_numbers = #tpu.dot_dimension_numbers<[1], [0], [0], [1], [0, 0, 1, 1], [], []>} : vector<16x16xf32>, vector<16x16xf32>, vector<16x16xf32> -> vector<16x16xf32>
    %209 = vector.extract_strided_slice %136 {offsets = [48, 0], sizes = [16, 64], strides = [1, 1]} : vector<64x64xf32> to vector<16x64xf32>
    %cst_77 = arith.constant dense<0.000000e+00> : vector<16x64xf32>
    %210 = tpu.matmul %208, %209, %cst_77 {dimension_numbers = #tpu.dot_dimension_numbers<[1], [0], [0], [1], [0, 0, 1, 1], [], []>} : vector<16x16xf32>, vector<16x64xf32>, vector<16x64xf32> -> vector<16x64xf32>
    %211 = arith.addf %192, %210 : vector<16x64xf32>
    %c22 = arith.constant 22 : index
    %c0_78 = arith.constant 0 : index
    %212 = vector.load %arg3[%c22, %c0_78] : memref<32x512xf32, #tpu.memory_space<vmem>>, vector<1x64xf32>
    %213 = vector.broadcast %212 : vector<1x64xf32> to vector<16x64xf32>
    %214 = arith.addf %211, %213 : vector<16x64xf32>
    %215 = arith.addf %107, %214 : vector<16x64xf32>
    %c20 = arith.constant 20 : index
    %c0_79 = arith.constant 0 : index
    %216 = vector.load %arg3[%c20, %c0_79] : memref<32x512xf32, #tpu.memory_space<vmem>>, vector<1x64xf32>
    %c21 = arith.constant 21 : index
    %c0_80 = arith.constant 0 : index
    %217 = vector.load %arg3[%c21, %c0_80] : memref<32x512xf32, #tpu.memory_space<vmem>>, vector<1x64xf32>
    %cst_81 = arith.constant dense<0.000000e+00> : vector<16xf32>
    %218 = vector.multi_reduction <add>, %215, %cst_81 [1] : vector<16x64xf32> to vector<16xf32>
    %219 = vector.shape_cast %218 : vector<16xf32> to vector<16x1xf32>
    %cst_82 = arith.constant 6.400000e+01 : f32
    %220 = vector.broadcast %cst_82 : f32 to vector<16x1xf32>
    %221 = arith.divf %219, %220 : vector<16x1xf32>
    %222 = vector.broadcast %221 : vector<16x1xf32> to vector<16x64xf32>
    %223 = arith.subf %215, %222 : vector<16x64xf32>
    %224 = arith.mulf %223, %223 : vector<16x64xf32>
    %cst_83 = arith.constant dense<0.000000e+00> : vector<16xf32>
    %225 = vector.multi_reduction <add>, %224, %cst_83 [1] : vector<16x64xf32> to vector<16xf32>
    %226 = vector.shape_cast %225 : vector<16xf32> to vector<16x1xf32>
    %cst_84 = arith.constant 6.400000e+01 : f32
    %227 = vector.broadcast %cst_84 : f32 to vector<16x1xf32>
    %228 = arith.divf %226, %227 : vector<16x1xf32>
    %229 = vector.broadcast %221 : vector<16x1xf32> to vector<16x64xf32>
    %230 = arith.subf %215, %229 : vector<16x64xf32>
    %cst_85 = arith.constant 9.99999974E-6 : f32
    %231 = vector.broadcast %cst_85 : f32 to vector<16x1xf32>
    %232 = arith.addf %228, %231 : vector<16x1xf32>
    %233 = math.rsqrt %232 : vector<16x1xf32>
    %234 = vector.broadcast %233 : vector<16x1xf32> to vector<16x64xf32>
    %235 = arith.mulf %230, %234 : vector<16x64xf32>
    %236 = vector.broadcast %216 : vector<1x64xf32> to vector<16x64xf32>
    %237 = arith.mulf %235, %236 : vector<16x64xf32>
    %238 = vector.broadcast %217 : vector<1x64xf32> to vector<16x64xf32>
    %239 = arith.addf %237, %238 : vector<16x64xf32>
    %c0_86 = arith.constant 0 : index
    %c0_87 = arith.constant 0 : index
    %c0_88 = arith.constant 0 : index
    %240 = vector.load %arg10[%c0_86, %c0_87, %c0_88] : memref<2x64x256xf32, #tpu.memory_space<vmem>>, vector<1x64x256xf32>
    %241 = vector.shape_cast %240 : vector<1x64x256xf32> to vector<64x256xf32>
    %cst_89 = arith.constant dense<0.000000e+00> : vector<16x256xf32>
    %242 = tpu.matmul %239, %241, %cst_89 {dimension_numbers = #tpu.dot_dimension_numbers<[1], [0], [0], [1], [0, 0, 1, 1], [], []>} : vector<16x64xf32>, vector<64x256xf32>, vector<16x256xf32> -> vector<16x256xf32>
    %c23 = arith.constant 23 : index
    %c0_90 = arith.constant 0 : index
    %243 = vector.load %arg3[%c23, %c0_90] : memref<32x512xf32, #tpu.memory_space<vmem>>, vector<1x256xf32>
    %244 = vector.broadcast %243 : vector<1x256xf32> to vector<16x256xf32>
    %245 = arith.addf %242, %244 : vector<16x256xf32>
    %cst_91 = arith.constant 5.000000e-01 : f32
    %246 = vector.broadcast %cst_91 : f32 to vector<16x256xf32>
    %247 = arith.mulf %246, %245 : vector<16x256xf32>
    %cst_92 = arith.constant 4.471500e-02 : f32
    %248 = vector.broadcast %cst_92 : f32 to vector<16x256xf32>
    %249 = arith.mulf %248, %245 : vector<16x256xf32>
    %250 = arith.mulf %249, %245 : vector<16x256xf32>
    %251 = arith.mulf %250, %245 : vector<16x256xf32>
    %252 = arith.addf %245, %251 : vector<16x256xf32>
    %cst_93 = arith.constant 0.797884583 : f32
    %253 = vector.broadcast %cst_93 : f32 to vector<16x256xf32>
    %254 = arith.mulf %253, %252 : vector<16x256xf32>
    %255 = math.tanh %254 : vector<16x256xf32>
    %cst_94 = arith.constant 1.000000e+00 : f32
    %256 = vector.broadcast %cst_94 : f32 to vector<16x256xf32>
    %257 = arith.addf %256, %255 : vector<16x256xf32>
    %258 = arith.mulf %247, %257 : vector<16x256xf32>
    %c0_95 = arith.constant 0 : index
    %c0_96 = arith.constant 0 : index
    %c0_97 = arith.constant 0 : index
    %259 = vector.load %arg11[%c0_95, %c0_96, %c0_97] : memref<2x256x64xf32, #tpu.memory_space<vmem>>, vector<1x256x64xf32>
    %260 = vector.shape_cast %259 : vector<1x256x64xf32> to vector<256x64xf32>
    %cst_98 = arith.constant dense<0.000000e+00> : vector<16x64xf32>
    %261 = tpu.matmul %258, %260, %cst_98 {dimension_numbers = #tpu.dot_dimension_numbers<[1], [0], [0], [1], [0, 0, 1, 1], [], []>} : vector<16x256xf32>, vector<256x64xf32>, vector<16x64xf32> -> vector<16x64xf32>
    %262 = arith.addf %215, %261 : vector<16x64xf32>
    %c24 = arith.constant 24 : index
    %c0_99 = arith.constant 0 : index
    %263 = vector.load %arg3[%c24, %c0_99] : memref<32x512xf32, #tpu.memory_space<vmem>>, vector<1x64xf32>
    %264 = vector.broadcast %263 : vector<1x64xf32> to vector<16x64xf32>
    %265 = arith.addf %262, %264 : vector<16x64xf32>
    %266 = arith.addf %265, %100 : vector<16x64xf32>
    %c25 = arith.constant 25 : index
    %c0_100 = arith.constant 0 : index
    %267 = vector.load %arg3[%c25, %c0_100] : memref<32x512xf32, #tpu.memory_space<vmem>>, vector<1x64xf32>
    %c26 = arith.constant 26 : index
    %c0_101 = arith.constant 0 : index
    %268 = vector.load %arg3[%c26, %c0_101] : memref<32x512xf32, #tpu.memory_space<vmem>>, vector<1x64xf32>
    %cst_102 = arith.constant dense<0.000000e+00> : vector<16xf32>
    %269 = vector.multi_reduction <add>, %266, %cst_102 [1] : vector<16x64xf32> to vector<16xf32>
    %270 = vector.shape_cast %269 : vector<16xf32> to vector<16x1xf32>
    %cst_103 = arith.constant 6.400000e+01 : f32
    %271 = vector.broadcast %cst_103 : f32 to vector<16x1xf32>
    %272 = arith.divf %270, %271 : vector<16x1xf32>
    %273 = vector.broadcast %272 : vector<16x1xf32> to vector<16x64xf32>
    %274 = arith.subf %266, %273 : vector<16x64xf32>
    %275 = arith.mulf %274, %274 : vector<16x64xf32>
    %cst_104 = arith.constant dense<0.000000e+00> : vector<16xf32>
    %276 = vector.multi_reduction <add>, %275, %cst_104 [1] : vector<16x64xf32> to vector<16xf32>
    %277 = vector.shape_cast %276 : vector<16xf32> to vector<16x1xf32>
    %cst_105 = arith.constant 6.400000e+01 : f32
    %278 = vector.broadcast %cst_105 : f32 to vector<16x1xf32>
    %279 = arith.divf %277, %278 : vector<16x1xf32>
    %280 = vector.broadcast %272 : vector<16x1xf32> to vector<16x64xf32>
    %281 = arith.subf %266, %280 : vector<16x64xf32>
    %cst_106 = arith.constant 9.99999974E-6 : f32
    %282 = vector.broadcast %cst_106 : f32 to vector<16x1xf32>
    %283 = arith.addf %279, %282 : vector<16x1xf32>
    %284 = math.rsqrt %283 : vector<16x1xf32>
    %285 = vector.broadcast %284 : vector<16x1xf32> to vector<16x64xf32>
    %286 = arith.mulf %281, %285 : vector<16x64xf32>
    %287 = vector.broadcast %267 : vector<1x64xf32> to vector<16x64xf32>
    %288 = arith.mulf %286, %287 : vector<16x64xf32>
    %289 = vector.broadcast %268 : vector<1x64xf32> to vector<16x64xf32>
    %290 = arith.addf %288, %289 : vector<16x64xf32>
    %c1_107 = arith.constant 1 : index
    %c0_108 = arith.constant 0 : index
    %c0_109 = arith.constant 0 : index
    %291 = vector.load %arg8[%c1_107, %c0_108, %c0_109] : memref<2x64x192xf32, #tpu.memory_space<vmem>>, vector<1x64x192xf32>
    %292 = vector.shape_cast %291 : vector<1x64x192xf32> to vector<64x192xf32>
    %cst_110 = arith.constant dense<0.000000e+00> : vector<16x192xf32>
    %293 = tpu.matmul %290, %292, %cst_110 {dimension_numbers = #tpu.dot_dimension_numbers<[1], [0], [0], [1], [0, 0, 1, 1], [], []>} : vector<16x64xf32>, vector<64x192xf32>, vector<16x192xf32> -> vector<16x192xf32>
    %c1_111 = arith.constant 1 : index
    %c0_112 = arith.constant 0 : index
    %c0_113 = arith.constant 0 : index
    %294 = vector.load %arg9[%c1_111, %c0_112, %c0_113] : memref<2x64x64xf32, #tpu.memory_space<vmem>>, vector<1x64x64xf32>
    %295 = vector.shape_cast %294 : vector<1x64x64xf32> to vector<64x64xf32>
    %296 = vector.extract_strided_slice %293 {offsets = [0, 0], sizes = [16, 16], strides = [1, 1]} : vector<16x192xf32> to vector<16x16xf32>
    %297 = vector.extract_strided_slice %293 {offsets = [0, 64], sizes = [16, 16], strides = [1, 1]} : vector<16x192xf32> to vector<16x16xf32>
    %298 = vector.extract_strided_slice %293 {offsets = [0, 128], sizes = [16, 16], strides = [1, 1]} : vector<16x192xf32> to vector<16x16xf32>
    "tpu.trace_start"() <{level = 10 : i32, message = "nd,md->nm"}> : () -> ()
    %cst_114 = arith.constant dense<0.000000e+00> : vector<16x16xf32>
    %299 = tpu.matmul %296, %297, %cst_114 {dimension_numbers = #tpu.dot_dimension_numbers<[1], [1], [0], [0], [0, 0, 1, 0], [], []>} : vector<16x16xf32>, vector<16x16xf32>, vector<16x16xf32> -> vector<16x16xf32>
    "tpu.trace_stop"() : () -> ()
    %300 = arith.addf %299, %106 : vector<16x16xf32>
    %cst_115 = arith.constant dense<0xFF800000> : vector<16xf32>
    %301 = vector.multi_reduction <maximumf>, %300, %cst_115 [1] : vector<16x16xf32> to vector<16xf32>
    %302 = vector.shape_cast %301 : vector<16xf32> to vector<16x1xf32>
    %303 = vector.broadcast %302 : vector<16x1xf32> to vector<16x16xf32>
    %304 = arith.subf %300, %303 : vector<16x16xf32>
    %305 = math.exp %304 : vector<16x16xf32>
    %cst_116 = arith.constant dense<0.000000e+00> : vector<16xf32>
    %306 = vector.multi_reduction <add>, %305, %cst_116 [1] : vector<16x16xf32> to vector<16xf32>
    %307 = vector.shape_cast %306 : vector<16xf32> to vector<16x1xf32>
    %308 = tpu.reciprocal %307 {approx = true} : vector<16x1xf32> -> vector<16x1xf32>
    %309 = vector.broadcast %308 : vector<16x1xf32> to vector<16x16xf32>
    %310 = arith.mulf %305, %309 : vector<16x16xf32>
    %cst_117 = arith.constant dense<0.000000e+00> : vector<16x16xf32>
    %311 = tpu.matmul %310, %298, %cst_117 {dimension_numbers = #tpu.dot_dimension_numbers<[1], [0], [0], [1], [0, 0, 1, 1], [], []>} : vector<16x16xf32>, vector<16x16xf32>, vector<16x16xf32> -> vector<16x16xf32>
    %312 = vector.extract_strided_slice %295 {offsets = [0, 0], sizes = [16, 64], strides = [1, 1]} : vector<64x64xf32> to vector<16x64xf32>
    %cst_118 = arith.constant dense<0.000000e+00> : vector<16x64xf32>
    %313 = tpu.matmul %311, %312, %cst_118 {dimension_numbers = #tpu.dot_dimension_numbers<[1], [0], [0], [1], [0, 0, 1, 1], [], []>} : vector<16x16xf32>, vector<16x64xf32>, vector<16x64xf32> -> vector<16x64xf32>
    %314 = vector.extract_strided_slice %293 {offsets = [0, 16], sizes = [16, 16], strides = [1, 1]} : vector<16x192xf32> to vector<16x16xf32>
    %315 = vector.extract_strided_slice %293 {offsets = [0, 80], sizes = [16, 16], strides = [1, 1]} : vector<16x192xf32> to vector<16x16xf32>
    %316 = vector.extract_strided_slice %293 {offsets = [0, 144], sizes = [16, 16], strides = [1, 1]} : vector<16x192xf32> to vector<16x16xf32>
    "tpu.trace_start"() <{level = 10 : i32, message = "nd,md->nm"}> : () -> ()
    %cst_119 = arith.constant dense<0.000000e+00> : vector<16x16xf32>
    %317 = tpu.matmul %314, %315, %cst_119 {dimension_numbers = #tpu.dot_dimension_numbers<[1], [1], [0], [0], [0, 0, 1, 0], [], []>} : vector<16x16xf32>, vector<16x16xf32>, vector<16x16xf32> -> vector<16x16xf32>
    "tpu.trace_stop"() : () -> ()
    %318 = arith.addf %317, %106 : vector<16x16xf32>
    %cst_120 = arith.constant dense<0xFF800000> : vector<16xf32>
    %319 = vector.multi_reduction <maximumf>, %318, %cst_120 [1] : vector<16x16xf32> to vector<16xf32>
    %320 = vector.shape_cast %319 : vector<16xf32> to vector<16x1xf32>
    %321 = vector.broadcast %320 : vector<16x1xf32> to vector<16x16xf32>
    %322 = arith.subf %318, %321 : vector<16x16xf32>
    %323 = math.exp %322 : vector<16x16xf32>
    %cst_121 = arith.constant dense<0.000000e+00> : vector<16xf32>
    %324 = vector.multi_reduction <add>, %323, %cst_121 [1] : vector<16x16xf32> to vector<16xf32>
    %325 = vector.shape_cast %324 : vector<16xf32> to vector<16x1xf32>
    %326 = tpu.reciprocal %325 {approx = true} : vector<16x1xf32> -> vector<16x1xf32>
    %327 = vector.broadcast %326 : vector<16x1xf32> to vector<16x16xf32>
    %328 = arith.mulf %323, %327 : vector<16x16xf32>
    %cst_122 = arith.constant dense<0.000000e+00> : vector<16x16xf32>
    %329 = tpu.matmul %328, %316, %cst_122 {dimension_numbers = #tpu.dot_dimension_numbers<[1], [0], [0], [1], [0, 0, 1, 1], [], []>} : vector<16x16xf32>, vector<16x16xf32>, vector<16x16xf32> -> vector<16x16xf32>
    %330 = vector.extract_strided_slice %295 {offsets = [16, 0], sizes = [16, 64], strides = [1, 1]} : vector<64x64xf32> to vector<16x64xf32>
    %cst_123 = arith.constant dense<0.000000e+00> : vector<16x64xf32>
    %331 = tpu.matmul %329, %330, %cst_123 {dimension_numbers = #tpu.dot_dimension_numbers<[1], [0], [0], [1], [0, 0, 1, 1], [], []>} : vector<16x16xf32>, vector<16x64xf32>, vector<16x64xf32> -> vector<16x64xf32>
    %332 = arith.addf %313, %331 : vector<16x64xf32>
    %333 = vector.extract_strided_slice %293 {offsets = [0, 32], sizes = [16, 16], strides = [1, 1]} : vector<16x192xf32> to vector<16x16xf32>
    %334 = vector.extract_strided_slice %293 {offsets = [0, 96], sizes = [16, 16], strides = [1, 1]} : vector<16x192xf32> to vector<16x16xf32>
    %335 = vector.extract_strided_slice %293 {offsets = [0, 160], sizes = [16, 16], strides = [1, 1]} : vector<16x192xf32> to vector<16x16xf32>
    "tpu.trace_start"() <{level = 10 : i32, message = "nd,md->nm"}> : () -> ()
    %cst_124 = arith.constant dense<0.000000e+00> : vector<16x16xf32>
    %336 = tpu.matmul %333, %334, %cst_124 {dimension_numbers = #tpu.dot_dimension_numbers<[1], [1], [0], [0], [0, 0, 1, 0], [], []>} : vector<16x16xf32>, vector<16x16xf32>, vector<16x16xf32> -> vector<16x16xf32>
    "tpu.trace_stop"() : () -> ()
    %337 = arith.addf %336, %106 : vector<16x16xf32>
    %cst_125 = arith.constant dense<0xFF800000> : vector<16xf32>
    %338 = vector.multi_reduction <maximumf>, %337, %cst_125 [1] : vector<16x16xf32> to vector<16xf32>
    %339 = vector.shape_cast %338 : vector<16xf32> to vector<16x1xf32>
    %340 = vector.broadcast %339 : vector<16x1xf32> to vector<16x16xf32>
    %341 = arith.subf %337, %340 : vector<16x16xf32>
    %342 = math.exp %341 : vector<16x16xf32>
    %cst_126 = arith.constant dense<0.000000e+00> : vector<16xf32>
    %343 = vector.multi_reduction <add>, %342, %cst_126 [1] : vector<16x16xf32> to vector<16xf32>
    %344 = vector.shape_cast %343 : vector<16xf32> to vector<16x1xf32>
    %345 = tpu.reciprocal %344 {approx = true} : vector<16x1xf32> -> vector<16x1xf32>
    %346 = vector.broadcast %345 : vector<16x1xf32> to vector<16x16xf32>
    %347 = arith.mulf %342, %346 : vector<16x16xf32>
    %cst_127 = arith.constant dense<0.000000e+00> : vector<16x16xf32>
    %348 = tpu.matmul %347, %335, %cst_127 {dimension_numbers = #tpu.dot_dimension_numbers<[1], [0], [0], [1], [0, 0, 1, 1], [], []>} : vector<16x16xf32>, vector<16x16xf32>, vector<16x16xf32> -> vector<16x16xf32>
    %349 = vector.extract_strided_slice %295 {offsets = [32, 0], sizes = [16, 64], strides = [1, 1]} : vector<64x64xf32> to vector<16x64xf32>
    %cst_128 = arith.constant dense<0.000000e+00> : vector<16x64xf32>
    %350 = tpu.matmul %348, %349, %cst_128 {dimension_numbers = #tpu.dot_dimension_numbers<[1], [0], [0], [1], [0, 0, 1, 1], [], []>} : vector<16x16xf32>, vector<16x64xf32>, vector<16x64xf32> -> vector<16x64xf32>
    %351 = arith.addf %332, %350 : vector<16x64xf32>
    %352 = vector.extract_strided_slice %293 {offsets = [0, 48], sizes = [16, 16], strides = [1, 1]} : vector<16x192xf32> to vector<16x16xf32>
    %353 = vector.extract_strided_slice %293 {offsets = [0, 112], sizes = [16, 16], strides = [1, 1]} : vector<16x192xf32> to vector<16x16xf32>
    %354 = vector.extract_strided_slice %293 {offsets = [0, 176], sizes = [16, 16], strides = [1, 1]} : vector<16x192xf32> to vector<16x16xf32>
    "tpu.trace_start"() <{level = 10 : i32, message = "nd,md->nm"}> : () -> ()
    %cst_129 = arith.constant dense<0.000000e+00> : vector<16x16xf32>
    %355 = tpu.matmul %352, %353, %cst_129 {dimension_numbers = #tpu.dot_dimension_numbers<[1], [1], [0], [0], [0, 0, 1, 0], [], []>} : vector<16x16xf32>, vector<16x16xf32>, vector<16x16xf32> -> vector<16x16xf32>
    "tpu.trace_stop"() : () -> ()
    %356 = arith.addf %355, %106 : vector<16x16xf32>
    %cst_130 = arith.constant dense<0xFF800000> : vector<16xf32>
    %357 = vector.multi_reduction <maximumf>, %356, %cst_130 [1] : vector<16x16xf32> to vector<16xf32>
    %358 = vector.shape_cast %357 : vector<16xf32> to vector<16x1xf32>
    %359 = vector.broadcast %358 : vector<16x1xf32> to vector<16x16xf32>
    %360 = arith.subf %356, %359 : vector<16x16xf32>
    %361 = math.exp %360 : vector<16x16xf32>
    %cst_131 = arith.constant dense<0.000000e+00> : vector<16xf32>
    %362 = vector.multi_reduction <add>, %361, %cst_131 [1] : vector<16x16xf32> to vector<16xf32>
    %363 = vector.shape_cast %362 : vector<16xf32> to vector<16x1xf32>
    %364 = tpu.reciprocal %363 {approx = true} : vector<16x1xf32> -> vector<16x1xf32>
    %365 = vector.broadcast %364 : vector<16x1xf32> to vector<16x16xf32>
    %366 = arith.mulf %361, %365 : vector<16x16xf32>
    %cst_132 = arith.constant dense<0.000000e+00> : vector<16x16xf32>
    %367 = tpu.matmul %366, %354, %cst_132 {dimension_numbers = #tpu.dot_dimension_numbers<[1], [0], [0], [1], [0, 0, 1, 1], [], []>} : vector<16x16xf32>, vector<16x16xf32>, vector<16x16xf32> -> vector<16x16xf32>
    %368 = vector.extract_strided_slice %295 {offsets = [48, 0], sizes = [16, 64], strides = [1, 1]} : vector<64x64xf32> to vector<16x64xf32>
    %cst_133 = arith.constant dense<0.000000e+00> : vector<16x64xf32>
    %369 = tpu.matmul %367, %368, %cst_133 {dimension_numbers = #tpu.dot_dimension_numbers<[1], [0], [0], [1], [0, 0, 1, 1], [], []>} : vector<16x16xf32>, vector<16x64xf32>, vector<16x64xf32> -> vector<16x64xf32>
    %370 = arith.addf %351, %369 : vector<16x64xf32>
    %c29 = arith.constant 29 : index
    %c0_134 = arith.constant 0 : index
    %371 = vector.load %arg3[%c29, %c0_134] : memref<32x512xf32, #tpu.memory_space<vmem>>, vector<1x64xf32>
    %372 = vector.broadcast %371 : vector<1x64xf32> to vector<16x64xf32>
    %373 = arith.addf %370, %372 : vector<16x64xf32>
    %374 = arith.addf %266, %373 : vector<16x64xf32>
    %c27 = arith.constant 27 : index
    %c0_135 = arith.constant 0 : index
    %375 = vector.load %arg3[%c27, %c0_135] : memref<32x512xf32, #tpu.memory_space<vmem>>, vector<1x64xf32>
    %c28 = arith.constant 28 : index
    %c0_136 = arith.constant 0 : index
    %376 = vector.load %arg3[%c28, %c0_136] : memref<32x512xf32, #tpu.memory_space<vmem>>, vector<1x64xf32>
    %cst_137 = arith.constant dense<0.000000e+00> : vector<16xf32>
    %377 = vector.multi_reduction <add>, %374, %cst_137 [1] : vector<16x64xf32> to vector<16xf32>
    %378 = vector.shape_cast %377 : vector<16xf32> to vector<16x1xf32>
    %cst_138 = arith.constant 6.400000e+01 : f32
    %379 = vector.broadcast %cst_138 : f32 to vector<16x1xf32>
    %380 = arith.divf %378, %379 : vector<16x1xf32>
    %381 = vector.broadcast %380 : vector<16x1xf32> to vector<16x64xf32>
    %382 = arith.subf %374, %381 : vector<16x64xf32>
    %383 = arith.mulf %382, %382 : vector<16x64xf32>
    %cst_139 = arith.constant dense<0.000000e+00> : vector<16xf32>
    %384 = vector.multi_reduction <add>, %383, %cst_139 [1] : vector<16x64xf32> to vector<16xf32>
    %385 = vector.shape_cast %384 : vector<16xf32> to vector<16x1xf32>
    %cst_140 = arith.constant 6.400000e+01 : f32
    %386 = vector.broadcast %cst_140 : f32 to vector<16x1xf32>
    %387 = arith.divf %385, %386 : vector<16x1xf32>
    %388 = vector.broadcast %380 : vector<16x1xf32> to vector<16x64xf32>
    %389 = arith.subf %374, %388 : vector<16x64xf32>
    %cst_141 = arith.constant 9.99999974E-6 : f32
    %390 = vector.broadcast %cst_141 : f32 to vector<16x1xf32>
    %391 = arith.addf %387, %390 : vector<16x1xf32>
    %392 = math.rsqrt %391 : vector<16x1xf32>
    %393 = vector.broadcast %392 : vector<16x1xf32> to vector<16x64xf32>
    %394 = arith.mulf %389, %393 : vector<16x64xf32>
    %395 = vector.broadcast %375 : vector<1x64xf32> to vector<16x64xf32>
    %396 = arith.mulf %394, %395 : vector<16x64xf32>
    %397 = vector.broadcast %376 : vector<1x64xf32> to vector<16x64xf32>
    %398 = arith.addf %396, %397 : vector<16x64xf32>
    %c1_142 = arith.constant 1 : index
    %c0_143 = arith.constant 0 : index
    %c0_144 = arith.constant 0 : index
    %399 = vector.load %arg10[%c1_142, %c0_143, %c0_144] : memref<2x64x256xf32, #tpu.memory_space<vmem>>, vector<1x64x256xf32>
    %400 = vector.shape_cast %399 : vector<1x64x256xf32> to vector<64x256xf32>
    %cst_145 = arith.constant dense<0.000000e+00> : vector<16x256xf32>
    %401 = tpu.matmul %398, %400, %cst_145 {dimension_numbers = #tpu.dot_dimension_numbers<[1], [0], [0], [1], [0, 0, 1, 1], [], []>} : vector<16x64xf32>, vector<64x256xf32>, vector<16x256xf32> -> vector<16x256xf32>
    %c30 = arith.constant 30 : index
    %c0_146 = arith.constant 0 : index
    %402 = vector.load %arg3[%c30, %c0_146] : memref<32x512xf32, #tpu.memory_space<vmem>>, vector<1x256xf32>
    %403 = vector.broadcast %402 : vector<1x256xf32> to vector<16x256xf32>
    %404 = arith.addf %401, %403 : vector<16x256xf32>
    %cst_147 = arith.constant 5.000000e-01 : f32
    %405 = vector.broadcast %cst_147 : f32 to vector<16x256xf32>
    %406 = arith.mulf %405, %404 : vector<16x256xf32>
    %cst_148 = arith.constant 4.471500e-02 : f32
    %407 = vector.broadcast %cst_148 : f32 to vector<16x256xf32>
    %408 = arith.mulf %407, %404 : vector<16x256xf32>
    %409 = arith.mulf %408, %404 : vector<16x256xf32>
    %410 = arith.mulf %409, %404 : vector<16x256xf32>
    %411 = arith.addf %404, %410 : vector<16x256xf32>
    %cst_149 = arith.constant 0.797884583 : f32
    %412 = vector.broadcast %cst_149 : f32 to vector<16x256xf32>
    %413 = arith.mulf %412, %411 : vector<16x256xf32>
    %414 = math.tanh %413 : vector<16x256xf32>
    %cst_150 = arith.constant 1.000000e+00 : f32
    %415 = vector.broadcast %cst_150 : f32 to vector<16x256xf32>
    %416 = arith.addf %415, %414 : vector<16x256xf32>
    %417 = arith.mulf %406, %416 : vector<16x256xf32>
    %c1_151 = arith.constant 1 : index
    %c0_152 = arith.constant 0 : index
    %c0_153 = arith.constant 0 : index
    %418 = vector.load %arg11[%c1_151, %c0_152, %c0_153] : memref<2x256x64xf32, #tpu.memory_space<vmem>>, vector<1x256x64xf32>
    %419 = vector.shape_cast %418 : vector<1x256x64xf32> to vector<256x64xf32>
    %cst_154 = arith.constant dense<0.000000e+00> : vector<16x64xf32>
    %420 = tpu.matmul %417, %419, %cst_154 {dimension_numbers = #tpu.dot_dimension_numbers<[1], [0], [0], [1], [0, 0, 1, 1], [], []>} : vector<16x256xf32>, vector<256x64xf32>, vector<16x64xf32> -> vector<16x64xf32>
    %421 = arith.addf %374, %420 : vector<16x64xf32>
    %c31 = arith.constant 31 : index
    %c0_155 = arith.constant 0 : index
    %422 = vector.load %arg3[%c31, %c0_155] : memref<32x512xf32, #tpu.memory_space<vmem>>, vector<1x64xf32>
    %423 = vector.broadcast %422 : vector<1x64xf32> to vector<16x64xf32>
    %424 = arith.addf %421, %423 : vector<16x64xf32>
    %c14 = arith.constant 14 : index
    %c0_156 = arith.constant 0 : index
    %425 = vector.load %arg3[%c14, %c0_156] : memref<32x512xf32, #tpu.memory_space<vmem>>, vector<1x64xf32>
    %c15 = arith.constant 15 : index
    %c0_157 = arith.constant 0 : index
    %426 = vector.load %arg3[%c15, %c0_157] : memref<32x512xf32, #tpu.memory_space<vmem>>, vector<1x64xf32>
    %cst_158 = arith.constant dense<0.000000e+00> : vector<16xf32>
    %427 = vector.multi_reduction <add>, %424, %cst_158 [1] : vector<16x64xf32> to vector<16xf32>
    %428 = vector.shape_cast %427 : vector<16xf32> to vector<16x1xf32>
    %cst_159 = arith.constant 6.400000e+01 : f32
    %429 = vector.broadcast %cst_159 : f32 to vector<16x1xf32>
    %430 = arith.divf %428, %429 : vector<16x1xf32>
    %431 = vector.broadcast %430 : vector<16x1xf32> to vector<16x64xf32>
    %432 = arith.subf %424, %431 : vector<16x64xf32>
    %433 = arith.mulf %432, %432 : vector<16x64xf32>
    %cst_160 = arith.constant dense<0.000000e+00> : vector<16xf32>
    %434 = vector.multi_reduction <add>, %433, %cst_160 [1] : vector<16x64xf32> to vector<16xf32>
    %435 = vector.shape_cast %434 : vector<16xf32> to vector<16x1xf32>
    %cst_161 = arith.constant 6.400000e+01 : f32
    %436 = vector.broadcast %cst_161 : f32 to vector<16x1xf32>
    %437 = arith.divf %435, %436 : vector<16x1xf32>
    %438 = vector.broadcast %430 : vector<16x1xf32> to vector<16x64xf32>
    %439 = arith.subf %424, %438 : vector<16x64xf32>
    %cst_162 = arith.constant 9.99999974E-6 : f32
    %440 = vector.broadcast %cst_162 : f32 to vector<16x1xf32>
    %441 = arith.addf %437, %440 : vector<16x1xf32>
    %442 = math.rsqrt %441 : vector<16x1xf32>
    %443 = vector.broadcast %442 : vector<16x1xf32> to vector<16x64xf32>
    %444 = arith.mulf %439, %443 : vector<16x64xf32>
    %445 = vector.broadcast %425 : vector<1x64xf32> to vector<16x64xf32>
    %446 = arith.mulf %444, %445 : vector<16x64xf32>
    %447 = vector.broadcast %426 : vector<1x64xf32> to vector<16x64xf32>
    %448 = arith.addf %446, %447 : vector<16x64xf32>
    %449 = vector.extract_strided_slice %448 {offsets = [8, 0], sizes = [1, 64], strides = [1, 1]} : vector<16x64xf32> to vector<1x64xf32>
    %450 = vector.extract_strided_slice %448 {offsets = [0, 0], sizes = [8, 64], strides = [1, 1]} : vector<16x64xf32> to vector<8x64xf32>
    %cst_163 = arith.constant dense<0xFF800000> : vector<64xf32>
    %451 = vector.multi_reduction <maximumf>, %450, %cst_163 [0] : vector<8x64xf32> to vector<64xf32>
    %452 = vector.shape_cast %451 : vector<64xf32> to vector<1x64xf32>
    %c0_164 = arith.constant 0 : index
    %c0_165 = arith.constant 0 : index
    %453 = vector.load %arg12[%c0_164, %c0_165] : memref<128x256xf32, #tpu.memory_space<vmem>>, vector<64x256xf32>
    %cst_166 = arith.constant dense<0.000000e+00> : vector<1x256xf32>
    %454 = tpu.matmul %449, %453, %cst_166 {dimension_numbers = #tpu.dot_dimension_numbers<[1], [0], [0], [1], [0, 0, 1, 1], [], []>} : vector<1x64xf32>, vector<64x256xf32>, vector<1x256xf32> -> vector<1x256xf32>
    %c64 = arith.constant 64 : index
    %c0_167 = arith.constant 0 : index
    %455 = vector.load %arg12[%c64, %c0_167] : memref<128x256xf32, #tpu.memory_space<vmem>>, vector<64x256xf32>
    %cst_168 = arith.constant dense<0.000000e+00> : vector<1x256xf32>
    %456 = tpu.matmul %452, %455, %cst_168 {dimension_numbers = #tpu.dot_dimension_numbers<[1], [0], [0], [1], [0, 0, 1, 1], [], []>} : vector<1x64xf32>, vector<64x256xf32>, vector<1x256xf32> -> vector<1x256xf32>
    %457 = arith.addf %454, %456 : vector<1x256xf32>
    %c16 = arith.constant 16 : index
    %c0_169 = arith.constant 0 : index
    %458 = vector.load %arg3[%c16, %c0_169] : memref<32x512xf32, #tpu.memory_space<vmem>>, vector<1x256xf32>
    %459 = arith.addf %457, %458 : vector<1x256xf32>
    %cst_170 = arith.constant 0.000000e+00 : f32
    %460 = vector.broadcast %cst_170 : f32 to vector<1x256xf32>
    %461 = arith.maximumf %459, %460 : vector<1x256xf32>
    %c0_171 = arith.constant 0 : index
    %c0_172 = arith.constant 0 : index
    %462 = vector.load %arg13[%c0_171, %c0_172] : memref<256x128xf32, #tpu.memory_space<vmem>>, vector<256x128xf32>
    %cst_173 = arith.constant dense<0.000000e+00> : vector<1x128xf32>
    %463 = tpu.matmul %461, %462, %cst_173 {dimension_numbers = #tpu.dot_dimension_numbers<[1], [0], [0], [1], [0, 0, 1, 1], [], []>} : vector<1x256xf32>, vector<256x128xf32>, vector<1x128xf32> -> vector<1x128xf32>
    %c17 = arith.constant 17 : index
    %c0_174 = arith.constant 0 : index
    %464 = vector.load %arg3[%c17, %c0_174] : memref<32x512xf32, #tpu.memory_space<vmem>>, vector<1x128xf32>
    %465 = arith.addf %463, %464 : vector<1x128xf32>
    %c0_175 = arith.constant 0 : index
    %c0_176 = arith.constant 0 : index
    %c0_177 = arith.constant 0 : index
    %466 = vector.load %arg14[%c0_175, %c0_176, %c0_177] : memref<1x1x128xf32, #tpu.memory_space<vmem>>, vector<1x1x128xf32>
    %467 = vector.shape_cast %466 : vector<1x1x128xf32> to vector<1x128xf32>
    %468 = vector.shape_cast %465 : vector<1x128xf32> to vector<1x1x128xf32>
    tpu.vector_store %arg14[%c0_175, %c0_176, %c0_177], %468 {strides = array<i32>} : memref<1x1x128xf32, #tpu.memory_space<vmem>>, vector<1x1x128xf32>,
    return
  }
  func.func @transform_0(%arg0: i32) -> (i32, i32, i32) {
    %c0_i32 = arith.constant 0 : i32
    %c0_i32_0 = arith.constant 0 : i32
    %c0_i32_1 = arith.constant 0 : i32
    return %arg0, %c0_i32, %c0_i32_0 : i32, i32, i32
  }
  func.func @transform_1(%arg0: i32) -> (i32, i32, i32) {
    %c0_i32 = arith.constant 0 : i32
    %c0_i32_0 = arith.constant 0 : i32
    %c0_i32_1 = arith.constant 0 : i32
    return %arg0, %c0_i32, %c0_i32_0 : i32, i32, i32
  }
  func.func @transform_2(%arg0: i32) -> (i32, i32) {
    %c0_i32 = arith.constant 0 : i32
    %c0_i32_0 = arith.constant 0 : i32
    %c0_i32_1 = arith.constant 0 : i32
    return %c0_i32, %c0_i32_0 : i32, i32
  }
  func.func @transform_3(%arg0: i32) -> (i32, i32) {
    %c0_i32 = arith.constant 0 : i32
    %c0_i32_0 = arith.constant 0 : i32
    %c0_i32_1 = arith.constant 0 : i32
    return %c0_i32, %c0_i32_0 : i32, i32
  }
  func.func @transform_4(%arg0: i32) -> (i32, i32) {
    %c0_i32 = arith.constant 0 : i32
    %c0_i32_0 = arith.constant 0 : i32
    %c0_i32_1 = arith.constant 0 : i32
    return %c0_i32, %c0_i32_0 : i32, i32
  }
  func.func @transform_5(%arg0: i32) -> (i32, i32) {
    %c0_i32 = arith.constant 0 : i32
    %c0_i32_0 = arith.constant 0 : i32
    %c0_i32_1 = arith.constant 0 : i32
    return %c0_i32, %c0_i32_0 : i32, i32
  }
  func.func @transform_6(%arg0: i32) -> (i32, i32) {
    %c0_i32 = arith.constant 0 : i32
    %c0_i32_0 = arith.constant 0 : i32
    %c0_i32_1 = arith.constant 0 : i32
    return %c0_i32, %c0_i32_0 : i32, i32
  }
  func.func @transform_7(%arg0: i32) -> (i32, i32, i32) {
    %c0_i32 = arith.constant 0 : i32
    %c0_i32_0 = arith.constant 0 : i32
    %c0_i32_1 = arith.constant 0 : i32
    %c0_i32_2 = arith.constant 0 : i32
    return %c0_i32, %c0_i32_0, %c0_i32_1 : i32, i32, i32
  }
  func.func @transform_8(%arg0: i32) -> (i32, i32, i32) {
    %c0_i32 = arith.constant 0 : i32
    %c0_i32_0 = arith.constant 0 : i32
    %c0_i32_1 = arith.constant 0 : i32
    %c0_i32_2 = arith.constant 0 : i32
    return %c0_i32, %c0_i32_0, %c0_i32_1 : i32, i32, i32
  }
  func.func @transform_9(%arg0: i32) -> (i32, i32, i32) {
    %c0_i32 = arith.constant 0 : i32
    %c0_i32_0 = arith.constant 0 : i32
    %c0_i32_1 = arith.constant 0 : i32
    %c0_i32_2 = arith.constant 0 : i32
    return %c0_i32, %c0_i32_0, %c0_i32_1 : i32, i32, i32
  }
  func.func @transform_10(%arg0: i32) -> (i32, i32, i32) {
    %c0_i32 = arith.constant 0 : i32
    %c0_i32_0 = arith.constant 0 : i32
    %c0_i32_1 = arith.constant 0 : i32
    %c0_i32_2 = arith.constant 0 : i32
    return %c0_i32, %c0_i32_0, %c0_i32_1 : i32, i32, i32
  }
  func.func @transform_11(%arg0: i32) -> (i32, i32) {
    %c0_i32 = arith.constant 0 : i32
    %c0_i32_0 = arith.constant 0 : i32
    %c0_i32_1 = arith.constant 0 : i32
    return %c0_i32, %c0_i32_0 : i32, i32
  }
  func.func @transform_12(%arg0: i32) -> (i32, i32) {
    %c0_i32 = arith.constant 0 : i32
    %c0_i32_0 = arith.constant 0 : i32
    %c0_i32_1 = arith.constant 0 : i32
    return %c0_i32, %c0_i32_0 : i32, i32
  }
  func.func @transform_13(%arg0: i32) -> (i32, i32, i32) {
    %c0_i32 = arith.constant 0 : i32
    %c0_i32_0 = arith.constant 0 : i32
    %c0_i32_1 = arith.constant 0 : i32
    return %arg0, %c0_i32, %c0_i32_0 : i32, i32, i32
  }
}

</mosaic_0001>

<bundles_post_ra>
// kernel: custom-call.6
= control target key start
LH: loop header
LB: loop body
LE: loop exit
PB: predicated region body
PF: predicated region fallthrough
CT: control target
= control target key end

     0   :  { %s6_s0 = inlined_call_operand.vmem [shape: f32[2,64], index: 0, kind: output, shape index: {}]  }

// kernel: neg.1
= control target key start
LH: loop header
LB: loop body
LE: loop exit
PB: predicated region body
PF: predicated region fallthrough
CT: control target
= control target key end

     0   :  { %s40_s0 = inlined_call_operand.vmem [shape: f32[2,8,64], index: 0, kind: input, shape index: {}]   ;;  %s41_s1 = inlined_call_operand.vmem [shape: f32[2,8,64], index: 1, kind: output, shape index: {}]  }
   0x1   :  { %v2_v0 = vld [vmem:[%s40_s0] sm:$0xff]  ;;  %v16_v1 = vld [vmem:[%s40_s0 + $0x8] sm:$0xff] }
   0x2   :  { %v5_v2 = vxor.u32 2147483648, %v2_v0  ;;  %v12_v3 = vxor.u32 2147483648, %v16_v1 }
   0x4   :  { %7 = vst [vmem:[%s41_s1] sm:$0xff] %v5_v2  ;;  %17 = vst [vmem:[%s41_s1 + $0x8] sm:$0xff] %v12_v3 }

// kernel: forward.1
= control target key start
LH: loop header
LB: loop body
LE: loop exit
PB: predicated region body
PF: predicated region fallthrough
CT: control target
= control target key end

     0   :  { %s10332_s0 = inlined_call_operand.vmem [shape: f32[2,64,3], index: 0, kind: input, shape index: {}]   ;;  %s10333_s1 = inlined_call_operand.vmem [shape: f32[2,8,3], index: 1, kind: input, shape index: {}]   ;;  %s10334_s2 = inlined_call_operand.vmem [shape: f32[32,512], index: 2, kind: input, shape index: {}]   ;;  %s10335_s3 = inlined_call_operand.vmem [shape: bf16[128,256], index: 3, kind: input, shape index: {}]   ;;  %s10336_s4 = inlined_call_operand.vmem [shape: bf16[512,512], index: 4, kind: input, shape index: {}]   ;;  %s10337_s5 = inlined_call_operand.vmem [shape: bf16[512,64], index: 5, kind: input, shape index: {}]   ;;  %s10338_s6 = inlined_call_operand.vmem [shape: f32[128,64], index: 6, kind: input, shape index: {}]   ;;  %s10339_s7 = inlined_call_operand.vmem [shape: f32[2,64,192], index: 7, kind: input, shape index: {}]   ;;  %s10340_s8 = inlined_call_operand.vmem [shape: f32[2,64,64], index: 8, kind: input, shape index: {}]   ;;  %s10341_s9 = inlined_call_operand.vmem [shape: f32[2,64,256], index: 9, kind: input, shape index: {}]   ;;  %s10342_s10 = inlined_call_operand.vmem [shape: f32[2,256,64], index: 10, kind: input, shape index: {}]   ;;  %s10343_s11 = inlined_call_operand.vmem [shape: f32[128,256], index: 11, kind: input, shape index: {}]   ;;  %s10344_s12 = inlined_call_operand.vmem [shape: f32[256,128], index: 12, kind: input, shape index: {}]   ;;  %s10345_s13 = inlined_call_operand.hbm [shape: f32[2,1,128], index: 13, kind: output, shape index: {}]  }
   0x1   :  { %10356 = sst [smem:[#allocation7_spill]] %s10332_s0 }
   0x2   :  { %10357 = sst [smem:[#allocation8_spill]] %s10333_s1 }
   0x3   :  { %18 = vsyncpa [#allocation3], 0 }
   0x4   :  { %20 = vsyncpa [#allocation3 + $0x1], 0  ;;  %s8287_s25 = smov 0   ;;  %s8289_s26 = smov 0  }
   0x5   :  { %s8291_s27 = smov 0   ;;  %s8293_s28 = smov 0  }
   0x6 LB: > { %10358 = sst [smem:[#allocation5_spill]] %s8195_s27  ;;  %s8308_s29 = sadd.s32 4294967295, %s8199_s28   ;;  %s8199_s28 = sphi %s8293_s28, %s10376_s28   ;;  %s8195_s27 = sphi %s8291_s27, %s10373_s27   ;;  %s8191_s26 = sphi %s8289_s26, %s10375_s26   ;;  %s8187_s25 = sphi %s8287_s25, %s10374_s25  }
   0x7   : > { %s6457_s30 = sadd.s32 4294967294, %s8199_s28   ;;  %s8312_s14 = sadd.s32 1, %s8199_s28  }
   0x8   : > { %s316_s15 = sadd.s32 1, %s8195_s27  ;;  %s313_s16 = ssub.s32 %s8199_s28, %s8312_s14 }
   0x9   : > { %p326_p0 = scmp.ne.s32.totalorder %s8195_s27, %s8191_s26  ;;  %p314_p1 = scmp.eq.s32.totalorder %s313_s16, 0 }
   0xa   : > { %p327_p2 = scmp.eq.s32.totalorder %s8308_s29, 1  ;;  %p332_p3 = scmp.ne.s32.totalorder %s8191_s26, %s8187_s25 }
   0xb   : > { %p333_p4 = scmp.eq.s32.totalorder %s6457_s30, 1  ;;  %p6460_p7 = scmp.ge.s32.totalorder %s8199_s28, 1 }
   0xc   : > { %s8323_s17 = scalar_select %p314_p1, %s8195_s27, %s316_s15  }
   0xd   : > { %p8325_p5 = por %p327_p2, %p326_p0  ;;  %p8329_p6 = por %p333_p4, %p332_p3 }
   0xe   : > { %10359 = sst [smem:[#allocation6_spill]] %s8323_s17  ;;  %p399_p8 = scmp.lt.s32.totalorder %s8199_s28, 3 }
  0x10   : > { %p400_p9 = pnand %p6460_p7, %p399_p8 }
  0x11   : > { %p446_p10 = scmp.lt.s32.totalorder (!%p400_p9), %s8308_s29, 1  ;;  %v8201_v0 = vmov (!%p400_p9), 1   ;;  %v8202_v1 = vmov (!%p400_p9), 0   ;;  %v7787_v2 = vld [vmem:[%s10335_s3 + $0x4] ss:$8 sps:$4 sm:$0xff] (!%p400_p9)   ;;  %s10362_s0 = sld [smem:[#allocation7_spill]] (!%p400_p9) }
  0x12   : > { %403 = sbr.rel (%p400_p9) target bundleno = 8887 (0x22b7), region = 72  ;;  %7699 = vset.pattern.permute.xlu1 (!%p400_p9), %v8201_v0  ;;  %7698 = vset.pattern.permute.xlu0 (!%p400_p9), %v8202_v1  ;;  %v7789_v3 = vld [vmem:[%s10335_s3] ss:$8 sps:$4 sm:$0xff] (!%p400_p9)   ;;  %v7790_v4 = vld [vmem:[%s10335_s3 + $0x14] ss:$8 sps:$4 sm:$0xff] (!%p400_p9)   ;;  %v8203_v14 = vmov (!%p400_p9), 2  }
  0x13   : > { %773 = vmatprep.mubr.bf16.mxu0 (!%p400_p9), %v8202_v1  ;;  %741 = vmatprep.subr.bf16.mxu0 (!%p400_p9), %v7787_v2  ;;  %v7792_v5 = vld [vmem:[%s10335_s3 + $0x10] ss:$8 sps:$4 sm:$0xff] (!%p400_p9)   ;;  %v7793_v6 = vld [vmem:[%s10335_s3 + $0x24] ss:$8 sps:$4 sm:$0xff] (!%p400_p9)   ;;  %v7795_v9 = vld [vmem:[%s10335_s3 + $0x20] ss:$8 sps:$4 sm:$0xff] (!%p400_p9)  }
  0x14   : > { %742 = vmatpush1.bf16.msra.mxu0 (!%p400_p9), %v7789_v3  ;;  %v7796_v10 = vld [vmem:[%s10335_s3 + $0x34] ss:$8 sps:$4 sm:$0xff] (!%p400_p9)   ;;  %v7798_v12 = vld [vmem:[%s10335_s3 + $0x30] ss:$8 sps:$4 sm:$0xff] (!%p400_p9)   ;;  %v7799_v13 = vld [vmem:[%s10335_s3 + $0x44] ss:$8 sps:$4 sm:$0xff] (!%p400_p9)  }
  0x15   : > { %743 = vmatprep.subr.bf16.mxu0 (!%p400_p9), %v7790_v4  ;;  %v7801_v16 = vld [vmem:[%s10335_s3 + $0x40] ss:$8 sps:$4 sm:$0xff] (!%p400_p9)   ;;  %v7802_v17 = vld [vmem:[%s10335_s3 + $0x54] ss:$8 sps:$4 sm:$0xff] (!%p400_p9)   ;;  %v7804_v18 = vld [vmem:[%s10335_s3 + $0x50] ss:$8 sps:$4 sm:$0xff] (!%p400_p9)  }
  0x16   : > { %v7805_v19 = vld [vmem:[%s10335_s3 + $0x64] ss:$8 sps:$4 sm:$0xff] (!%p400_p9)   ;;  %v7807_v20 = vld [vmem:[%s10335_s3 + $0x60] ss:$8 sps:$4 sm:$0xff] (!%p400_p9)   ;;  %v7808_v22 = vld [vmem:[%s10335_s3 + $0x74] ss:$8 sps:$4 sm:$0xff] (!%p400_p9)  }
  0x17   : > { %v7810_v23 = vld [vmem:[%s10335_s3 + $0x70] ss:$8 sps:$4 sm:$0xff] (!%p400_p9)   ;;  %v8422_v31 = vld [vmem:[%s10334_s2 + $0x5] ss:$0 sm:$0xff] (!%p400_p9)  ;;  %v8427_v32 = vld [vmem:[%s10334_s2 + $0x4] ss:$0 sm:$0xff] (!%p400_p9) }
  0x18   : > { %744 = vmatpush1.bf16.msra.mxu0 (!%p400_p9), %v7792_v5  ;;  %v8434_v35 = vld [vmem:[%s10334_s2 + $0x6] ss:$0 sm:$0xff] (!%p400_p9)  ;;  %v8442_v43 = vld [vmem:[%s10334_s2] ss:$0 sm:$0xff] (!%p400_p9)  ;;  %vm1045_vm0 = vcmask (!%p400_p9), 1041409   ;;  %vm1047_vm1 = vcmask (!%p400_p9), 1042434  }
  0x19   : > { %s8345_s24 = scalar_select %p446_p10, %s8308_s29, 1  ;;  %745 = vmatprep.subr.bf16.mxu0 %v7793_v6  ;;  %vm1049_vm2 = vcmask 1043459   ;;  %vm1051_vm3 = vcmask 1044484   ;;  %vm1053_vm4 = vcmask 1045509   ;;  %vm1055_vm5 = vcmask 1046534  }
  0x1a   : > { %s10363_s1 = sld [smem:[#allocation8_spill]]  ;;  %vm1057_vm6 = vcmask 1047559   ;;  %vm2903_vm7 = vcmask 1040384   ;;  %vm2709_vm8 = vcmask 523264   ;;  %vm8206_vm9 = vmmov 0   ;;  %s10353_s15 = smov 112  }
  0x1b   : > { %s6794_s16 = sshll.u32 %s8345_s24, 6  ;;  %s6463_s27 = sshll.u32 %s8345_s24, 3  ;;  %vm3059_vm10 = vcmask 130048  }
  0x1c   : > { %s8358_s22 = scalar_lea.vmem %s10362_s0, %s6794_s16  ;;  %746 = vmatpush1.bf16.msra.mxu0 %v7795_v9  ;;  %vm9369_vm11 = vmpackc.low %vm3059_vm10, %vm3059_vm10  ;;  %s10350_s23 = smov 96  }
  0x1d   : > { %v456_v7 = vld [vmem:[%s8358_s22] sm:$0xff]  ;;  %v457_v8 = vld [vmem:[%s8358_s22 + $0x8] sm:$0xff]  ;;  %v459_v11 = vld [vmem:[%s8358_s22 + $0x18] sm:$0xff]  ;;  %747 = vmatprep.subr.bf16.mxu0 %v7796_v10  ;;  %s10349_s30 = smov 16   ;;  %s10367_s21 = smov 112  }
  0x1e   : > { %515 = vperm.xlu1 %7699, %v456_v7   ;;  %467 = vperm.xlu0 %7698, %v456_v7   ;;  %v458_v15 = vld [vmem:[%s8358_s22 + $0x10] sm:$0xff]  ;;  %v460_v21 = vld [vmem:[%s8358_s22 + $0x20] sm:$0xff]  ;;  %v461_v24 = vld [vmem:[%s8358_s22 + $0x28] sm:$0xff]  ;;  %s10369_s17 = smov 96   ;;  %s10370_s24 = smov 16  }
  0x1f   : > { %v463_v25 = vld [vmem:[%s8358_s22 + $0x38] sm:$0xff]  ;;  %v462_v26 = vld [vmem:[%s8358_s22 + $0x30] sm:$0xff]  ;;  %s10352_s22 = smov 32   ;;  %s10371_s0 = smov 80  }
  0x20   : > { %748 = vmatpush1.bf16.msra.mxu0 %v7798_v12  ;;  %s454_s16 = scalar_lea.vmem %s10363_s1, %s6463_s27  ;;  %s10355_s1 = smov 64  }
  0x21   : > { %749 = vmatprep.subr.bf16.mxu0 %v7799_v13  ;;  %s10347_s27 = smov 80  }
  0x22   : > { %519 = vperm.xlu1 %7699, %v457_v8   ;;  %472 = vperm.xlu0 %7698, %v457_v8  }
  0x24   : > { %750 = vmatpush1.bf16.msra.mxu0 %v7801_v16 }
  0x25   : > { %751 = vmatprep.subr.bf16.mxu0 %v7802_v17 }
  0x26   : > { %7700 = vset.pattern.permute.xlu1 %v8203_v14  ;;  %482 = vperm.xlu0 %7698, %v459_v11  }
  0x27   : > { %568 = vperm.xlu1 %7700, %v457_v8  }
  0x28   : > { %752 = vmatpush1.bf16.msra.mxu0 %v7804_v18 }
  0x29   : > { %753 = vmatprep.subr.bf16.mxu0 %v7805_v19 }
  0x2a   : > { %7702 = vset.pattern.permute.xlu0 %v8203_v14 }
  0x2b   : > { %7701 = vset.pattern.permute.xlu1 %v8202_v1  ;;  %564 = vperm.xlu0 %7702, %v456_v7  }
  0x2c   : > { %477 = vperm.xlu1 %7701, %v458_v15   ;;  %754 = vmatpush1.bf16.msra.mxu0 %v7807_v20 }
  0x2d   : > { %755 = vmatprep.subr.bf16.mxu0 %v7808_v22 }
  0x2f   : > { %572 = vperm.xlu0 %7702, %v458_v15  }
  0x30   : > { %7703 = vset.pattern.permute.xlu1 %v8201_v0  ;;  %756 = vmatpush1.bf16.msra.mxu0 %v7810_v23 }
  0x31   : > { %523 = vperm.xlu1 %7703, %v458_v15  }
  0x33   : > { %580 = vperm.xlu0 %7702, %v460_v21  }
  0x35   : > { %527 = vperm.xlu1 %7703, %v459_v11  }
  0x37   : > { %7707 = vset.pattern.permute.xlu0 %v8202_v1 }
  0x38   : > { %492 = vperm.xlu0 %7707, %v461_v24  }
  0x39   : > { %7704 = vset.pattern.permute.xlu1 %v8203_v14 }
  0x3a   : > { %576 = vperm.xlu1 %7704, %v459_v11  }
  0x3c   : > { %502 = vperm.xlu0 %7707, %v463_v25  }
  0x3e   : > { %7705 = vset.pattern.permute.xlu1 %v8202_v1 }
  0x3f   : > { %487 = vperm.xlu1 %7705, %v460_v21  }
  0x40   : > { %7711 = vset.pattern.permute.xlu0 %v8203_v14 }
  0x41   : > { %588 = vperm.xlu0 %7711, %v462_v26  }
  0x43   : > { %7706 = vset.pattern.permute.xlu1 %v8201_v0 }
  0x44   : > { %531 = vperm.xlu1 %7706, %v460_v21  }
  0x45   : > { %7714 = vset.pattern.permute.xlu0 %v8201_v0 }
  0x48   : > { %535 = vperm.xlu1 %7706, %v461_v24  }
  0x4c   : > { %7708 = vset.pattern.permute.xlu1 %v8203_v14 }
  0x4d   : > { %584 = vperm.xlu1 %7708, %v461_v24  }
  0x51   : > { %7709 = vset.pattern.permute.xlu1 %v8202_v1 }
  0x52   : > { %497 = vperm.xlu1 %7709, %v462_v26  }
  0x56   : > { %7710 = vset.pattern.permute.xlu1 %v8201_v0 }
  0x57   : > { %539 = vperm.xlu1 %7710, %v462_v26  }
  0x5b   : > { %543 = vperm.xlu1 %7710, %v463_v25  }
  0x5f   : > { %7712 = vset.pattern.permute.xlu1 %v8203_v14 }
  0x60   : > { %592 = vperm.xlu1 %7712, %v463_v25  }
  0x64   : > { %7713 = vset.pattern.permute.xlu1 %v8202_v1 }
  0x9d   : > { %v516_v27 = vpop.permute.xlu1 %515  ;;  %v468_v28 = vpop.permute.xlu0 %467 }
  0x9e   : > { %v546_v38 = vmul.f32 %v516_v27, %v8422_v31  ;;  %v505_v39 = vmul.f32 %v468_v28, %v8427_v32 }
  0xa0   : > { %v554_v45 = vadd.f32 %v546_v38, %v505_v39 }
  0xa1   : > { %v520_v29 = vpop.permute.xlu1 %519  ;;  %v473_v30 = vpop.permute.xlu0 %472 }
  0xa2   : > { %v547_v33 = vmul.f32 %v520_v29, %v8422_v31  ;;  %v506_v34 = vmul.f32 %v473_v30, %v8427_v32 }
  0xa4   : > { %v555_v40 = vadd.f32 %v547_v33, %v506_v34 }
  0xa5   : > { %v483_v36 = vpop.permute.xlu0 %482 }
  0xa6   : > { %v569_v37 = vpop.permute.xlu1 %568  ;;  %v508_v61 = vmul.f32 %v483_v36, %v8427_v32 }
  0xa7   : > { %v596_v41 = vmul.f32 %v569_v37, %v8434_v35 }
  0xa9   : > { %v604_v42 = vadd.f32 %v596_v41, %v555_v40 }
  0xaa   : > { %v565_v44 = vpop.permute.xlu0 %564 }
  0xab   : > { %v595_v46 = vmul.f32 %v565_v44, %v8434_v35  ;;  %v478_v47 = vpop.permute.xlu1 %477  ;;  %v613_v48 = vadd.f32 %v8442_v43, %v604_v42 }
  0xac   : > { %v507_v56 = vmul.f32 %v478_v47, %v8427_v32 }
  0xad   : > { %v603_v49 = vadd.f32 %v595_v46, %v554_v45  ;;  %v621_v52 = vmax.f32 %v613_v48, 0.0 }
  0xae   : > { %v573_v54 = vpop.permute.xlu0 %572 }
  0xaf   : > { %v612_v50 = vadd.f32 %v8442_v43, %v603_v49  ;;  %v597_v59 = vmul.f32 %v573_v54, %v8434_v35 }
  0xb0   : > { %v524_v51 = vpop.permute.xlu1 %523 }
  0xb1   : > { %v548_v53 = vmul.f32 %v524_v51, %v8422_v31  ;;  %v620_v55 = vmax.f32 %v612_v50, 0.0 }
  0xb2   : > { %v581_v9 = vpop.permute.xlu0 %580 }
  0xb3   : > { %v628_v57 = vpack.c.bf16 %v621_v52, %v620_v55  ;;  %v556_v58 = vadd.f32 %v548_v53, %v507_v56  ;;  %v599_v18 = vmul.f32 %v581_v9, %v8434_v35  ;;  %v7817_v56 = vld [vmem:[%s10336_s4 + $0x24] ss:$16 sps:$4 sm:$0xff]  }
  0xb4   : > { %v528_v60 = vpop.permute.xlu1 %527  ;;  %v7841_v9 = vld [vmem:[%s10336_s4 + $0xa4] ss:$16 sps:$4 sm:$0xff]  }
  0xb5   : > { %774 = vmatmul.mubr.bf16.vlgmr.msra.gmra.mrb[0].mxu0 %v628_v57  ;;  %v549_v62 = vmul.f32 %v528_v60, %v8422_v31  ;;  %v605_v63 = vadd.f32 %v597_v59, %v556_v58  ;;  %v7821_v57 = vld [vmem:[%s10336_s4 + $0x2c] ss:$16 sps:$4 sm:$0xff]   ;;  %v7819_v58 = vld [vmem:[%s10336_s4 + $0x28] ss:$16 sps:$4 sm:$0xff]   ;;  %v7822_v59 = vld [vmem:[%s10336_s4 + $0x20] ss:$16 sps:$4 sm:$0xff]  }
  0xb6   : > { %783 = vmatprep.mubr.bf16.mxu0 %v8202_v1  ;;  %v7823_v60 = vld [vmem:[%s10336_s4 + $0x44] ss:$16 sps:$4 sm:$0xff]  }
  0xb7   : > { %v557_v2 = vadd.f32 %v549_v62, %v508_v61  ;;  %v614_v4 = vadd.f32 %v8442_v43, %v605_v63  ;;  %v493_v16 = vpop.permute.xlu0 %492  ;;  %v7827_v61 = vld [vmem:[%s10336_s4 + $0x4c] ss:$16 sps:$4 sm:$0xff]   ;;  %v7825_v62 = vld [vmem:[%s10336_s4 + $0x48] ss:$16 sps:$4 sm:$0xff]   ;;  %v7828_v63 = vld [vmem:[%s10336_s4 + $0x40] ss:$16 sps:$4 sm:$0xff]  }
  0xb8   : > { %v510_v21 = vmul.f32 %v493_v16, %v8427_v32  ;;  %v7849_v16 = vld [vmem:[%s10336_s4 + $0xc8] ss:$16 sps:$4 sm:$0xff]  }
  0xb9   : > { %v577_v0 = vpop.permute.xlu1 %576  ;;  %v622_v10 = vmax.f32 %v614_v4, 0.0  ;;  %v7834_v4 = vld [vmem:[%s10336_s4 + $0x60] ss:$16 sps:$4 sm:$0xff]  }
  0xba   : > { %v598_v3 = vmul.f32 %v577_v0, %v8434_v35  ;;  %v7829_v0 = vld [vmem:[%s10336_s4 + $0x64] ss:$16 sps:$4 sm:$0xff]  }
  0xbb   : > { %v503_v30 = vpop.permute.xlu0 %502 }
  0xbc   : > { %v606_v5 = vadd.f32 %v598_v3, %v557_v2  ;;  %v512_v46 = vmul.f32 %v503_v30, %v8427_v32  ;;  %v7833_v2 = vld [vmem:[%s10336_s4 + $0x6c] ss:$16 sps:$4 sm:$0xff]   ;;  %v7831_v3 = vld [vmem:[%s10336_s4 + $0x68] ss:$16 sps:$4 sm:$0xff]   ;;  %v7871_v30 = vld [vmem:[%s10336_s4 + $0x144] ss:$16 sps:$4 sm:$0xff]  }
  0xbe   : > { %v615_v6 = vadd.f32 %v8442_v43, %v606_v5  ;;  %v488_v7 = vpop.permute.xlu1 %487  ;;  %v7835_v5 = vld [vmem:[%s10336_s4 + $0x84] ss:$16 sps:$4 sm:$0xff]  }
  0xbf   : > { %v509_v15 = vmul.f32 %v488_v7, %v8427_v32  ;;  %v7837_v7 = vld [vmem:[%s10336_s4 + $0x88] ss:$16 sps:$4 sm:$0xff]  }
  0xc0   : > { %v623_v8 = vmax.f32 %v615_v6, 0.0  ;;  %v589_v39 = vpop.permute.xlu0 %588  ;;  %v7839_v6 = vld [vmem:[%s10336_s4 + $0x8c] ss:$16 sps:$4 sm:$0xff]  }
  0xc1   : > { %v601_v42 = vmul.f32 %v589_v39, %v8434_v35  ;;  %v7879_v39 = vld [vmem:[%s10336_s4 + $0x168] ss:$16 sps:$4 sm:$0xff]  }
  0xc2   : > { %v629_v11 = vpack.c.bf16 %v623_v8, %v622_v10  ;;  %v7840_v8 = vld [vmem:[%s10336_s4 + $0x80] ss:$16 sps:$4 sm:$0xff]   ;;  %v7845_v10 = vld [vmem:[%s10336_s4 + $0xac] ss:$16 sps:$4 sm:$0xff]  }
  0xc3   : > { %v532_v12 = vpop.permute.xlu1 %531 }
  0xc4   : > { %v550_v13 = vmul.f32 %v532_v12, %v8422_v31  ;;  %784 = vmatmul.mubr.bf16.gmra.mrb[4].mxu0 %v629_v11  ;;  %v7843_v11 = vld [vmem:[%s10336_s4 + $0xa8] ss:$16 sps:$4 sm:$0xff]   ;;  %v7846_v12 = vld [vmem:[%s10336_s4 + $0xa0] ss:$16 sps:$4 sm:$0xff]  }
  0xc5   : > { %793 = vmatprep.mubr.bf16.mxu0 %v8202_v1 }
  0xc6   : > { %v558_v17 = vadd.f32 %v550_v13, %v509_v15  ;;  %v7847_v13 = vld [vmem:[%s10336_s4 + $0xc4] ss:$16 sps:$4 sm:$0xff]   ;;  %v7851_v15 = vld [vmem:[%s10336_s4 + $0xcc] ss:$16 sps:$4 sm:$0xff]  }
  0xc7   : > { %v536_v19 = vpop.permute.xlu1 %535 }
  0xc8   : > { %v551_v20 = vmul.f32 %v536_v19, %v8422_v31  ;;  %v607_v22 = vadd.f32 %v599_v18, %v558_v17  ;;  %v7852_v17 = vld [vmem:[%s10336_s4 + $0xc0] ss:$16 sps:$4 sm:$0xff]   ;;  %v7853_v18 = vld [vmem:[%s10336_s4 + $0xe4] ss:$16 sps:$4 sm:$0xff]   ;;  %v7857_v19 = vld [vmem:[%s10336_s4 + $0xec] ss:$16 sps:$4 sm:$0xff]  }
  0xca   : > { %v559_v24 = vadd.f32 %v551_v20, %v510_v21  ;;  %v616_v26 = vadd.f32 %v8442_v43, %v607_v22  ;;  %v7855_v20 = vld [vmem:[%s10336_s4 + $0xe8] ss:$16 sps:$4 sm:$0xff]   ;;  %v7858_v21 = vld [vmem:[%s10336_s4 + $0xe0] ss:$16 sps:$4 sm:$0xff]   ;;  %v7859_v22 = vld [vmem:[%s10336_s4 + $0x104] ss:$16 sps:$4 sm:$0xff]  }
  0xcc   : > { %v585_v23 = vpop.permute.xlu1 %584  ;;  %v624_v34 = vmax.f32 %v616_v26, 0.0  ;;  %v7865_v26 = vld [vmem:[%s10336_s4 + $0x124] ss:$16 sps:$4 sm:$0xff]  }
  0xcd   : > { %v600_v25 = vmul.f32 %v585_v23, %v8434_v35  ;;  %v7863_v23 = vld [vmem:[%s10336_s4 + $0x10c] ss:$16 sps:$4 sm:$0xff]  }
  0xcf   : > { %v608_v27 = vadd.f32 %v600_v25, %v559_v24  ;;  %v7861_v24 = vld [vmem:[%s10336_s4 + $0x108] ss:$16 sps:$4 sm:$0xff]   ;;  %v7864_v25 = vld [vmem:[%s10336_s4 + $0x100] ss:$16 sps:$4 sm:$0xff]  }
  0xd1   : > { %v617_v28 = vadd.f32 %v8442_v43, %v608_v27  ;;  %v498_v29 = vpop.permute.xlu1 %497  ;;  %v7869_v27 = vld [vmem:[%s10336_s4 + $0x12c] ss:$16 sps:$4 sm:$0xff]  }
  0xd2   : > { %v511_v40 = vmul.f32 %v498_v29, %v8427_v32  ;;  %v7815_v32 = vld [vmem:[%s10336_s4 + $0xc] ss:$16 sps:$4 sm:$0xff]   ;;  %v7870_v29 = vld [vmem:[%s10336_s4 + $0x120] ss:$16 sps:$4 sm:$0xff]  }
  0xd3   : > { %v625_v33 = vmax.f32 %v617_v28, 0.0  ;;  %1431 = vmatprep.subr.bf16.mxu0 %v7815_v32  ;;  %v7867_v28 = vld [vmem:[%s10336_s4 + $0x128] ss:$16 sps:$4 sm:$0xff]   ;;  %v7909_v32 = vld [vmem:[%s10336_s4 + $0x204] ss:$16 sps:$4 sm:$0xff]  }
  0xd5   : > { %v630_v36 = vpack.c.bf16 %v625_v33, %v624_v34  ;;  %v7875_v33 = vld [vmem:[%s10336_s4 + $0x14c] ss:$16 sps:$4 sm:$0xff]   ;;  %v7873_v34 = vld [vmem:[%s10336_s4 + $0x148] ss:$16 sps:$4 sm:$0xff]  }
  0xd6   : > { %v540_v37 = vpop.permute.xlu1 %539 }
  0xd7   : > { %v552_v38 = vmul.f32 %v540_v37, %v8422_v31  ;;  %794 = vmatmul.mubr.bf16.gmra.mrb[8].mxu0 %v630_v36  ;;  %v7876_v36 = vld [vmem:[%s10336_s4 + $0x140] ss:$16 sps:$4 sm:$0xff]   ;;  %v7877_v37 = vld [vmem:[%s10336_s4 + $0x164] ss:$16 sps:$4 sm:$0xff]  }
  0xd8   : > { %803 = vmatprep.mubr.bf16.mxu0 %v8202_v1 }
  0xd9   : > { %v560_v41 = vadd.f32 %v552_v38, %v511_v40  ;;  %v7881_v38 = vld [vmem:[%s10336_s4 + $0x16c] ss:$16 sps:$4 sm:$0xff]   ;;  %v7882_v40 = vld [vmem:[%s10336_s4 + $0x160] ss:$16 sps:$4 sm:$0xff]  }
  0xda   : > { %v544_v44 = vpop.permute.xlu1 %543 }
  0xdb   : > { %v553_v45 = vmul.f32 %v544_v44, %v8422_v31  ;;  %v609_v47 = vadd.f32 %v601_v42, %v560_v41  ;;  %v7811_v31 = vld [vmem:[%s10336_s4 + $0x4] ss:$16 sps:$4 sm:$0xff]   ;;  %v7887_v42 = vld [vmem:[%s10336_s4 + $0x18c] ss:$16 sps:$4 sm:$0xff]   ;;  %v7885_v44 = vld [vmem:[%s10336_s4 + $0x188] ss:$16 sps:$4 sm:$0xff]  }
  0xdc   : > { %1390 = vmatprep.subr.bf16.mxu1 %v7811_v31  ;;  %v7883_v41 = vld [vmem:[%s10336_s4 + $0x184] ss:$16 sps:$4 sm:$0xff]   ;;  %v7906_v31 = vld [vmem:[%s10336_s4 + $0x1e0] ss:$16 sps:$4 sm:$0xff]  }
  0xdd   : > { %v561_v49 = vadd.f32 %v553_v45, %v512_v46  ;;  %v618_v51 = vadd.f32 %v8442_v43, %v609_v47  ;;  %v7888_v45 = vld [vmem:[%s10336_s4 + $0x180] ss:$16 sps:$4 sm:$0xff]   ;;  %v7889_v46 = vld [vmem:[%s10336_s4 + $0x1a4] ss:$16 sps:$4 sm:$0xff]   ;;  %v7893_v47 = vld [vmem:[%s10336_s4 + $0x1ac] ss:$16 sps:$4 sm:$0xff]  }
  0xdf   : > { %v593_v48 = vpop.permute.xlu1 %592  ;;  %v626_v1 = vmax.f32 %v618_v51, 0.0  ;;  %v7899_v51 = vld [vmem:[%s10336_s4 + $0x1cc] ss:$16 sps:$4 sm:$0xff]  }
  0xe0   : > { %v602_v50 = vmul.f32 %v593_v48, %v8434_v35  ;;  %v7813_v35 = vld [vmem:[%s10336_s4 + $0x8] ss:$16 sps:$4 sm:$0xff]  }
  0xe1   : > { %1432 = vmatpush1.bf16.msra.mxu0 %v7813_v35  ;;  %v7891_v48 = vld [vmem:[%s10336_s4 + $0x1a8] ss:$16 sps:$4 sm:$0xff]   ;;  %v7912_v35 = vld [vmem:[%s10336_s4 + $0x20c] ss:$16 sps:$4 sm:$0xff]  }
  0xe2   : > { %v610_v52 = vadd.f32 %v602_v50, %v561_v49  ;;  %1433 = vmatprep.subr.bf16.mxu0 %v7821_v57  ;;  %v7894_v49 = vld [vmem:[%s10336_s4 + $0x1a0] ss:$16 sps:$4 sm:$0xff]   ;;  %v7895_v50 = vld [vmem:[%s10336_s4 + $0x1c4] ss:$16 sps:$4 sm:$0xff]  }
  0xe4   : > { %v619_v53 = vadd.f32 %v8442_v43, %v610_v52  ;;  %v7816_v43 = vld [vmem:[%s10336_s4] ss:$16 sps:$4 sm:$0xff]   ;;  %v7897_v52 = vld [vmem:[%s10336_s4 + $0x1c8] ss:$16 sps:$4 sm:$0xff]  }
  0xe5   : > { %1391 = vmatpush1.bf16.msra.mxu1 %v7816_v43  ;;  %1434 = vmatpush1.bf16.msra.mxu0 %v7819_v58  ;;  %v651_v43 = vlaneseq  ;;  %v6464_v58 = vld [vmem:[%s10334_s2 + $0x1] ss:$8 sm:$0x3] }
  0xe6   : > { %v627_v54 = vmax.f32 %v619_v53, 0.0  ;;  %1392 = vmatprep.subr.bf16.mxu1 %v7817_v56  ;;  %1435 = vmatprep.subr.bf16.mxu0 %v7827_v61  ;;  %v7900_v53 = vld [vmem:[%s10336_s4 + $0x1c0] ss:$16 sps:$4 sm:$0xff]  }
  0xe7   : > { %v8673_v56 = vshrl.u32 %v651_v43, 7 }
  0xe8   : > { %v631_v55 = vpack.c.bf16 %v627_v54, %v626_v1  ;;  %v7901_v54 = vld [vmem:[%s10336_s4 + $0x1e4] ss:$16 sps:$4 sm:$0xff]   ;;  %v7905_v1 = vld [vmem:[%s10336_s4 + $0x1ec] ss:$16 sps:$4 sm:$0xff]  }
  0xe9   : > { %1393 = vmatpush1.bf16.msra.mxu1 %v7822_v59  ;;  %1436 = vmatpush1.bf16.msra.mxu0 %v7825_v62  ;;  %v8676_v57 = vsub.s32 0, %v8673_v56  ;;  %v8682_v59 = vsub.s32 1, %v8673_v56 }
  0xea   : > { %804 = vmatmul.mubr.bf16.gmra.mrb[12].mxu0 %v631_v55  ;;  %1394 = vmatprep.subr.bf16.mxu1 %v7823_v60  ;;  %v7903_v55 = vld [vmem:[%s10336_s4 + $0x1e8] ss:$16 sps:$4 sm:$0xff]  }
  0xeb   : > { %1437 = vmatprep.subr.bf16.mxu0 %v7833_v2  ;;  %v8685_v60 = vrot.slane %v6464_v58, %v8676_v57  ;;  %v8688_v61 = vrot.slane %v6464_v58, %v8682_v59 }
  0xed   : > { %1395 = vmatpush1.bf16.msra.mxu1 %v7828_v63  ;;  %1438 = vmatpush1.bf16.msra.mxu0 %v7831_v3 }
  0xee   : > { %1396 = vmatprep.subr.bf16.mxu1 %v7829_v0  ;;  %1439 = vmatprep.subr.bf16.mxu0 %v7839_v6 }
  0xf1   : > { %1397 = vmatpush1.bf16.msra.mxu1 %v7834_v4  ;;  %1440 = vmatpush1.bf16.msra.mxu0 %v7837_v7 }
  0xf2   : > { %1398 = vmatprep.subr.bf16.mxu1 %v7835_v5  ;;  %1441 = vmatprep.subr.bf16.mxu0 %v7845_v10 }
  0xf5   : > { %1399 = vmatpush1.bf16.msra.mxu1 %v7840_v8  ;;  %1442 = vmatpush1.bf16.msra.mxu0 %v7843_v11 }
  0xf6   : > { %1400 = vmatprep.subr.bf16.mxu1 %v7841_v9  ;;  %1443 = vmatprep.subr.bf16.mxu0 %v7851_v15 }
  0xf9   : > { %1401 = vmatpush1.bf16.msra.mxu1 %v7846_v12  ;;  %1444 = vmatpush1.bf16.msra.mxu0 %v7849_v16 }
  0xfa   : > { %1402 = vmatprep.subr.bf16.mxu1 %v7847_v13  ;;  %1445 = vmatprep.subr.bf16.mxu0 %v7857_v19 }
  0xfd   : > { %1403 = vmatpush1.bf16.msra.mxu1 %v7852_v17  ;;  %1446 = vmatpush1.bf16.msra.mxu0 %v7855_v20 }
  0xfe   : > { %1404 = vmatprep.subr.bf16.mxu1 %v7853_v18  ;;  %1447 = vmatprep.subr.bf16.mxu0 %v7863_v23 }
 0x101   : > { %1405 = vmatpush1.bf16.msra.mxu1 %v7858_v21  ;;  %1448 = vmatpush1.bf16.msra.mxu0 %v7861_v24 }
 0x102   : > { %1406 = vmatprep.subr.bf16.mxu1 %v7859_v22  ;;  %1449 = vmatprep.subr.bf16.mxu0 %v7869_v27 }
 0x105   : > { %1407 = vmatpush1.bf16.msra.mxu1 %v7864_v25  ;;  %1450 = vmatpush1.bf16.msra.mxu0 %v7867_v28 }
 0x106   : > { %1408 = vmatprep.subr.bf16.mxu1 %v7865_v26  ;;  %1451 = vmatprep.subr.bf16.mxu0 %v7875_v33 }
 0x109   : > { %1409 = vmatpush1.bf16.msra.mxu1 %v7870_v29  ;;  %1452 = vmatpush1.bf16.msra.mxu0 %v7873_v34 }
 0x10a   : > { %1410 = vmatprep.subr.bf16.mxu1 %v7871_v30  ;;  %1453 = vmatprep.subr.bf16.mxu0 %v7881_v38 }
 0x10d   : > { %1411 = vmatpush1.bf16.msra.mxu1 %v7876_v36  ;;  %1454 = vmatpush1.bf16.msra.mxu0 %v7879_v39 }
 0x10e   : > { %1412 = vmatprep.subr.bf16.mxu1 %v7877_v37  ;;  %1455 = vmatprep.subr.bf16.mxu0 %v7887_v42 }
 0x111   : > { %1413 = vmatpush1.bf16.msra.mxu1 %v7882_v40  ;;  %1456 = vmatpush1.bf16.msra.mxu0 %v7885_v44 }
 0x112   : > { %1414 = vmatprep.subr.bf16.mxu1 %v7883_v41  ;;  %1457 = vmatprep.subr.bf16.mxu0 %v7893_v47 }
 0x115   : > { %1415 = vmatpush1.bf16.msra.mxu1 %v7888_v45  ;;  %1458 = vmatpush1.bf16.msra.mxu0 %v7891_v48 }
 0x116   : > { %1416 = vmatprep.subr.bf16.mxu1 %v7889_v46  ;;  %1459 = vmatprep.subr.bf16.mxu0 %v7899_v51 }
 0x119   : > { %1417 = vmatpush1.bf16.msra.mxu1 %v7894_v49  ;;  %1460 = vmatpush1.bf16.msra.mxu0 %v7897_v52 }
 0x11a   : > { %1418 = vmatprep.subr.bf16.mxu1 %v7895_v50  ;;  %1461 = vmatprep.subr.bf16.mxu0 %v7905_v1 }
 0x11d   : > { %1419 = vmatpush1.bf16.msra.mxu1 %v7900_v53  ;;  %1462 = vmatpush1.bf16.msra.mxu0 %v7903_v55 }
 0x11e   : > { %1420 = vmatprep.subr.bf16.mxu1 %v7901_v54  ;;  %1937 = vmatprep.subr.bf16.mxu0 %v7912_v35 }
 0x121   : > { %1421 = vmatpush1.bf16.msra.mxu1 %v7906_v31 }
 0x122   : > { %1864 = vmatprep.subr.bf16.mxu1 %v7909_v32 }
 0x188   : > { %v775_v62 = vpop.f32.mrb[0].mxu0 }
 0x189   : > { %v776_v63 = vadd.f32 %v775_v62, %v8685_v60  ;;  %v777_v0 = vpop.f32.mrb[1].mxu0 }
 0x18a   : > { %v778_v2 = vadd.f32 %v777_v0, %v8688_v61  ;;  %v779_v3 = vpop.f32.mrb[2].mxu0 }
 0x18b   : > { %v814_v4 = vrot.slane %v776_v63, 4  ;;  %v780_v5 = vadd.f32 %v779_v3, %v8685_v60  ;;  %v781_v6 = vpop.f32.mrb[3].mxu0 }
 0x18c   : > { %v820_v7 = vrot.slane %v778_v2, 4  ;;  %v782_v8 = vadd.f32 %v781_v6, %v8688_v61 }
 0x18d   : > { %v815_v9 = vmax.f32 %v776_v63, %v814_v4  ;;  %v826_v10 = vrot.slane %v780_v5, 4  ;;  %v8694_v11 = vpack.c.bf16 %v780_v5, %v776_v63 }
 0x18e   : > { %v821_v12 = vmax.f32 %v778_v2, %v820_v7  ;;  %v832_v13 = vrot.slane %v782_v8, 4  ;;  %v8696_v15 = vpack.c.bf16 %v782_v8, %v778_v2 }
 0x18f   : > { %v816_v16 = vrot.slane %v815_v9, 2  ;;  %v827_v17 = vmax.f32 %v780_v5, %v826_v10 }
 0x190   : > { %v822_v18 = vrot.slane %v821_v12, 2  ;;  %v833_v19 = vmax.f32 %v782_v8, %v832_v13 }
 0x191   : > { %v817_v20 = vmax.f32 %v815_v9, %v816_v16  ;;  %v828_v21 = vrot.slane %v827_v17, 2 }
 0x192   : > { %v823_v22 = vmax.f32 %v821_v12, %v822_v18  ;;  %v834_v23 = vrot.slane %v833_v19, 2 }
 0x193   : > { %v818_v24 = vrot.slane %v817_v20, 1  ;;  %v829_v25 = vmax.f32 %v827_v17, %v828_v21 }
 0x194   : > { %v824_v26 = vrot.slane %v823_v22, 1  ;;  %v835_v27 = vmax.f32 %v833_v19, %v834_v23 }
 0x195   : > { %v819_v28 = vmax.f32 %v817_v20, %v818_v24  ;;  %v830_v29 = vrot.slane %v829_v25, 1 }
 0x196   : > { %v825_v30 = vmax.f32 %v823_v22, %v824_v26  ;;  %v836_v33 = vrot.slane %v835_v27, 1 }
 0x197   : > { %v910_v34 = vpack.c.bf16 %v819_v28, %v819_v28  ;;  %v831_v36 = vmax.f32 %v829_v25, %v830_v29  ;;  %v785_v37 = vpop.f32.mrb[4].mxu0 }
 0x198   : > { %v911_v38 = vpack.c.bf16 %v825_v30, %v825_v30  ;;  %v837_v39 = vmax.f32 %v835_v27, %v836_v33  ;;  %v786_v40 = vadd.f32 %v785_v37, %v8685_v60  ;;  %v787_v41 = vpop.f32.mrb[5].mxu0 }
 0x199   : > { %v912_v42 = vpack.c.bf16 %v831_v36, %v831_v36  ;;  %v788_v44 = vadd.f32 %v787_v41, %v8688_v61  ;;  %v789_v45 = vpop.f32.mrb[6].mxu0  ;;  %v1029_v46 = vunpack.c.l.b16 %v910_v34 }
 0x19a   : > { %v913_v47 = vpack.c.bf16 %v837_v39, %v837_v39  ;;  %v838_v48 = vrot.slane %v786_v40, 4  ;;  %v790_v49 = vadd.f32 %v789_v45, %v8685_v60  ;;  %v791_v50 = vpop.f32.mrb[7].mxu0  ;;  %v1030_v51 = vunpack.c.l.b16 %v911_v38 }
 0x19b   : > { %v1031_v52 = vunpack.c.l.b16 %v912_v42  ;;  %v844_v53 = vrot.slane %v788_v44, 4  ;;  %v792_v54 = vadd.f32 %v791_v50, %v8688_v61 }
 0x19c   : > { %v1032_v1 = vunpack.c.l.b16 %v913_v47  ;;  %v839_v55 = vmax.f32 %v786_v40, %v838_v48  ;;  %v850_v31 = vrot.slane %v790_v49, 4  ;;  %v8702_v32 = vpack.c.bf16 %v790_v49, %v786_v40 }
 0x19d   : > { %v1046_v35 = vsel %vm1045_vm0, %v1031_v52, %v1029_v46  ;;  %v845_v58 = vmax.f32 %v788_v44, %v844_v53  ;;  %v856_v62 = vrot.slane %v792_v54, 4  ;;  %v8705_v63 = vpack.c.bf16 %v792_v54, %v788_v44 }
 0x19e   : > { %v1059_v0 = vsel %vm1045_vm0, %v1032_v1, %v1030_v51  ;;  %v840_v2 = vrot.slane %v839_v55, 2  ;;  %v851_v3 = vmax.f32 %v790_v49, %v850_v31  ;;  %v2766_v31 = vld [vmem:[%s454_s16] sm:$0xff]  ;;  %s8211_s16 = smov 48  }
 0x19f   : > { %v846_v4 = vrot.slane %v845_v58, 2  ;;  %v857_v5 = vmax.f32 %v792_v54, %v856_v62  ;;  %2770 = vperm.xlu1 %7713, %v2766_v31   ;;  %2776 = vperm.xlu0 %7714, %v2766_v31  }
 0x1a0   : > { %v841_v6 = vmax.f32 %v839_v55, %v840_v2  ;;  %v852_v7 = vrot.slane %v851_v3, 2 }
 0x1a1   : > { %v847_v8 = vmax.f32 %v845_v58, %v846_v4  ;;  %v858_v9 = vrot.slane %v857_v5, 2 }
 0x1a2   : > { %v842_v10 = vrot.slane %v841_v6, 1  ;;  %v853_v12 = vmax.f32 %v851_v3, %v852_v7 }
 0x1a3   : > { %v848_v13 = vrot.slane %v847_v8, 1  ;;  %v859_v16 = vmax.f32 %v857_v5, %v858_v9  ;;  %7715 = vset.pattern.permute.xlu1 %v8203_v14  ;;  %7786 = vset.pattern.permute.xlu0 %v8203_v14 }
 0x1a4   : > { %v843_v17 = vmax.f32 %v841_v6, %v842_v10  ;;  %v854_v18 = vrot.slane %v853_v12, 1  ;;  %2783 = vperm.xlu1 %7715, %v2766_v31  }
 0x1a5   : > { %v849_v19 = vmax.f32 %v847_v8, %v848_v13  ;;  %v860_v20 = vrot.slane %v859_v16, 1 }
 0x1a6   : > { %v914_v21 = vpack.c.bf16 %v843_v17, %v843_v17  ;;  %v855_v22 = vmax.f32 %v853_v12, %v854_v18 }
 0x1a7   : > { %v915_v23 = vpack.c.bf16 %v849_v19, %v849_v19  ;;  %v861_v24 = vmax.f32 %v859_v16, %v860_v20 }
 0x1a8   : > { %v1033_v25 = vunpack.c.l.b16 %v914_v21  ;;  %v916_v26 = vpack.c.bf16 %v855_v22, %v855_v22 }
 0x1a9   : > { %v1034_v27 = vunpack.c.l.b16 %v915_v23  ;;  %v917_v28 = vpack.c.bf16 %v861_v24, %v861_v24 }
 0x1aa   : > { %v1048_v29 = vsel %vm1047_vm1, %v1033_v25, %v1046_v35  ;;  %v1035_v30 = vunpack.c.l.b16 %v916_v26  ;;  %v795_v33 = vpop.f32.mrb[8].mxu0 }
 0x1ab   : > { %v1036_v34 = vunpack.c.l.b16 %v917_v28  ;;  %v796_v36 = vadd.f32 %v795_v33, %v8685_v60  ;;  %v797_v37 = vpop.f32.mrb[9].mxu0  ;;  %v1060_v38 = vsel %vm1047_vm1, %v1034_v27, %v1059_v0 }
 0x1ac   : > { %v798_v39 = vadd.f32 %v797_v37, %v8688_v61  ;;  %v799_v40 = vpop.f32.mrb[10].mxu0  ;;  %v1050_v41 = vsel %vm1049_vm2, %v1035_v30, %v1048_v29 }
 0x1ad   : > { %v862_v42 = vrot.slane %v796_v36, 4  ;;  %v800_v44 = vadd.f32 %v799_v40, %v8685_v60  ;;  %v801_v45 = vpop.f32.mrb[11].mxu0  ;;  %v1061_v46 = vsel %vm1049_vm2, %v1036_v34, %v1060_v38 }
 0x1ae   : > { %v868_v47 = vrot.slane %v798_v39, 4  ;;  %v802_v48 = vadd.f32 %v801_v45, %v8688_v61 }
 0x1af   : > { %v863_v49 = vmax.f32 %v796_v36, %v862_v42  ;;  %v874_v50 = vrot.slane %v800_v44, 4  ;;  %v8716_v51 = vpack.c.bf16 %v800_v44, %v796_v36 }
 0x1b0   : > { %v869_v52 = vmax.f32 %v798_v39, %v868_v47  ;;  %v880_v53 = vrot.slane %v802_v48, 4  ;;  %v8719_v54 = vpack.c.bf16 %v802_v48, %v798_v39 }
 0x1b1   : > { %v864_v1 = vrot.slane %v863_v49, 2  ;;  %v875_v55 = vmax.f32 %v800_v44, %v874_v50 }
 0x1b2   : > { %v870_v35 = vrot.slane %v869_v52, 2  ;;  %v881_v58 = vmax.f32 %v802_v48, %v880_v53 }
 0x1b3   : > { %v865_v62 = vmax.f32 %v863_v49, %v864_v1  ;;  %v876_v0 = vrot.slane %v875_v55, 2 }
 0x1b4   : > { %v871_v2 = vmax.f32 %v869_v52, %v870_v35  ;;  %v882_v3 = vrot.slane %v881_v58, 2 }
 0x1b5   : > { %v866_v4 = vrot.slane %v865_v62, 1  ;;  %v877_v5 = vmax.f32 %v875_v55, %v876_v0 }
 0x1b6   : > { %v872_v6 = vrot.slane %v871_v2, 1  ;;  %v883_v7 = vmax.f32 %v881_v58, %v882_v3 }
 0x1b7   : > { %v867_v8 = vmax.f32 %v865_v62, %v866_v4  ;;  %v878_v9 = vrot.slane %v877_v5, 1 }
 0x1b8   : > { %v873_v10 = vmax.f32 %v871_v2, %v872_v6  ;;  %v884_v12 = vrot.slane %v883_v7, 1 }
 0x1b9   : > { %v918_v13 = vpack.c.bf16 %v867_v8, %v867_v8  ;;  %v879_v16 = vmax.f32 %v877_v5, %v878_v9 }
 0x1ba   : > { %v919_v17 = vpack.c.bf16 %v873_v10, %v873_v10  ;;  %v885_v18 = vmax.f32 %v883_v7, %v884_v12 }
 0x1bb   : > { %v1037_v19 = vunpack.c.l.b16 %v918_v13  ;;  %v920_v20 = vpack.c.bf16 %v879_v16, %v879_v16 }
 0x1bc   : > { %v1038_v21 = vunpack.c.l.b16 %v919_v17  ;;  %v921_v22 = vpack.c.bf16 %v885_v18, %v885_v18 }
 0x1bd   : > { %v1039_v23 = vunpack.c.l.b16 %v920_v20  ;;  %v805_v24 = vpop.f32.mrb[12].mxu0  ;;  %v1052_v25 = vsel %vm1051_vm3, %v1037_v19, %v1050_v41 }
 0x1be   : > { %v1040_v14 = vunpack.c.l.b16 %v921_v22  ;;  %v806_v26 = vadd.f32 %v805_v24, %v8685_v60  ;;  %v807_v27 = vpop.f32.mrb[13].mxu0  ;;  %v1062_v28 = vsel %vm1051_vm3, %v1038_v21, %v1061_v46  ;;  %v7907_v22 = vld [vmem:[%s10336_s4 + $0x200] ss:$16 sps:$4 sm:$0xff]  }
 0x1bf   : > { %v808_v29 = vadd.f32 %v807_v27, %v8688_v61  ;;  %v809_v30 = vpop.f32.mrb[14].mxu0  ;;  %v1054_v33 = vsel %vm1053_vm4, %v1039_v23, %v1052_v25  ;;  %v7910_v23 = vld [vmem:[%s10336_s4 + $0x208] ss:$16 sps:$4 sm:$0xff]   ;;  %v7915_v25 = vld [vmem:[%s10336_s4 + $0x224] ss:$16 sps:$4 sm:$0xff]  }
 0x1c0   : > { %v886_v34 = vrot.slane %v806_v26, 4  ;;  %v810_v36 = vadd.f32 %v809_v30, %v8685_v60  ;;  %v811_v37 = vpop.f32.mrb[15].mxu0  ;;  %v1063_v38 = vsel %vm1053_vm4, %v1040_v14, %v1062_v28  ;;  %v7918_v14 = vld [vmem:[%s10336_s4 + $0x22c] ss:$16 sps:$4 sm:$0xff]   ;;  %v7916_v27 = vld [vmem:[%s10336_s4 + $0x228] ss:$16 sps:$4 sm:$0xff]  }
 0x1c1   : > { %v892_v39 = vrot.slane %v808_v29, 4  ;;  %v812_v40 = vadd.f32 %v811_v37, %v8688_v61  ;;  %v7921_v28 = vld [vmem:[%s10336_s4 + $0x244] ss:$16 sps:$4 sm:$0xff]   ;;  %v7919_v30 = vld [vmem:[%s10336_s4 + $0x240] ss:$16 sps:$4 sm:$0xff]  }
 0x1c2   : > { %v887_v41 = vmax.f32 %v806_v26, %v886_v34  ;;  %v898_v42 = vrot.slane %v810_v36, 4  ;;  %v8734_v44 = vpack.c.bf16 %v810_v36, %v806_v26  ;;  %v7913_v26 = vld [vmem:[%s10336_s4 + $0x220] ss:$16 sps:$4 sm:$0xff]   ;;  %v7930_v34 = vld [vmem:[%s10336_s4 + $0x26c] ss:$16 sps:$4 sm:$0xff]  }
 0x1c3   : > { %v893_v45 = vmax.f32 %v808_v29, %v892_v39  ;;  %v904_v46 = vrot.slane %v812_v40, 4  ;;  %v8736_v47 = vpack.c.bf16 %v812_v40, %v808_v29  ;;  %v7924_v29 = vld [vmem:[%s10336_s4 + $0x24c] ss:$16 sps:$4 sm:$0xff]   ;;  %v7928_v37 = vld [vmem:[%s10336_s4 + $0x268] ss:$16 sps:$4 sm:$0xff]  }
 0x1c4   : > { %v888_v48 = vrot.slane %v887_v41, 2  ;;  %v899_v49 = vmax.f32 %v810_v36, %v898_v42  ;;  %v7925_v36 = vld [vmem:[%s10336_s4 + $0x260] ss:$16 sps:$4 sm:$0xff]   ;;  %v7936_v39 = vld [vmem:[%s10336_s4 + $0x28c] ss:$16 sps:$4 sm:$0xff]  }
 0x1c5   : > { %v894_v50 = vrot.slane %v893_v45, 2  ;;  %v905_v52 = vmax.f32 %v812_v40, %v904_v46  ;;  %v7931_v40 = vld [vmem:[%s10336_s4 + $0x280] ss:$16 sps:$4 sm:$0xff]   ;;  %v7939_v42 = vld [vmem:[%s10336_s4 + $0x2a4] ss:$16 sps:$4 sm:$0xff]  }
 0x1c6   : > { %v889_v53 = vmax.f32 %v887_v41, %v888_v48  ;;  %v900_v60 = vrot.slane %v899_v49, 2  ;;  %v7934_v41 = vld [vmem:[%s10336_s4 + $0x288] ss:$16 sps:$4 sm:$0xff]   ;;  %v7937_v46 = vld [vmem:[%s10336_s4 + $0x2a0] ss:$16 sps:$4 sm:$0xff]  }
 0x1c7   : > { %v895_v1 = vmax.f32 %v893_v45, %v894_v50  ;;  %v906_v55 = vrot.slane %v905_v52, 2  ;;  %v7942_v45 = vld [vmem:[%s10336_s4 + $0x2ac] ss:$16 sps:$4 sm:$0xff]   ;;  %v7940_v48 = vld [vmem:[%s10336_s4 + $0x2a8] ss:$16 sps:$4 sm:$0xff]  }
 0x1c8   : > { %v890_v31 = vrot.slane %v889_v53, 1  ;;  %v901_v35 = vmax.f32 %v899_v49, %v900_v60  ;;  %v7945_v49 = vld [vmem:[%s10336_s4 + $0x2c4] ss:$16 sps:$4 sm:$0xff]   ;;  %v7948_v50 = vld [vmem:[%s10336_s4 + $0x2cc] ss:$16 sps:$4 sm:$0xff]  }
 0x1c9   : > { %v896_v58 = vrot.slane %v895_v1, 1  ;;  %v907_v61 = vmax.f32 %v905_v52, %v906_v55  ;;  %v7943_v52 = vld [vmem:[%s10336_s4 + $0x2c0] ss:$16 sps:$4 sm:$0xff]   ;;  %v7951_v60 = vld [vmem:[%s10336_s4 + $0x2e4] ss:$16 sps:$4 sm:$0xff]  }
 0x1ca   : > { %v891_v62 = vmax.f32 %v889_v53, %v890_v31  ;;  %v902_v0 = vrot.slane %v901_v35, 1  ;;  %v7946_v53 = vld [vmem:[%s10336_s4 + $0x2c8] ss:$16 sps:$4 sm:$0xff]   ;;  %v7949_v55 = vld [vmem:[%s10336_s4 + $0x2e0] ss:$16 sps:$4 sm:$0xff]  }
 0x1cb   : > { %v897_v2 = vmax.f32 %v895_v1, %v896_v58  ;;  %v908_v3 = vrot.slane %v907_v61, 1  ;;  %v7954_v1 = vld [vmem:[%s10336_s4 + $0x2ec] ss:$16 sps:$4 sm:$0xff]   ;;  %v7952_v31 = vld [vmem:[%s10336_s4 + $0x2e8] ss:$16 sps:$4 sm:$0xff]  }
 0x1cc   : > { %v922_v4 = vpack.c.bf16 %v891_v62, %v891_v62  ;;  %v903_v5 = vmax.f32 %v901_v35, %v902_v0  ;;  %v7957_v35 = vld [vmem:[%s10336_s4 + $0x304] ss:$16 sps:$4 sm:$0xff]   ;;  %v7960_v58 = vld [vmem:[%s10336_s4 + $0x30c] ss:$16 sps:$4 sm:$0xff]   ;;  %v7958_v62 = vld [vmem:[%s10336_s4 + $0x308] ss:$16 sps:$4 sm:$0xff]  }
 0x1cd   : > { %v909_v6 = vmax.f32 %v907_v61, %v908_v3  ;;  %v923_v7 = vpack.c.bf16 %v897_v2, %v897_v2  ;;  %v7955_v61 = vld [vmem:[%s10336_s4 + $0x300] ss:$16 sps:$4 sm:$0xff]   ;;  %v7963_v0 = vld [vmem:[%s10336_s4 + $0x324] ss:$16 sps:$4 sm:$0xff]   ;;  %v7966_v2 = vld [vmem:[%s10336_s4 + $0x32c] ss:$16 sps:$4 sm:$0xff]  }
 0x1ce   : > { %v1041_v8 = vunpack.c.l.b16 %v922_v4  ;;  %v924_v9 = vpack.c.bf16 %v903_v5, %v903_v5  ;;  %v7961_v3 = vld [vmem:[%s10336_s4 + $0x320] ss:$16 sps:$4 sm:$0xff]   ;;  %v7964_v4 = vld [vmem:[%s10336_s4 + $0x328] ss:$16 sps:$4 sm:$0xff]   ;;  %v7969_v5 = vld [vmem:[%s10336_s4 + $0x344] ss:$16 sps:$4 sm:$0xff]  }
 0x1cf   : > { %v925_v10 = vpack.c.bf16 %v909_v6, %v909_v6  ;;  %v1042_v12 = vunpack.c.l.b16 %v923_v7  ;;  %v7972_v6 = vld [vmem:[%s10336_s4 + $0x34c] ss:$16 sps:$4 sm:$0xff]   ;;  %v7967_v7 = vld [vmem:[%s10336_s4 + $0x340] ss:$16 sps:$4 sm:$0xff]  }
 0x1d0   : > { %v1043_v13 = vunpack.c.l.b16 %v924_v9  ;;  %v1056_v16 = vsel %vm1055_vm5, %v1041_v8, %v1054_v33  ;;  %v7927_v33 = vld [vmem:[%s10336_s4 + $0x264] ss:$16 sps:$4 sm:$0xff]   ;;  %v7970_v8 = vld [vmem:[%s10336_s4 + $0x348] ss:$16 sps:$4 sm:$0xff]  }
 0x1d1   : > { %v1044_v17 = vunpack.c.l.b16 %v925_v10  ;;  %v1064_v18 = vsel %vm1055_vm5, %v1042_v12, %v1063_v38  ;;  %v7933_v38 = vld [vmem:[%s10336_s4 + $0x284] ss:$16 sps:$4 sm:$0xff]   ;;  %v7978_v10 = vld [vmem:[%s10336_s4 + $0x36c] ss:$16 sps:$4 sm:$0xff]   ;;  %v7973_v12 = vld [vmem:[%s10336_s4 + $0x360] ss:$16 sps:$4 sm:$0xff]  }
 0x1d2   : > { %v1058_v19 = vsel %vm1057_vm6, %v1043_v13, %v1056_v16  ;;  %v7975_v9 = vld [vmem:[%s10336_s4 + $0x364] ss:$16 sps:$4 sm:$0xff]   ;;  %v7976_v13 = vld [vmem:[%s10336_s4 + $0x368] ss:$16 sps:$4 sm:$0xff]  }
 0x1d3   : > { %v1065_v20 = vsel %vm1057_vm6, %v1044_v17, %v1064_v18  ;;  %v1066_v24 = vpack.c.b16 %v1058_v19, %v1058_v19  ;;  %v7981_v16 = vld [vmem:[%s10336_s4 + $0x384] ss:$16 sps:$4 sm:$0xff]   ;;  %v7984_v17 = vld [vmem:[%s10336_s4 + $0x38c] ss:$16 sps:$4 sm:$0xff]   ;;  %v7979_v18 = vld [vmem:[%s10336_s4 + $0x380] ss:$16 sps:$4 sm:$0xff]  }
 0x1d4   : > { %v1067_v21 = vpack.c.b16 %v1065_v20, %v1065_v20  ;;  %v7982_v19 = vld [vmem:[%s10336_s4 + $0x388] ss:$16 sps:$4 sm:$0xff]   ;;  %v7987_v20 = vld [vmem:[%s10336_s4 + $0x3a4] ss:$16 sps:$4 sm:$0xff]  }
 0x1d6   : > { %1422 = vmatprep.mubr.bf16.mxu1 %v1067_v21  ;;  %1463 = vmatprep.mubr.bf16.mxu0 %v1067_v21  ;;  %v7990_v21 = vld [vmem:[%s10336_s4 + $0x3ac] ss:$16 sps:$4 sm:$0xff]  }
 0x1d7   : > { %1423 = vmatmul.mubr.bf16.vlgmr.msra.gmra.mrb[0].mxu1 %v1066_v24  ;;  %1464 = vmatmul.mubr.bf16.vlgmr.msra.gmra.mrb[16].mxu0 %v1066_v24  ;;  %v7993_v24 = vld [vmem:[%s10336_s4 + $0x3c4] ss:$16 sps:$4 sm:$0xff]  }
 0x1d8   : > { %1865 = vmatpush1.bf16.msra.mxu1 %v7907_v22  ;;  %1938 = vmatpush1.bf16.msra.mxu0 %v7910_v23  ;;  %v7985_v22 = vld [vmem:[%s10336_s4 + $0x3a0] ss:$16 sps:$4 sm:$0xff]   ;;  %v7988_v23 = vld [vmem:[%s10336_s4 + $0x3a8] ss:$16 sps:$4 sm:$0xff]  }
 0x1d9   : > { %1896 = vmatprep.mubr.bf16.mxu1 %v8696_v15  ;;  %1969 = vmatprep.mubr.bf16.mxu0 %v8696_v15  ;;  %v7922_v15 = vld [vmem:[%s10336_s4 + $0x248] ss:$16 sps:$4 sm:$0xff]  }
 0x1da   : > { %1866 = vmatprep.subr.bf16.mxu1 %v7915_v25  ;;  %1939 = vmatprep.subr.bf16.mxu0 %v7918_v14  ;;  %v7996_v25 = vld [vmem:[%s10336_s4 + $0x3cc] ss:$16 sps:$4 sm:$0xff]   ;;  %v7991_v14 = vld [vmem:[%s10336_s4 + $0x3c0] ss:$16 sps:$4 sm:$0xff]  }
 0x1dc   : > { %1867 = vmatpush1.bf16.msra.mxu1 %v7913_v26  ;;  %1940 = vmatpush1.bf16.msra.mxu0 %v7916_v27  ;;  %v7994_v26 = vld [vmem:[%s10336_s4 + $0x3c8] ss:$16 sps:$4 sm:$0xff]   ;;  %v7999_v27 = vld [vmem:[%s10336_s4 + $0x3e4] ss:$16 sps:$4 sm:$0xff]  }
 0x1dd   : > { %1868 = vmatprep.subr.bf16.mxu1 %v7921_v28  ;;  %1941 = vmatprep.subr.bf16.mxu0 %v7924_v29  ;;  %v8002_v28 = vld [vmem:[%s10336_s4 + $0x3ec] ss:$16 sps:$4 sm:$0xff]   ;;  %v7997_v29 = vld [vmem:[%s10336_s4 + $0x3e0] ss:$16 sps:$4 sm:$0xff]  }
 0x1e0   : > { %1869 = vmatpush1.bf16.msra.mxu1 %v7919_v30  ;;  %1942 = vmatpush1.bf16.msra.mxu0 %v7922_v15  ;;  %v8000_v30 = vld [vmem:[%s10336_s4 + $0x3e8] ss:$16 sps:$4 sm:$0xff]  }
 0x1e1   : > { %1870 = vmatprep.subr.bf16.mxu1 %v7927_v33  ;;  %1943 = vmatprep.subr.bf16.mxu0 %v7930_v34  ;;  %v8010_v15 = vld [vmem:[%s10337_s5 + $0x88] sm:$0xff]   ;;  %v8011_v33 = vld [vmem:[%s10337_s5 + $0x50] sm:$0xff]  }
 0x1e2   : > { %v8012_v34 = vld [vmem:[%s10337_s5 + $0xd0] sm:$0xff]  }
 0x1e4   : > { %1871 = vmatpush1.bf16.msra.mxu1 %v7925_v36  ;;  %1944 = vmatpush1.bf16.msra.mxu0 %v7928_v37  ;;  %v8013_v36 = vld [vmem:[%s10337_s5 + $0x10] sm:$0xff]  }
 0x1e5   : > { %1872 = vmatprep.subr.bf16.mxu1 %v7933_v38  ;;  %1945 = vmatprep.subr.bf16.mxu0 %v7936_v39  ;;  %v8014_v37 = vld [vmem:[%s10337_s5 + $0x90] sm:$0xff]   ;;  %v8015_v38 = vld [vmem:[%s10337_s5 + $0x58] sm:$0xff]  }
 0x1e6   : > { %v8016_v39 = vld [vmem:[%s10337_s5 + $0xd8] sm:$0xff]  }
 0x1e8   : > { %1873 = vmatpush1.bf16.msra.mxu1 %v7931_v40  ;;  %1946 = vmatpush1.bf16.msra.mxu0 %v7934_v41  ;;  %v8017_v40 = vld [vmem:[%s10337_s5 + $0x18] sm:$0xff]  }
 0x1e9   : > { %1874 = vmatprep.subr.bf16.mxu1 %v7939_v42  ;;  %1947 = vmatprep.subr.bf16.mxu0 %v7942_v45  ;;  %v8018_v41 = vld [vmem:[%s10337_s5 + $0x98] sm:$0xff]   ;;  %v8019_v42 = vld [vmem:[%s10337_s5 + $0x60] sm:$0xff]  }
 0x1ea   : > { %v8020_v45 = vld [vmem:[%s10337_s5 + $0xe0] sm:$0xff]  }
 0x1ec   : > { %1875 = vmatpush1.bf16.msra.mxu1 %v7937_v46  ;;  %1948 = vmatpush1.bf16.msra.mxu0 %v7940_v48  ;;  %v8021_v46 = vld [vmem:[%s10337_s5 + $0x20] sm:$0xff]  }
 0x1ed   : > { %1876 = vmatprep.subr.bf16.mxu1 %v7945_v49  ;;  %1949 = vmatprep.subr.bf16.mxu0 %v7948_v50  ;;  %v8022_v48 = vld [vmem:[%s10337_s5 + $0xa0] sm:$0xff]   ;;  %v8023_v49 = vld [vmem:[%s10337_s5 + $0x68] sm:$0xff]  }
 0x1ee   : > { %v8024_v50 = vld [vmem:[%s10337_s5 + $0xe8] sm:$0xff]  }
 0x1f0   : > { %1877 = vmatpush1.bf16.msra.mxu1 %v7943_v52  ;;  %1950 = vmatpush1.bf16.msra.mxu0 %v7946_v53  ;;  %v8025_v52 = vld [vmem:[%s10337_s5 + $0x28] sm:$0xff]  }
 0x1f1   : > { %1878 = vmatprep.subr.bf16.mxu1 %v7951_v60  ;;  %1951 = vmatprep.subr.bf16.mxu0 %v7954_v1  ;;  %v8026_v53 = vld [vmem:[%s10337_s5 + $0xa8] sm:$0xff]   ;;  %v8027_v60 = vld [vmem:[%s10337_s5 + $0x70] sm:$0xff]  }
 0x1f2   : > { %v8028_v1 = vld [vmem:[%s10337_s5 + $0xf0] sm:$0xff]  }
 0x1f4   : > { %1879 = vmatpush1.bf16.msra.mxu1 %v7949_v55  ;;  %1952 = vmatpush1.bf16.msra.mxu0 %v7952_v31  ;;  %v8029_v55 = vld [vmem:[%s10337_s5 + $0x30] sm:$0xff]  }
 0x1f5   : > { %1880 = vmatprep.subr.bf16.mxu1 %v7957_v35  ;;  %1953 = vmatprep.subr.bf16.mxu0 %v7960_v58  ;;  %v8030_v31 = vld [vmem:[%s10337_s5 + $0xb0] sm:$0xff]   ;;  %v8031_v35 = vld [vmem:[%s10337_s5 + $0x78] sm:$0xff]  }
 0x1f6   : > { %v8032_v58 = vld [vmem:[%s10337_s5 + $0xf8] sm:$0xff]  }
 0x1f8   : > { %1881 = vmatpush1.bf16.msra.mxu1 %v7955_v61  ;;  %1954 = vmatpush1.bf16.msra.mxu0 %v7958_v62  ;;  %v8033_v61 = vld [vmem:[%s10337_s5 + $0x38] sm:$0xff]  }
 0x1f9   : > { %1882 = vmatprep.subr.bf16.mxu1 %v7963_v0  ;;  %1955 = vmatprep.subr.bf16.mxu0 %v7966_v2  ;;  %v8034_v62 = vld [vmem:[%s10337_s5 + $0xb8] sm:$0xff]   ;;  %v8204_v0 = vmov 0.0|0.0   ;;  %v2886_v2 = vld [vmem:[%s10334_s2 + $0x24] ss:$0 sm:$0xff] }
 0x1fc   : > { %1883 = vmatpush1.bf16.msra.mxu1 %v7961_v3  ;;  %1956 = vmatpush1.bf16.msra.mxu0 %v7964_v4  ;;  %v2905_v3 = vld [vmem:[%s10334_s2 + $0x25] ss:$0 sm:$0xff]  ;;  %v2904_v4 = vsel %vm2903_vm7, %v2886_v2, 0.0  ;;  %v9113_v2 = vld [vmem:[%s10338_s6 + $0x10] sm:$0xff] }
 0x1fd   : > { %1884 = vmatprep.subr.bf16.mxu1 %v7969_v5  ;;  %1957 = vmatprep.subr.bf16.mxu0 %v7972_v6  ;;  %v9047_v5 = vsel %vm2903_vm7, %v2905_v3, 0.0  ;;  %v9118_v3 = vld [vmem:[%s10338_s6 + $0x18] sm:$0xff] }
 0x1fe   : > { %v9050_v6 = vadd.f32 %v9047_v5, %v2904_v4 }
 0x200   : > { %1885 = vmatpush1.bf16.msra.mxu1 %v7967_v7  ;;  %1958 = vmatpush1.bf16.msra.mxu0 %v7970_v8  ;;  %v2918_v7 = vsel %vm2709_vm8, %v9050_v6, 0.0  ;;  %v9055_v8 = vsub.s32 2, %v8673_v56 }
 0x201   : > { %1886 = vmatprep.subr.bf16.mxu1 %v7975_v9  ;;  %1959 = vmatprep.subr.bf16.mxu0 %v7978_v10  ;;  %v6481_v9 = vld [vmem:[%s10334_s2 + $0x2] ss:$8 sm:$0xf]  ;;  %v8205_v10 = vmov 1966171168  }
 0x202   : > { %2919 = vadd.xlane.f32.xlu0 %v2918_v7  ;;  %v9124_v7 = vld [vmem:[%s10338_s6 + $0x20] sm:$0xff] }
 0x204   : > { %1887 = vmatpush1.bf16.msra.mxu1 %v7973_v12  ;;  %1960 = vmatpush1.bf16.msra.mxu0 %v7976_v13  ;;  %v2019_v12 = vunpack.c.l.s4 %v8205_v10  ;;  %v9061_v13 = vsub.s32 3, %v8673_v56 }
 0x205   : > { %1888 = vmatprep.subr.bf16.mxu1 %v7981_v16  ;;  %1961 = vmatprep.subr.bf16.mxu0 %v7984_v17  ;;  %v996_v16 = vrot.slane %v6481_v9, %v8676_v57  ;;  %v1004_v17 = vrot.slane %v6481_v9, %v9055_v8 }
 0x208   : > { %1889 = vmatpush1.bf16.msra.mxu1 %v7979_v18  ;;  %1962 = vmatpush1.bf16.msra.mxu0 %v7982_v19  ;;  %v1000_v18 = vrot.slane %v6481_v9, %v8682_v59  ;;  %v2020_v19 = vunpack.c.0.s8 %v2019_v12 }
 0x209   : > { %1890 = vmatprep.subr.bf16.mxu1 %v7987_v20  ;;  %1963 = vmatprep.subr.bf16.mxu0 %v7990_v21  ;;  %v1008_v20 = vrot.slane %v6481_v9, %v9061_v13  ;;  %v9129_v9 = vld [vmem:[%s10338_s6 + $0x28] sm:$0xff] }
 0x20c   : > { %1891 = vmatpush1.bf16.msra.mxu1 %v7985_v22  ;;  %1964 = vmatpush1.bf16.msra.mxu0 %v7988_v23 }
 0x20d   : > { %1892 = vmatprep.subr.bf16.mxu1 %v7993_v24  ;;  %1965 = vmatprep.subr.bf16.mxu0 %v7996_v25 }
 0x210   : > { %1893 = vmatpush1.bf16.msra.mxu1 %v7991_v14  ;;  %1966 = vmatpush1.bf16.msra.mxu0 %v7994_v26 }
 0x211   : > { %1894 = vmatprep.subr.bf16.mxu1 %v7999_v27  ;;  %1967 = vmatprep.subr.bf16.mxu0 %v8002_v28  ;;  %v9068_v27 = vsub.s32 %v2020_v19, %v8673_v56 }
 0x214   : > { %1895 = vmatpush1.bf16.msra.mxu1 %v7997_v29  ;;  %1968 = vmatpush1.bf16.msra.mxu0 %v8000_v30 }
 0x217   : > { %1897 = vmatmul.mubr.bf16.vlgmr.msra.gmra.mrb[4].mxu1 %v8694_v11  ;;  %1970 = vmatmul.mubr.bf16.vlgmr.msra.gmra.mrb[20].mxu0 %v8694_v11  ;;  %v8003_v11 = vld [vmem:[%s10337_s5 + $0x40] sm:$0xff]  }
 0x218   : > { %1906 = vmatprep.mubr.bf16.mxu1 %v8705_v63  ;;  %1979 = vmatprep.mubr.bf16.mxu0 %v8705_v63  ;;  %v8005_v63 = vld [vmem:[%s10337_s5] sm:$0xff]  }
 0x219   : > { %6795 = vmatprep.subr.bf16.mxu1 %v8003_v11 }
 0x21a   : > { %6796 = vmatpush3.bf16.msra.mxu1 %v8005_v63 }
 0x21f   : > { %1907 = vmatmul.mubr.bf16.gmra.mrb[8].mxu1 %v8702_v32  ;;  %1980 = vmatmul.mubr.bf16.gmra.mrb[24].mxu0 %v8702_v32  ;;  %v8004_v32 = vld [vmem:[%s10337_s5 + $0xc0] sm:$0xff]  }
 0x220   : > { %1916 = vmatprep.mubr.bf16.mxu1 %v8719_v54  ;;  %1989 = vmatprep.mubr.bf16.mxu0 %v8719_v54  ;;  %v8007_v54 = vld [vmem:[%s10337_s5 + $0x48] sm:$0xff]  }
 0x221   : > { %6835 = vmatprep.subr.bf16.mxu0 %v8004_v32  ;;  %6797 = vmatprep.subr.bf16.mxu1 %v8007_v54 }
 0x227   : > { %1917 = vmatmul.mubr.bf16.gmra.mrb[12].mxu1 %v8716_v51  ;;  %1990 = vmatmul.mubr.bf16.gmra.mrb[28].mxu0 %v8716_v51  ;;  %v8006_v51 = vld [vmem:[%s10337_s5 + $0x80] sm:$0xff]  }
 0x228   : > { %1926 = vmatprep.mubr.bf16.mxu1 %v8736_v47  ;;  %1999 = vmatprep.mubr.bf16.mxu0 %v8736_v47  ;;  %v8009_v47 = vld [vmem:[%s10337_s5 + $0x8] sm:$0xff]  }
 0x229   : > { %6836 = vmatpush3.bf16.msra.mxu0 %v8006_v51  ;;  %6798 = vmatpush3.bf16.msra.mxu1 %v8009_v47 }
 0x22a   : > { %6799 = vmatprep.subr.bf16.mxu1 %v8011_v33 }
 0x22d   : > { %6800 = vmatpush3.bf16.msra.mxu1 %v8013_v36 }
 0x22e   : > { %6801 = vmatprep.subr.bf16.mxu1 %v8015_v38 }
 0x22f   : > { %1927 = vmatmul.mubr.bf16.gmra.mrb[16].mxu1 %v8734_v44  ;;  %2000 = vmatmul.mubr.bf16.gmra.mrb[32].mxu0 %v8734_v44  ;;  %v8008_v44 = vld [vmem:[%s10337_s5 + $0xc8] sm:$0xff]  }
 0x230   : > { %6837 = vmatprep.subr.bf16.mxu0 %v8008_v44 }
 0x231   : > { %6838 = vmatpush3.bf16.msra.mxu0 %v8010_v15  ;;  %6802 = vmatpush3.bf16.msra.mxu1 %v8017_v40  ;;  %v2767_v40 = vld [vmem:[%s10334_s2 + $0x21] ss:$0 sm:$0xff] }
 0x232   : > { %6839 = vmatprep.subr.bf16.mxu0 %v8012_v34  ;;  %6803 = vmatprep.subr.bf16.mxu1 %v8019_v42  ;;  %v2777_v42 = vpop.permute.xlu0 %2776 }
 0x235   : > { %6840 = vmatpush3.bf16.msra.mxu0 %v8014_v37  ;;  %6804 = vmatpush3.bf16.msra.mxu1 %v8021_v46 }
 0x236   : > { %6841 = vmatprep.subr.bf16.mxu0 %v8016_v39  ;;  %6805 = vmatprep.subr.bf16.mxu1 %v8023_v49  ;;  %v2771_v39 = vpop.permute.xlu1 %2770 }
 0x239   : > { %6842 = vmatpush3.bf16.msra.mxu0 %v8018_v41  ;;  %6806 = vmatpush3.bf16.msra.mxu1 %v8025_v52  ;;  %v2774_v41 = vld [vmem:[%s10334_s2 + $0x22] ss:$0 sm:$0xff] }
 0x23a   : > { %6843 = vmatprep.subr.bf16.mxu0 %v8020_v45  ;;  %6807 = vmatprep.subr.bf16.mxu1 %v8027_v60  ;;  %v2773_v45 = vmul.f32 %v2771_v39, %v2767_v40  ;;  %v2779_v46 = vmul.f32 %v2777_v42, %v2774_v41  ;;  %v2784_v49 = vpop.permute.xlu1 %2783  ;;  %v2788_v60 = vld [vmem:[%s10334_s2 + $0x7] ss:$0 sm:$0xff] }
 0x23d   : > { %6844 = vmatpush3.bf16.msra.mxu0 %v8022_v48  ;;  %6808 = vmatpush3.bf16.msra.mxu1 %v8029_v55  ;;  %v2781_v48 = vld [vmem:[%s10334_s2 + $0x23] ss:$0 sm:$0xff] }
 0x23e   : > { %6845 = vmatprep.subr.bf16.mxu0 %v8024_v50  ;;  %6809 = vmatprep.subr.bf16.mxu1 %v8031_v35  ;;  %v2780_v50 = vadd.f32 %v2779_v46, %v2773_v45  ;;  %v2786_v52 = vmul.f32 %v2784_v49, %v2781_v48 }
 0x241   : > { %6846 = vmatpush3.bf16.msra.mxu0 %v8026_v53  ;;  %6810 = vmatpush3.bf16.msra.mxu1 %v8033_v61  ;;  %v2787_v53 = vadd.f32 %v2786_v52, %v2780_v50  ;;  %v9103_v61 = vld [vmem:[%s10338_s6] sm:$0xff] }
 0x242   : > { %6847 = vmatprep.subr.bf16.mxu0 %v8028_v1  ;;  %7302 = vmatprep.subr.bf16.mxu1 %v8204_v0 }
 0x243   : > { %v9094_v1 = vadd.f32 %v2788_v60, %v2787_v53 }
 0x245   : > { %6848 = vmatpush3.bf16.msra.mxu0 %v8030_v31  ;;  %v2791_v55 = vmul.f32 0.044715, %v9094_v1 }
 0x246   : > { %6849 = vmatprep.subr.bf16.mxu0 %v8032_v58 }
 0x247   : > { %v2792_v31 = vmul.f32 %v2791_v55, %v9094_v1 }
 0x249   : > { %6850 = vmatpush3.bf16.msra.mxu0 %v8034_v62  ;;  %v2793_v35 = vmul.f32 %v2792_v31, %v9094_v1  ;;  %v9108_v62 = vld [vmem:[%s10338_s6 + $0x8] sm:$0xff] }
 0x24b   : > { %v9132_v10 = vadd.f32 %v2793_v35, %v9094_v1 }
 0x2aa   : > { %v1424_v21 = vpop.f32.mrb[0].mxu1  ;;  %v1465_v22 = vpop.f32.mrb[16].mxu0 }
 0x2ab   : > { %v1425_v23 = vadd.f32 %v1424_v21, %v996_v16  ;;  %v1466_v24 = vadd.f32 %v1465_v22, %v1004_v17  ;;  %v1426_v25 = vpop.f32.mrb[1].mxu1  ;;  %v1467_v14 = vpop.f32.mrb[17].mxu0  ;;  %v7303_v17 = vpack.c.bf16 %v9108_v62, %v9103_v61 }
 0x2ac   : > { %v1427_v26 = vadd.f32 %v1426_v25, %v1000_v18  ;;  %v1468_v28 = vadd.f32 %v1467_v14, %v1008_v20  ;;  %v1428_v29 = vpop.f32.mrb[2].mxu1  ;;  %v1469_v30 = vpop.f32.mrb[18].mxu0  ;;  %v7306_v18 = vpack.c.bf16 %v9118_v3, %v9113_v2  ;;  %v9147_v25 = vld [vmem:[%s10338_s6 + $0x30] sm:$0xff]  ;;  %v9152_v14 = vld [vmem:[%s10338_s6 + $0x38] sm:$0xff] }
 0x2ad   : > { %v1429_v11 = vpop.f32.mrb[3].mxu1  ;;  %v1470_v32 = vpop.f32.mrb[19].mxu0  ;;  %v7312_v42 = vpack.c.bf16 %v9152_v14, %v9147_v25  ;;  %v2810_v25 = vld [vmem:[%s10338_s6 + $0x58] sm:$0xff] }
 0x2ae   : > { %v2014_v63 = vcombine.low %v1425_v23, %v1427_v26  ;;  %v2015_v51 = vcombine.high %v1425_v23, %v1427_v26  ;;  %v2016_v54 = vcombine.low %v1466_v24, %v1468_v28  ;;  %v2017_v44 = vcombine.high %v1466_v24, %v1468_v28 }
 0x2af   : > { %v7309_v24 = vpack.c.bf16 %v9129_v9, %v9124_v7 }
 0x2b0   : > { %v2024_v47 = vrot.slane %v2014_v63, %v9068_v27  ;;  %v9072_v15 = vrot.slane %v2015_v51, %v9068_v27  ;;  %v2038_v33 = vrot.slane %v2016_v54, %v9068_v27  ;;  %v9076_v34 = vrot.slane %v2017_v44, %v9068_v27 }
 0x2b2   : > { %v2046_v56 = vcombine.low %v2024_v47, %v2038_v33  ;;  %v2047_v36 = vcombine.high %v2024_v47, %v2038_v33  ;;  %v2048_v37 = vcombine.low %v9072_v15, %v9076_v34  ;;  %v2049_v38 = vcombine.high %v9072_v15, %v9076_v34 }
 0x2b4   : > { %v2056_v58 = vrot.slane %v2046_v56, %v9068_v27  ;;  %v2070_v4 = vrot.slane %v2047_v36, %v9068_v27  ;;  %v9159_v56 = vrot.slane %v2048_v37, %v9068_v27 }
 0x2b6   : > { %v2085_v12 = vrot.slane %v2056_v58, %v8676_v57  ;;  %v2093_v16 = vrot.slane %v2056_v58, %v9055_v8  ;;  %v2089_v21 = vrot.slane %v2056_v58, %v8682_v59  ;;  %v2097_v22 = vrot.slane %v2056_v58, %v9061_v13 }
 0x2b7   : > { %v2078_v23 = vcombine.high %v2056_v58, %v2056_v58  ;;  %v2101_v11 = vrot.slane %v2070_v4, %v8676_v57  ;;  %v2109_v32 = vrot.slane %v2070_v4, %v9055_v8  ;;  %v2105_v47 = vrot.slane %v2070_v4, %v8682_v59 }
 0x2b8   : > { %v2113_v33 = vrot.slane %v2070_v4, %v9061_v13  ;;  %v2080_v49 = vcombine.high %v2070_v4, %v2070_v4  ;;  %v2153_v61 = vrot.slane %v9159_v56, %v8682_v59  ;;  %v2161_v62 = vrot.slane %v9159_v56, %v9061_v13 }
 0x2b9   : > { %v2117_v48 = vrot.slane %v2078_v23, %v8676_v57  ;;  %v2129_v4 = vrot.slane %v2078_v23, %v9061_v13 }
 0x2ea   : > { %v1898_v19 = vpop.f32.mrb[4].mxu1  ;;  %v1971_v20 = vpop.f32.mrb[20].mxu0 }
 0x2eb   : > { %v2242_v26 = vadd.f32 %v2085_v12, %v1898_v19  ;;  %v2244_v28 = vadd.f32 %v2093_v16, %v1971_v20  ;;  %v1900_v29 = vpop.f32.mrb[5].mxu1  ;;  %v1973_v30 = vpop.f32.mrb[21].mxu0  ;;  %v2125_v16 = vrot.slane %v2078_v23, %v9055_v8  ;;  %v2121_v19 = vrot.slane %v2078_v23, %v8682_v59 }
 0x2ec   : > { %v2243_v63 = vadd.f32 %v2089_v21, %v1900_v29  ;;  %v2245_v51 = vadd.f32 %v2097_v22, %v1973_v30  ;;  %v1902_v54 = vpop.f32.mrb[6].mxu1  ;;  %v1975_v44 = vpop.f32.mrb[22].mxu0  ;;  %v2077_v23 = vrot.slane %v2049_v38, %v9068_v27  ;;  %v2157_v27 = vrot.slane %v9159_v56, %v9055_v8 }
 0x2ed   : > { %v2246_v36 = vadd.f32 %v2101_v11, %v1902_v54  ;;  %v2248_v39 = vadd.f32 %v2109_v32, %v1975_v44  ;;  %v1904_v40 = vpop.f32.mrb[7].mxu1  ;;  %v1977_v41 = vpop.f32.mrb[23].mxu0  ;;  %v2274_v50 = vmax.f32 %v2242_v26, 0.0  ;;  %v2276_v52 = vmax.f32 %v2244_v28, 0.0 }
 0x2ee   : > { %v2247_v45 = vadd.f32 %v2105_v47, %v1904_v40  ;;  %v2249_v46 = vadd.f32 %v2113_v33, %v1977_v41  ;;  %v2275_v55 = vmax.f32 %v2243_v63, 0.0  ;;  %v2277_v31 = vmax.f32 %v2245_v51, 0.0 }
 0x2ef   : > { %v2278_v53 = vmax.f32 %v2246_v36, 0.0  ;;  %v2280_v60 = vmax.f32 %v2248_v39, 0.0  ;;  %v2133_v26 = vrot.slane %v2080_v49, %v8676_v57  ;;  %v2141_v63 = vrot.slane %v2080_v49, %v9055_v8 }
 0x2f0   : > { %v2279_v37 = vmax.f32 %v2247_v45, 0.0  ;;  %v2281_v35 = vmax.f32 %v2249_v46, 0.0  ;;  %v2137_v51 = vrot.slane %v2080_v49, %v8682_v59  ;;  %v2145_v36 = vrot.slane %v2080_v49, %v9061_v13 }
 0x2f1   : > { %v2306_v58 = vpack.c.bf16 %v2278_v53, %v2274_v50  ;;  %v2308_v12 = vpack.c.bf16 %v2280_v60, %v2276_v52  ;;  %v2795_v46 = vmul.f32 0.7978846, %v9132_v10  ;;  %v2149_v49 = vrot.slane %v9159_v56, %v8676_v57 }
 0x2f2   : > { %v2307_v20 = vpack.c.bf16 %v2279_v37, %v2275_v55  ;;  %v2309_v21 = vpack.c.bf16 %v2281_v35, %v2277_v31  ;;  %v1908_v22 = vpop.f32.mrb[8].mxu1  ;;  %v1981_v29 = vpop.f32.mrb[24].mxu0  ;;  %v2173_v3 = vrot.slane %v2077_v23, %v9055_v8 }
 0x2f3   : > { %v2250_v28 = vadd.f32 %v2117_v48, %v1908_v22  ;;  %v2252_v30 = vadd.f32 %v2125_v16, %v1981_v29  ;;  %v1910_v11 = vpop.f32.mrb[9].mxu1  ;;  %v1983_v32 = vpop.f32.mrb[25].mxu0  ;;  %v2165_v16 = vrot.slane %v2077_v23, %v8676_v57  ;;  %8035 = vtanh.f32 %v2795_v46 }
 0x2f4   : > { %v2251_v54 = vadd.f32 %v2121_v19, %v1910_v11  ;;  %v2253_v44 = vadd.f32 %v2129_v4, %v1983_v32  ;;  %v1912_v47 = vpop.f32.mrb[10].mxu1  ;;  %v1985_v33 = vpop.f32.mrb[26].mxu0  ;;  %2611 = vmatprep.mubr.bf16.mxu1 %v2307_v20  ;;  %2676 = vmatprep.mubr.bf16.mxu0 %v2309_v21  ;;  %v2079_v19 = vcombine.high %v9159_v56, %v9159_v56  ;;  %v9197_v20 = vld [vmem:[%s10338_s6 + $0x40] sm:$0xff]  ;;  %v9202_v21 = vld [vmem:[%s10338_s6 + $0x48] sm:$0xff] }
 0x2f5   : > { %v2254_v39 = vadd.f32 %v2133_v26, %v1912_v47  ;;  %v2256_v40 = vadd.f32 %v2141_v63, %v1985_v33  ;;  %v1914_v41 = vpop.f32.mrb[11].mxu1  ;;  %v1987_v45 = vpop.f32.mrb[27].mxu0  ;;  %2612 = vmatmul.mubr.bf16.vlgmr.msra.gmra.mrb[20].mxu1 %v2306_v58  ;;  %2677 = vmatmul.mubr.bf16.vlgmr.msra.gmra.mrb[36].mxu0 %v2308_v12  ;;  %v2282_v15 = vmax.f32 %v2250_v28, 0.0  ;;  %v2284_v34 = vmax.f32 %v2252_v30, 0.0 }
 0x2f6   : > { %v2255_v48 = vadd.f32 %v2137_v51, %v1914_v41  ;;  %v2257_v50 = vadd.f32 %v2145_v36, %v1987_v45  ;;  %7304 = vmatpush3.bf16.msra.mxu1 %v7303_v17  ;;  %v2283_v53 = vmax.f32 %v2251_v54, 0.0  ;;  %v2285_v10 = vmax.f32 %v2253_v44, 0.0 }
 0x2f7   : > { %v2286_v38 = vmax.f32 %v2254_v39, 0.0  ;;  %v2288_v52 = vmax.f32 %v2256_v40, 0.0  ;;  %7305 = vmatprep.subr.bf16.mxu1 %v8204_v0  ;;  %v2177_v11 = vrot.slane %v2077_v23, %v9061_v13  ;;  %v7315_v44 = vpack.c.bf16 %v9202_v21, %v9197_v20 }
 0x2f8   : > { %v2287_v60 = vmax.f32 %v2255_v48, 0.0  ;;  %v2289_v55 = vmax.f32 %v2257_v50, 0.0  ;;  %v2181_v36 = vrot.slane %v2079_v19, %v8676_v57  ;;  %v2081_v39 = vcombine.high %v2077_v23, %v2077_v23 }
 0x2f9   : > { %v2310_v31 = vpack.c.bf16 %v2286_v38, %v2282_v15  ;;  %v2312_v37 = vpack.c.bf16 %v2288_v52, %v2284_v34  ;;  %v2189_v38 = vrot.slane %v2079_v19, %v9055_v8  ;;  %v2185_v7 = vrot.slane %v2079_v19, %v8682_v59 }
 0x2fa   : > { %v2311_v17 = vpack.c.bf16 %v2287_v60, %v2283_v53  ;;  %v2313_v35 = vpack.c.bf16 %v2289_v55, %v2285_v10  ;;  %v1918_v58 = vpop.f32.mrb[12].mxu1  ;;  %v1991_v12 = vpop.f32.mrb[28].mxu0  ;;  %7307 = vmatpush3.bf16.msra.mxu1 %v7306_v18  ;;  %v2169_v18 = vrot.slane %v2077_v23, %v8682_v59  ;;  %v2193_v53 = vrot.slane %v2079_v19, %v9061_v13 }
 0x2fb   : > { %v2258_v22 = vadd.f32 %v2149_v49, %v1918_v58  ;;  %v2260_v29 = vadd.f32 %v2157_v27, %v1991_v12  ;;  %v1920_v4 = vpop.f32.mrb[13].mxu1  ;;  %v1993_v2 = vpop.f32.mrb[29].mxu0  ;;  %7308 = vmatprep.subr.bf16.mxu1 %v8204_v0  ;;  %v2197_v10 = vrot.slane %v2081_v39, %v8676_v57 }
 0x2fc   : > { %v2259_v56 = vadd.f32 %v2153_v61, %v1920_v4  ;;  %v2261_v26 = vadd.f32 %v2161_v62, %v1993_v2  ;;  %v1922_v28 = vpop.f32.mrb[14].mxu1  ;;  %v1995_v30 = vpop.f32.mrb[30].mxu0  ;;  %2619 = vmatprep.mubr.bf16.mxu1 %v2311_v17  ;;  %2684 = vmatprep.mubr.bf16.mxu0 %v2313_v35  ;;  %v2205_v61 = vrot.slane %v2081_v39, %v9055_v8  ;;  %v2809_v17 = vld [vmem:[%s10338_s6 + $0x50] sm:$0xff] }
 0x2fd   : > { %v2262_v32 = vadd.f32 %v2165_v16, %v1922_v28  ;;  %v2264_v63 = vadd.f32 %v2173_v3, %v1995_v30  ;;  %v1924_v51 = vpop.f32.mrb[15].mxu1  ;;  %v1997_v54 = vpop.f32.mrb[31].mxu0  ;;  %2620 = vmatmul.mubr.bf16.gmra.mrb[24].mxu1 %v2310_v31  ;;  %2685 = vmatmul.mubr.bf16.gmra.mrb[40].mxu0 %v2312_v37  ;;  %v2290_v40 = vmax.f32 %v2258_v22, 0.0  ;;  %v2292_v41 = vmax.f32 %v2260_v29, 0.0 }
 0x2fe   : > { %v2263_v47 = vadd.f32 %v2169_v18, %v1924_v51  ;;  %v2265_v33 = vadd.f32 %v2177_v11, %v1997_v54  ;;  %7310 = vmatpush3.bf16.msra.mxu1 %v7309_v24  ;;  %v2291_v50 = vmax.f32 %v2259_v56, 0.0  ;;  %v2293_v49 = vmax.f32 %v2261_v26, 0.0  ;;  %v8036_v4 = vpop.eup %8035  ;;  %v2812_v26 = vld [vmem:[%s10338_s6 + $0x68] sm:$0xff] }
 0x2ff   : > { %v2294_v45 = vmax.f32 %v2262_v32, 0.0  ;;  %v2296_v48 = vmax.f32 %v2264_v63, 0.0  ;;  %7311 = vmatprep.subr.bf16.mxu1 %v8204_v0  ;;  %v2201_v62 = vrot.slane %v2081_v39, %v8682_v59  ;;  %v2209_v8 = vrot.slane %v2081_v39, %v9061_v13  ;;  %v2811_v13 = vld [vmem:[%s10338_s6 + $0x60] sm:$0xff] }
 0x300   : > { %v2295_v27 = vmax.f32 %v2263_v47, 0.0  ;;  %v2297_v15 = vmax.f32 %v2265_v33, 0.0  ;;  %v7318_v29 = vpack.c.bf16 %v2810_v25, %v2809_v17  ;;  %v7321_v47 = vpack.c.bf16 %v2812_v26, %v2811_v13  ;;  %v2813_v33 = vld [vmem:[%s10338_s6 + $0x70] sm:$0xff] }
 0x301   : > { %v2314_v46 = vpack.c.bf16 %v2294_v45, %v2290_v40  ;;  %v2316_v34 = vpack.c.bf16 %v2296_v48, %v2292_v41  ;;  %v8207_v40 = vmov 0.0   ;;  %v2790_v41 = vmul.f32 0.5, %v9094_v1 }
 0x302   : > { %v2315_v9 = vpack.c.bf16 %v2295_v27, %v2291_v50  ;;  %v2317_v24 = vpack.c.bf16 %v2297_v15, %v2293_v49  ;;  %v1928_v52 = vpop.f32.mrb[16].mxu1  ;;  %v2001_v23 = vpop.f32.mrb[32].mxu0  ;;  %7313 = vmatpush3.bf16.msra.mxu1 %v7312_v42  ;;  %v2797_v45 = vadd.f32 1.0, %v8036_v4  ;;  %v9253_v27 = vld [vmem:[%s10334_s2 + $0x3] ss:$0 sm:$0xff] }
 0x303   : > { %v2266_v60 = vadd.f32 %v2181_v36, %v1928_v52  ;;  %v2268_v55 = vadd.f32 %v2189_v38, %v2001_v23  ;;  %v1930_v31 = vpop.f32.mrb[17].mxu1  ;;  %v2003_v37 = vpop.f32.mrb[33].mxu0  ;;  %7314 = vmatprep.subr.bf16.mxu1 %v8204_v0  ;;  %v2814_v36 = vld [vmem:[%s10338_s6 + $0x78] sm:$0xff] }
 0x304   : > { %v2267_v14 = vadd.f32 %v2185_v7, %v1930_v31  ;;  %v2269_v42 = vadd.f32 %v2193_v53, %v2003_v37  ;;  %v1932_v35 = vpop.f32.mrb[18].mxu1  ;;  %v2005_v58 = vpop.f32.mrb[34].mxu0  ;;  %2627 = vmatprep.mubr.bf16.mxu1 %v2315_v9  ;;  %2692 = vmatprep.mubr.bf16.mxu0 %v2317_v24  ;;  %v7324_v39 = vpack.c.bf16 %v2814_v36, %v2813_v33 }
 0x305   : > { %v2270_v12 = vadd.f32 %v2197_v10, %v1932_v35  ;;  %v2272_v16 = vadd.f32 %v2205_v61, %v2005_v58  ;;  %v1934_v19 = vpop.f32.mrb[19].mxu1  ;;  %v2007_v20 = vpop.f32.mrb[35].mxu0  ;;  %2628 = vmatmul.mubr.bf16.gmra.mrb[28].mxu1 %v2314_v46  ;;  %2693 = vmatmul.mubr.bf16.gmra.mrb[44].mxu0 %v2316_v34  ;;  %v2298_v2 = vmax.f32 %v2266_v60, 0.0  ;;  %v2300_v3 = vmax.f32 %v2268_v55, 0.0 }
 0x306   : > { %v2271_v21 = vadd.f32 %v2201_v62, %v1934_v19  ;;  %v2273_v22 = vadd.f32 %v2209_v8, %v2007_v20  ;;  %7316 = vmatpush3.bf16.msra.mxu1 %v7315_v44  ;;  %v2299_v28 = vmax.f32 %v2267_v14, 0.0  ;;  %v2301_v30 = vmax.f32 %v2269_v42, 0.0 }
 0x307   : > { %v2302_v18 = vmax.f32 %v2270_v12, 0.0  ;;  %v2304_v56 = vmax.f32 %v2272_v16, 0.0  ;;  %7317 = vmatprep.subr.bf16.mxu1 %v8204_v0  ;;  %v2798_v48 = vmul.f32 %v2797_v45, %v2790_v41 }
 0x308   : > { %v2303_v11 = vmax.f32 %v2271_v21, 0.0  ;;  %v2305_v32 = vmax.f32 %v2273_v22, 0.0 }
 0x309   : > { %v2318_v63 = vpack.c.bf16 %v2302_v18, %v2298_v2  ;;  %v2320_v51 = vpack.c.bf16 %v2304_v56, %v2300_v3 }
 0x30a   : > { %v2319_v54 = vpack.c.bf16 %v2303_v11, %v2299_v28  ;;  %v2321_v44 = vpack.c.bf16 %v2305_v32, %v2301_v30  ;;  %7319 = vmatpush3.bf16.msra.mxu1 %v7318_v29 }
 0x30b   : > { %7320 = vmatprep.subr.bf16.mxu1 %v8204_v0 }
 0x30c   : > { %2635 = vmatprep.mubr.bf16.mxu1 %v2319_v54  ;;  %2700 = vmatprep.mubr.bf16.mxu0 %v2321_v44 }
 0x30d   : > { %2636 = vmatmul.mubr.bf16.gmra.mrb[32].mxu1 %v2318_v63  ;;  %2701 = vmatmul.mubr.bf16.gmra.mrb[48].mxu0 %v2320_v51 }
 0x30e   : > { %7322 = vmatpush3.bf16.msra.mxu1 %v7321_v47  ;;  %7131 = vmatprep.mubr.msk.f32.mxu1 %vm8206_vm9, %v8207_v40 }
 0x30f   : > { %7323 = vmatprep.subr.bf16.mxu1 %v8204_v0 }
 0x312   : > { %7325 = vmatpush3.bf16.msra.mxu1 %v7324_v39 }
 0x315   : > { %7132 = vmatmul.mubr.f32.vlgmr.msra.gmra.mrb[36].mxu1 %v2798_v48 }
 0x316   : > { %3032 = vmatprep.mubr.f32.mxu1 %v8207_v40 }
 0x3c8   : > { %v6811_v50 = vpop.f32.mrb[20].mxu1  ;;  %v6851_v49 = vpop.f32.mrb[36].mxu0 }
 0x3c9   : > { %v6812_v15 = vpop.f32.mrb[21].mxu1  ;;  %v6852_v46 = vpop.f32.mrb[37].mxu0 }
 0x3ca   : > { %v6813_v34 = vadd.f32 %v6812_v15, %v6811_v50  ;;  %v6853_v38 = vadd.f32 %v6852_v46, %v6851_v49  ;;  %v6814_v0 = vpop.f32.mrb[22].mxu1  ;;  %v6854_v7 = vpop.f32.mrb[38].mxu0 }
 0x3cb   : > { %v6815_v1 = vpop.f32.mrb[23].mxu1  ;;  %v6855_v9 = vpop.f32.mrb[39].mxu0 }
 0x3cc   : > { %v2614_v24 = vadd.f32 %v6813_v34, %v9253_v27  ;;  %v6816_v52 = vadd.f32 %v6815_v1, %v6814_v0  ;;  %v6856_v23 = vadd.f32 %v6855_v9, %v6854_v7 }
 0x3ce   : > { %v2679_v53 = vadd.f32 %v6853_v38, %v2614_v24  ;;  %v2617_v10 = vadd.f32 %v6816_v52, %v9253_v27 }
 0x3d0   : > { %v2710_v60 = vsel %vm2709_vm8, %v2679_v53, -inf  ;;  %v2682_v55 = vadd.f32 %v6856_v23, %v2617_v10  ;;  %v6817_v31 = vpop.f32.mrb[24].mxu1  ;;  %v6857_v37 = vpop.f32.mrb[40].mxu0 }
 0x3d1   : > { %v2711_v61 = vrot.slane %v2710_v60, 4  ;;  %v6818_v62 = vpop.f32.mrb[25].mxu1  ;;  %v6858_v17 = vpop.f32.mrb[41].mxu0 }
 0x3d2   : > { %v2717_v25 = vsel %vm2709_vm8, %v2682_v55, -inf  ;;  %v6819_v14 = vadd.f32 %v6818_v62, %v6817_v31  ;;  %v6859_v42 = vadd.f32 %v6858_v17, %v6857_v37  ;;  %v6820_v35 = vpop.f32.mrb[26].mxu1  ;;  %v6860_v58 = vpop.f32.mrb[42].mxu0 }
 0x3d3   : > { %v2712_v8 = vmax.f32 %v2710_v60, %v2711_v61  ;;  %v2718_v12 = vrot.slane %v2717_v25, 4  ;;  %v6821_v16 = vpop.f32.mrb[27].mxu1  ;;  %v6861_v19 = vpop.f32.mrb[43].mxu0 }
 0x3d4   : > { %v2622_v20 = vadd.f32 %v6819_v14, %v9253_v27  ;;  %v6822_v21 = vadd.f32 %v6821_v16, %v6820_v35  ;;  %v6862_v22 = vadd.f32 %v6861_v19, %v6860_v58 }
 0x3d5   : > { %v2713_v29 = vrot.slane %v2712_v8, 2  ;;  %v2719_v4 = vmax.f32 %v2717_v25, %v2718_v12 }
 0x3d6   : > { %v2687_v2 = vadd.f32 %v6859_v42, %v2622_v20  ;;  %v2625_v3 = vadd.f32 %v6822_v21, %v9253_v27 }
 0x3d7   : > { %v2714_v18 = vmax.f32 %v2712_v8, %v2713_v29  ;;  %v2720_v56 = vrot.slane %v2719_v4, 2 }
 0x3d8   : > { %v2724_v13 = vsel %vm2709_vm8, %v2687_v2, -inf  ;;  %v2690_v26 = vadd.f32 %v6862_v22, %v2625_v3  ;;  %v6823_v28 = vpop.f32.mrb[28].mxu1  ;;  %v6863_v30 = vpop.f32.mrb[44].mxu0 }
 0x3d9   : > { %v2715_v11 = vrot.slane %v2714_v18, 1  ;;  %v2721_v32 = vmax.f32 %v2719_v4, %v2720_v56  ;;  %v2725_v63 = vrot.slane %v2724_v13, 4  ;;  %v6824_v51 = vpop.f32.mrb[29].mxu1  ;;  %v6864_v54 = vpop.f32.mrb[45].mxu0 }
 0x3da   : > { %v2731_v44 = vsel %vm2709_vm8, %v2690_v26, -inf  ;;  %v6825_v47 = vadd.f32 %v6824_v51, %v6823_v28  ;;  %v6865_v33 = vadd.f32 %v6864_v54, %v6863_v30  ;;  %v6826_v36 = vpop.f32.mrb[30].mxu1  ;;  %v6866_v39 = vpop.f32.mrb[46].mxu0 }
 0x3db   : > { %v2722_v41 = vrot.slane %v2721_v32, 1  ;;  %v2726_v45 = vmax.f32 %v2724_v13, %v2725_v63  ;;  %v2732_v48 = vrot.slane %v2731_v44, 4  ;;  %v6827_v50 = vpop.f32.mrb[31].mxu1  ;;  %v6867_v49 = vpop.f32.mrb[47].mxu0  ;;  %v2716_v38 = vmax.f32 %v2714_v18, %v2715_v11 }
 0x3dc   : > { %v2630_v15 = vadd.f32 %v6825_v47, %v9253_v27  ;;  %v6828_v46 = vadd.f32 %v6827_v50, %v6826_v36  ;;  %v6868_v34 = vadd.f32 %v6867_v49, %v6866_v39 }
 0x3dd   : > { %v2723_v0 = vmax.f32 %v2721_v32, %v2722_v41  ;;  %v2727_v7 = vrot.slane %v2726_v45, 2  ;;  %v2733_v1 = vmax.f32 %v2731_v44, %v2732_v48 }
 0x3de   : > { %v2695_v9 = vadd.f32 %v6865_v33, %v2630_v15  ;;  %v2633_v24 = vadd.f32 %v6828_v46, %v9253_v27 }
 0x3df   : > { %v2895_v52 = vsel %vm1045_vm0, %v2723_v0, %v2716_v38  ;;  %v2728_v23 = vmax.f32 %v2726_v45, %v2727_v7  ;;  %v2734_v53 = vrot.slane %v2733_v1, 2 }
 0x3e0   : > { %v2738_v10 = vsel %vm2709_vm8, %v2695_v9, -inf  ;;  %v2698_v60 = vadd.f32 %v6868_v34, %v2633_v24  ;;  %v6829_v55 = vpop.f32.mrb[32].mxu1  ;;  %v6869_v31 = vpop.f32.mrb[48].mxu0 }
 0x3e1   : > { %v2729_v37 = vrot.slane %v2728_v23, 1  ;;  %v2735_v61 = vmax.f32 %v2733_v1, %v2734_v53  ;;  %v2739_v62 = vrot.slane %v2738_v10, 4  ;;  %v6830_v17 = vpop.f32.mrb[33].mxu1  ;;  %v6870_v25 = vpop.f32.mrb[49].mxu0  ;;  %v2815_v53 = vld [vmem:[%s10334_s2 + $0x20] ss:$0 sm:$0xff] }
 0x3e2   : > { %v2745_v14 = vsel %vm2709_vm8, %v2698_v60, -inf  ;;  %v6831_v42 = vadd.f32 %v6830_v17, %v6829_v55  ;;  %v6871_v35 = vadd.f32 %v6870_v25, %v6869_v31  ;;  %v6832_v58 = vpop.f32.mrb[34].mxu1  ;;  %v6872_v8 = vpop.f32.mrb[50].mxu0 }
 0x3e3   : > { %v2730_v12 = vmax.f32 %v2728_v23, %v2729_v37  ;;  %v2736_v16 = vrot.slane %v2735_v61, 1  ;;  %v2740_v19 = vmax.f32 %v2738_v10, %v2739_v62  ;;  %v2746_v20 = vrot.slane %v2745_v14, 4  ;;  %v6833_v21 = vpop.f32.mrb[35].mxu1  ;;  %v6873_v22 = vpop.f32.mrb[51].mxu0 }
 0x3e4   : > { %v2638_v29 = vadd.f32 %v6831_v42, %v9253_v27  ;;  %v6834_v4 = vadd.f32 %v6833_v21, %v6832_v58  ;;  %v6874_v2 = vadd.f32 %v6873_v22, %v6872_v8  ;;  %v2920_v34 = vpop.xlane.xlu0 %2919  ;;  %v2948_v21 = vld [vmem:[%s10339_s7 + $0x10] sm:$0xff] }
 0x3e5   : > { %v2896_v3 = vsel %vm1047_vm1, %v2730_v12, %v2895_v52  ;;  %v2737_v18 = vmax.f32 %v2735_v61, %v2736_v16  ;;  %v2741_v56 = vrot.slane %v2740_v19, 2  ;;  %v2747_v13 = vmax.f32 %v2745_v14, %v2746_v20  ;;  %v2947_v12 = vld [vmem:[%s10339_s7 + $0x8] sm:$0xff]  ;;  %v2949_v16 = vld [vmem:[%s10339_s7 + $0x18] sm:$0xff]  ;;  %v2946_v20 = vld [vmem:[%s10339_s7] sm:$0xff] }
 0x3e6   : > { %v2703_v26 = vadd.f32 %v6871_v35, %v2638_v29  ;;  %v2641_v28 = vadd.f32 %v6834_v4, %v9253_v27  ;;  %v2923_v1 = vmul.f32 0.015625, %v2920_v34  ;;  %v7328_v22 = vpack.c.bf16 %v2948_v21, %v2946_v20  ;;  %v2951_v29 = vld [vmem:[%s10339_s7 + $0x28] sm:$0xff]  ;;  %v2953_v4 = vld [vmem:[%s10339_s7 + $0x38] sm:$0xff]  ;;  %v2913_v34 = vld [vmem:[%s10334_s2 + $0x42] ss:$0 sm:$0xff] }
 0x3e7   : > { %v2742_v30 = vmax.f32 %v2740_v19, %v2741_v56  ;;  %v2748_v11 = vrot.slane %v2747_v13, 2  ;;  %v2897_v32 = vsel %vm1049_vm2, %v2737_v18, %v2896_v3  ;;  %v7326_v19 = vpack.c.bf16 %v2949_v16, %v2947_v12  ;;  %v2950_v3 = vld [vmem:[%s10339_s7 + $0x20] sm:$0xff]  ;;  %v2952_v18 = vld [vmem:[%s10339_s7 + $0x30] sm:$0xff] }
 0x3e8   : > { %v2752_v63 = vsel %vm2709_vm8, %v2703_v26, -inf  ;;  %v2706_v51 = vadd.f32 %v6874_v2, %v2641_v28  ;;  %v2882_v54 = vpop.f32.mrb[36].mxu1  ;;  %v2925_v10 = vsub.f32 %v9050_v6, %v2923_v1  ;;  %v7330_v2 = vpack.c.bf16 %v2953_v4, %v2951_v29  ;;  %v2957_v26 = vld [vmem:[%s10339_s7 + $0x58] sm:$0xff]  ;;  %v2954_v28 = vld [vmem:[%s10339_s7 + $0x40] sm:$0xff] }
 0x3e9   : > { %v2743_v44 = vrot.slane %v2742_v30, 1  ;;  %v2749_v47 = vmax.f32 %v2747_v13, %v2748_v11  ;;  %v2753_v33 = vrot.slane %v2752_v63, 4  ;;  %v7133_v36 = vpop.f32.mrb[37].mxu1  ;;  %v9281_v31 = vadd.f32 %v2882_v54, %v2815_v53  ;;  %7327 = vmatprep.subr.bf16.mxu1 %v7326_v19  ;;  %v2955_v13 = vld [vmem:[%s10339_s7 + $0x48] sm:$0xff]  ;;  %v2956_v11 = vld [vmem:[%s10339_s7 + $0x50] sm:$0xff] }
 0x3ea   : > { %v2759_v39 = vsel %vm2709_vm8, %v2706_v51, -inf  ;;  %v2927_v62 = vmul.f32 %v2925_v10, %v2925_v10  ;;  %7329 = vmatpush1.bf16.msra.mxu1 %v7328_v22  ;;  %v7332_v56 = vpack.c.bf16 %v2952_v18, %v2950_v3  ;;  %v7336_v51 = vpack.c.bf16 %v2956_v11, %v2954_v28  ;;  %v3045_v28 = vld [vmem:[%s10340_s8] sm:$0xff] }
 0x3eb   : > { %v2744_v41 = vmax.f32 %v2742_v30, %v2743_v44  ;;  %v2750_v45 = vrot.slane %v2749_v47, 1  ;;  %v2754_v48 = vmax.f32 %v2752_v63, %v2753_v33  ;;  %v2760_v50 = vrot.slane %v2759_v39, 4  ;;  %7331 = vmatprep.subr.bf16.mxu1 %v7330_v2  ;;  %v2961_v63 = vld [vmem:[%s10339_s7 + $0x78] sm:$0xff]  ;;  %v2958_v44 = vld [vmem:[%s10339_s7 + $0x60] sm:$0xff] }
 0x3ec   : > { %v2931_v25 = vsel %vm2709_vm8, %v2927_v62, 0.0  ;;  %v7334_v30 = vpack.c.bf16 %v2957_v26, %v2955_v13 }
 0x3ed   : > { %v2751_v49 = vmax.f32 %v2749_v47, %v2750_v45  ;;  %v2755_v27 = vrot.slane %v2754_v48, 2  ;;  %v2761_v15 = vmax.f32 %v2759_v39, %v2760_v50  ;;  %v2898_v46 = vsel %vm1051_vm3, %v2744_v41, %v2897_v32  ;;  %v2959_v32 = vld [vmem:[%s10339_s7 + $0x68] sm:$0xff]  ;;  %v2960_v47 = vld [vmem:[%s10339_s7 + $0x70] sm:$0xff] }
 0x3ee   : > { %7333 = vmatpush1.bf16.msra.mxu1 %v7332_v56  ;;  %v7338_v54 = vpack.c.bf16 %v2961_v63, %v2959_v32  ;;  %v7340_v33 = vpack.c.bf16 %v2960_v47, %v2958_v44 }
 0x3ef   : > { %v2756_v38 = vmax.f32 %v2754_v48, %v2755_v27  ;;  %v2762_v0 = vrot.slane %v2761_v15, 2  ;;  %v2899_v7 = vsel %vm1053_vm4, %v2751_v49, %v2898_v46  ;;  %7335 = vmatprep.subr.bf16.mxu1 %v7334_v30  ;;  %v3046_v30 = vld [vmem:[%s10340_s8 + $0x8] sm:$0xff] }
 0x3f0   : > { %v7366_v11 = vpack.c.bf16 %v3046_v30, %v3045_v28 }
 0x3f1   : > { %v2757_v9 = vrot.slane %v2756_v38, 1  ;;  %v2763_v24 = vmax.f32 %v2761_v15, %v2762_v0  ;;  %v2914_v0 = vld [vmem:[%s10334_s2 + $0x43] ss:$0 sm:$0xff] }
 0x3f2   : > { %7337 = vmatpush1.bf16.msra.mxu1 %v7336_v51  ;;  %7367 = vmatprep.subr.bf16.mxu0 %v7366_v11 }
 0x3f3   : > { %v2758_v52 = vmax.f32 %v2756_v38, %v2757_v9  ;;  %v2764_v23 = vrot.slane %v2763_v24, 1  ;;  %7339 = vmatprep.subr.bf16.mxu1 %v7338_v54  ;;  %7369 = vmatpush3.bf16.msra.mxu0 %v7366_v11 }
 0x3f5   : > { %v2765_v60 = vmax.f32 %v2763_v24, %v2764_v23  ;;  %v2900_v55 = vsel %vm1055_vm5, %v2758_v52, %v2899_v7 }
 0x3f6   : > { %7341 = vmatpush1.bf16.msra.mxu1 %v7340_v33 }
 0x3f7   : > { %v2901_v37 = vsel %vm1057_vm6, %v2765_v60, %v2900_v55 }
 0x3f8   : > { %v9285_v61 = vadd.f32 %v2901_v37, %v9281_v31 }
 0x3fa   : > { %v2915_v17 = vsel %vm2709_vm8, %v9285_v61, 0.0 }
 0x3fb   : > { %2916 = vadd.xlane.f32.xlu1 %v2915_v17 }
 0x3ff   : > { %2932 = vadd.xlane.f32.xlu1 %v2931_v25  ;;  %v6697_v25 = vld [vmem:[%s10340_s8 + $0x40] sm:$0xff] }
 0x488   : > { %v2917_v14 = vpop.xlane.xlu1 %2916 }
 0x489   : > { %v2922_v42 = vmul.f32 0.015625, %v2917_v14 }
 0x48b   : > { %v2924_v35 = vsub.f32 %v9285_v61, %v2922_v42  ;;  %v2908_v42 = vand.u32 127, %v651_v43 }
 0x48c   : > { %v2933_v36 = vpop.xlane.xlu1 %2932 }
 0x48d   : > { %v2926_v58 = vmul.f32 %v2924_v35, %v2924_v35  ;;  %v2935_v39 = vmul.f32 0.015625, %v2933_v36  ;;  %vm2909_vm12 = vcmp.le.s32.totalorder %v2908_v42, 8 }
 0x48f   : > { %v2928_v8 = vsel %vm2709_vm8, %v2926_v58, 0.0  ;;  %v2937_v41 = vadd.f32 1e-05, %v2935_v39 }
 0x490   : > { %2929 = vadd.xlane.f32.xlu0 %v2928_v8 }
 0x491   : > { %8037 = vrsqrt.f32 %v2937_v41 }
 0x49b   : > { %v8038_v49 = vpop.eup %8037 }
 0x49c   : > { %v2941_v46 = vmul.f32 %v8038_v49, %v2925_v10 }
 0x49e   : > { %v2943_v1 = vmul.f32 %v2941_v46, %v2913_v34 }
 0x4a0   : > { %v2945_v9 = vadd.f32 %v2943_v1, %v2914_v0 }
 0x51d   : > { %v2930_v45 = vpop.xlane.xlu0 %2929 }
 0x51e   : > { %v2934_v48 = vmul.f32 0.015625, %v2930_v45 }
 0x520   : > { %v2936_v50 = vadd.f32 1e-05, %v2934_v48 }
 0x522   : > { %8039 = vrsqrt.f32 %v2936_v50 }
 0x52c   : > { %v8040_v27 = vpop.eup %8039 }
 0x52d   : > { %v2940_v15 = vmul.f32 %v8040_v27, %v2924_v35  ;;  %v8210_v35 = vmov -1e+09  }
 0x52e   : > { %v9380_v58 = vsel %vm2909_vm12, 0.0, %v8210_v35 }
 0x52f   : > { %v2942_v38 = vmul.f32 %v2940_v15, %v2913_v34 }
 0x531   : > { %v2944_v7 = vadd.f32 %v2942_v38, %v2914_v0 }
 0x533   : > { %6642 = vmatmul.mubr.msk.f32.vlgmr.msra.gmra.mrb[38].mxu1 %vm2709_vm8, %v2944_v7 }
 0x534   : > { %3038 = vmatprep.mubr.f32.mxu1 %v8207_v40 }
 0x537   : > { %6643 = vmatmul.mubr.msk.f32.gmra.mrb[40].mxu1 %vm2709_vm8, %v2945_v9 }
 0x606   : > { %v9349_v24 = vpop.f32.mrb[38].mxu1 }
 0x607   : > { %v3036_v52 = vpop.f32.mrb[39].mxu1  ;;  %7138 = vmatprep.mubr.msk.f32.mxu1 %vm3059_vm10, %v9349_v24 }
 0x60a   : > { %v9353_v23 = vpop.f32.mrb[40].mxu1 }
 0x60b   : > { %v3042_v53 = vpop.f32.mrb[41].mxu1  ;;  %v9357_v10 = vpack.i.bf16 %v9353_v23, %v9349_v24 }
 0x60c   : > { %v7348_v60 = vpack.c.bf16 %v3042_v53, %v3036_v52  ;;  %v9359_v55 = vpack.i.bf16 %v3042_v53, %v3036_v52 }
 0x60d   : > { %7717 = vrot.lane.b32.xlu0 %v9357_v10, %s10355_s1 }
 0x611   : > { %3246 = vrot.lane.b32.xlu0 %v9349_v24, %s10353_s15 }
 0x615   : > { %3248 = vrot.lane.b32.xlu0 %v9353_v23, %s10353_s15 }
 0x67f   : > { %v7718_v37 = vpop.permute.xlu0 %7717 }
 0x680   : > { %v7720_v62 = vunpack.i.h.bf16 %v7718_v37  ;;  %v7719_v17 = vunpack.i.l.bf16 %v7718_v37 }
 0x682   : > { %v7342_v14 = vpack.c.bf16 %v7720_v62, %v7719_v17 }
 0x683   : > { %v3247_v45 = vpop.permute.xlu0 %3246 }
 0x684   : > { %7344 = vmatprep.subr.msk.bf16.mxu1 %vm9369_vm11, %v7342_v14 }
 0x685   : > { %7347 = vmatpush3.bf16.xpose.msk.msra.mxu1 %vm9369_vm11, %v7342_v14 }
 0x686   : > { %7349 = vmatprep.subr.bf16.mxu1 %v7348_v60 }
 0x687   : > { %v3249_v48 = vpop.permute.xlu0 %3248 }
 0x68c   : > { %7139 = vmatmul.mubr.msk.f32.vlgmr.msra.gmra.mrb[42].mxu1 %vm3059_vm10, %v9353_v23 }
 0x68d   : > { %7351 = vmatpush3.bf16.msra.mxu1 %v7348_v60 }
 0x75f   : > { %v7140_v8 = vpop.f32.mrb[42].mxu1 }
 0x760   : > { %v3134_v12 = vpop.f32.mrb[43].mxu1  ;;  %v3140_v19 = vadd.f32 %v7140_v8, %v9380_v58  ;;  %v3047_v8 = vld [vmem:[%s10340_s8 + $0x10] sm:$0xff] }
 0x761   : > { %v3135_v16 = vadd.f32 %v3134_v12, %v9380_v58  ;;  %v3048_v12 = vld [vmem:[%s10340_s8 + $0x18] sm:$0xff] }
 0x762   : > { %v3146_v21 = vsel %vm3059_vm10, %v3140_v19, -inf }
 0x763   : > { %v3143_v20 = vsel %vm3059_vm10, %v3135_v16, -inf }
 0x764   : > { %3144 = vmax.xlane.f32.xlu1 %v3143_v20 }
 0x768   : > { %3147 = vmax.xlane.f32.xlu1 %v3146_v21 }
 0x7f1   : > { %v3145_v22 = vpop.xlane.xlu1 %3144 }
 0x7f2   : > { %v3149_v29 = vsub.f32 %v3135_v16, %v3145_v22 }
 0x7f4   : > { %v3151_v2 = vmul.f32 1.442695, %v3149_v29 }
 0x7f5   : > { %v3148_v4 = vpop.xlane.xlu1 %3147 }
 0x7f6   : > { %v3150_v43 = vsub.f32 %v3140_v19, %v3148_v4 }
 0x7f8   : > { %v3153_v3 = vmul.f32 1.442695, %v3150_v43 }
 0x7fa   : > { %8041 = vpow2.f32 %v3153_v3 }
 0x7fb   : > { %8043 = vpow2.f32 %v3151_v2 }
 0x804   : > { %v8042_v18 = vpop.eup %8041 }
 0x805   : > { %v3158_v56 = vsel %vm3059_vm10, %v8042_v18, 0.0  ;;  %v8044_v13 = vpop.eup %8043 }
 0x806   : > { %3159 = vadd.xlane.f32.xlu1 %v3158_v56  ;;  %v3155_v26 = vsel %vm3059_vm10, %v8044_v13, 0.0 }
 0x80a   : > { %3156 = vadd.xlane.f32.xlu1 %v3155_v26 }
 0x81b   : > { %7722 = vrot.lane.b32.xlu1 %v9357_v10, %s8211_s16 }
 0x893   : > { %v3160_v32 = vpop.xlane.xlu1 %3159 }
 0x894   : > { %8045 = vrcp.f32 %v3160_v32 }
 0x897   : > { %v3157_v63 = vpop.xlane.xlu1 %3156 }
 0x898   : > { %8047 = vrcp.f32 %v3157_v63 }
 0x89b   : > { %v7723_v51 = vpop.permute.xlu1 %7722 }
 0x89c   : > { %v7725_v54 = vunpack.i.h.bf16 %v7723_v51  ;;  %v7724_v44 = vunpack.i.l.bf16 %v7723_v51 }
 0x89e   : > { %v7352_v47 = vpack.c.bf16 %v7725_v54, %v7724_v44  ;;  %v8046_v33 = vpop.eup %8045 }
 0x89f   : > { %v3164_v41 = vmul.f32 %v8046_v33, %v8042_v18 }
 0x8a0   : > { %7354 = vmatprep.subr.msk.bf16.mxu1 %vm9369_vm11, %v7352_v47 }
 0x8a2   : > { %v8048_v36 = vpop.eup %8047 }
 0x8a3   : > { %v3163_v39 = vmul.f32 %v8048_v36, %v8044_v13 }
 0x8a5   : > { %7145 = vmatprep.mubr.msk.f32.mxu1 %vm3059_vm10, %v3163_v39 }
 0x8a6   : > { %7146 = vmatmul.mubr.msk.f32.vlgmr.msra.gmra.mrb[44].mxu1 %vm3059_vm10, %v3164_v41 }
 0x8a7   : > { %7357 = vmatpush3.bf16.xpose.msk.msra.mxu1 %vm9369_vm11, %v7352_v47  ;;  %7152 = vmatprep.mubr.msk.f32.mxu1 %vm3059_vm10, %v3247_v45 }
 0x8ae   : > { %7153 = vmatmul.mubr.msk.f32.vlgmr.msra.gmra.mrb[46].mxu1 %vm3059_vm10, %v3249_v48 }
 0x979   : > { %v7147_v50 = vpop.f32.mrb[44].mxu1 }
 0x97a   : > { %v3237_v49 = vpop.f32.mrb[45].mxu1 }
 0x97b   : > { %7173 = vmatprep.mubr.msk.f32.mxu0 %vm3059_vm10, %v3237_v49 }
 0x97c   : > { %7174 = vmatmul.mubr.msk.f32.vlgmr.msra.gmra.mrb[52].mxu0 %vm3059_vm10, %v7147_v50 }
 0x981   : > { %v7154_v27 = vpop.f32.mrb[46].mxu1 }
 0x982   : > { %v3334_v15 = vadd.f32 %v7154_v27, %v9380_v58  ;;  %v3328_v46 = vpop.f32.mrb[47].mxu1 }
 0x983   : > { %v3329_v34 = vadd.f32 %v3328_v46, %v9380_v58 }
 0x984   : > { %v3340_v38 = vsel %vm3059_vm10, %v3334_v15, -inf }
 0x985   : > { %3341 = vmax.xlane.f32.xlu1 %v3340_v38  ;;  %v3337_v0 = vsel %vm3059_vm10, %v3329_v34, -inf }
 0x986   : > { %3338 = vmax.xlane.f32.xlu0 %v3337_v0 }
 0x996   : > { %7732 = vrot.lane.b32.xlu1 %v9357_v10, %s10352_s22  ;;  %s10366_s22 = smov 64  }
 0x99a   : > { %3610 = vrot.lane.b32.xlu1 %v9349_v24, %s10350_s23 }
 0x99e   : > { %7737 = vrot.lane.b32.xlu1 %v9357_v10, %s10349_s30  ;;  %s444_s30 = sand.u32 1, %s8191_s26  }
 0x99f   : > { %s6378_s20 = scalar_lea.sflag [#allocation3], %s444_s30 }
 0x9a2   : > { %3895 = vrot.lane.b32.xlu1 %v9353_v23, %s10347_s27 }
 0xa12   : > { %v3342_v7 = vpop.xlane.xlu1 %3341 }
 0xa13   : > { %v3344_v1 = vsub.f32 %v3334_v15, %v3342_v7  ;;  %v3339_v9 = vpop.xlane.xlu0 %3338 }
 0xa14   : > { %v3343_v52 = vsub.f32 %v3329_v34, %v3339_v9 }
 0xa15   : > { %v3347_v53 = vmul.f32 1.442695, %v3344_v1 }
 0xa16   : > { %v3345_v60 = vmul.f32 1.442695, %v3343_v52  ;;  %v7733_v21 = vpop.permute.xlu1 %7732 }
 0xa17   : > { %8049 = vpow2.f32 %v3347_v53  ;;  %v7735_v29 = vunpack.i.h.bf16 %v7733_v21  ;;  %v7734_v4 = vunpack.i.l.bf16 %v7733_v21 }
 0xa18   : > { %8051 = vpow2.f32 %v3345_v60 }
 0xa19   : > { %v7370_v3 = vpack.c.bf16 %v7735_v29, %v7734_v4 }
 0xa1a   : > { %v3611_v18 = vpop.permute.xlu1 %3610 }
 0xa1e   : > { %v7738_v56 = vpop.permute.xlu1 %7737 }
 0xa1f   : > { %v7740_v13 = vunpack.i.h.bf16 %v7738_v56  ;;  %v7739_v26 = vunpack.i.l.bf16 %v7738_v56 }
 0xa21   : > { %v8050_v37 = vpop.eup %8049  ;;  %v7384_v11 = vpack.c.bf16 %v7740_v13, %v7739_v26 }
 0xa22   : > { %v3352_v62 = vsel %vm3059_vm10, %v8050_v37, 0.0  ;;  %v8052_v17 = vpop.eup %8051  ;;  %v3896_v51 = vpop.permute.xlu1 %3895 }
 0xa23   : > { %3353 = vadd.xlane.f32.xlu0 %v3352_v62  ;;  %v3349_v14 = vsel %vm3059_vm10, %v8052_v17, 0.0 }
 0xa27   : > { %3350 = vadd.xlane.f32.xlu0 %v3349_v14 }
 0xa3d   : > { %7727 = vrot.lane.b32.xlu0 %v9359_v55, %s10353_s15 }
 0xa41   : > { %3612 = vrot.lane.b32.xlu0 %v9353_v23, %s10350_s23  ;;  %v7362_v23 = vpack.c.bf16 %v3048_v12, %v3047_v8 }
 0xa45   : > { %3893 = vrot.lane.b32.xlu0 %v9349_v24, %s10347_s27 }
 0xab0   : > { %v3354_v10 = vpop.xlane.xlu0 %3353 }
 0xab1   : > { %8053 = vrcp.f32 %v3354_v10  ;;  %v3049_v10 = vld [vmem:[%s10340_s8 + $0x20] sm:$0xff] }
 0xab4   : > { %v3351_v42 = vpop.xlane.xlu0 %3350 }
 0xab5   : > { %8055 = vrcp.f32 %v3351_v42  ;;  %v3050_v42 = vld [vmem:[%s10340_s8 + $0x28] sm:$0xff] }
 0xab8   : > { %v7728_v35 = vpop.permute.xlu0 %7727 }
 0xab9   : > { %v7730_v16 = vunpack.i.h.bf16 %v7728_v35  ;;  %v7729_v19 = vunpack.i.l.bf16 %v7728_v35  ;;  %v7380_v35 = vpack.c.bf16 %v3050_v42, %v3049_v10  ;;  %v4214_v10 = vld [vmem:[%s10341_s9 + $0x8] sm:$0xff]  ;;  %v4216_v42 = vld [vmem:[%s10341_s9 + $0x18] sm:$0xff] }
 0xabb   : > { %v7358_v20 = vpack.c.bf16 %v7730_v16, %v7729_v19  ;;  %v8054_v24 = vpop.eup %8053 }
 0xabc   : > { %v3358_v2 = vmul.f32 %v8054_v24, %v8050_v37  ;;  %v3613_v32 = vpop.permute.xlu0 %3612 }
 0xabd   : > { %7359 = vmatprep.subr.bf16.mxu1 %v7358_v20 }
 0xabe   : > { %7361 = vmatpush3.bf16.msra.mxu1 %v7358_v20 }
 0xabf   : > { %v8056_v22 = vpop.eup %8055  ;;  %7363 = vmatprep.subr.bf16.mxu1 %v7362_v23 }
 0xac0   : > { %v3357_v43 = vmul.f32 %v8056_v22, %v8052_v17  ;;  %v3894_v63 = vpop.permute.xlu0 %3893 }
 0xac2   : > { %7159 = vmatprep.mubr.msk.f32.mxu1 %vm3059_vm10, %v3357_v43 }
 0xac3   : > { %7160 = vmatmul.mubr.msk.f32.vlgmr.msra.gmra.mrb[48].mxu1 %vm3059_vm10, %v3358_v2 }
 0xac4   : > { %7365 = vmatpush3.bf16.msra.mxu1 %v7362_v23 }
 0xac5   : > { %7372 = vmatprep.subr.msk.bf16.mxu1 %vm9369_vm11, %v7370_v3 }
 0xb96   : > { %v7161_v28 = vpop.f32.mrb[48].mxu1 }
 0xb97   : > { %v3439_v30 = vpop.f32.mrb[49].mxu1 }
 0xb98   : > { %7166 = vmatprep.mubr.msk.f32.mxu1 %vm3059_vm10, %v3439_v30 }
 0xb99   : > { %7167 = vmatmul.mubr.msk.f32.vlgmr.msra.gmra.mrb[50].mxu1 %vm3059_vm10, %v7161_v28 }
 0xb9a   : > { %7375 = vmatpush3.bf16.xpose.msk.msra.mxu1 %vm9369_vm11, %v7370_v3  ;;  %7180 = vmatprep.mubr.msk.f32.mxu1 %vm3059_vm10, %v3611_v18 }
 0xb9b   : > { %7386 = vmatprep.subr.msk.bf16.mxu1 %vm9369_vm11, %v7384_v11 }
 0xba1   : > { %7181 = vmatmul.mubr.msk.f32.vlgmr.msra.gmra.mrb[52].mxu1 %vm3059_vm10, %v3613_v32 }
 0xba2   : > { %7389 = vmatpush3.bf16.xpose.msk.msra.mxu1 %vm9369_vm11, %v7384_v11  ;;  %7201 = vmatprep.mubr.msk.f32.mxu1 %vm3059_vm10, %v3894_v63  ;;  %v3051_v63 = vld [vmem:[%s10340_s8 + $0x30] sm:$0xff] }
 0xba9   : > { %7202 = vmatmul.mubr.msk.f32.vlgmr.msra.gmra.mrb[54].mxu1 %vm3059_vm10, %v3896_v51  ;;  %v3052_v51 = vld [vmem:[%s10340_s8 + $0x38] sm:$0xff] }
 0xbaa   : > { %4312 = vmatprep.mubr.f32.mxu1 %v8207_v40 }
 0xc6c   : > { %v9449_v54 = vpop.f32.mrb[50].mxu1 }
 0xc6d   : > { %v9451_v44 = vpop.f32.mrb[51].mxu1 }
 0xc74   : > { %v7182_v47 = vpop.f32.mrb[52].mxu1 }
 0xc75   : > { %v3698_v33 = vadd.f32 %v7182_v47, %v9380_v58  ;;  %v3692_v36 = vpop.f32.mrb[53].mxu1 }
 0xc76   : > { %v3693_v39 = vadd.f32 %v3692_v36, %v9380_v58 }
 0xc77   : > { %v3704_v41 = vsel %vm3059_vm10, %v3698_v33, -inf }
 0xc78   : > { %3705 = vmax.xlane.f32.xlu1 %v3704_v41  ;;  %v3701_v45 = vsel %vm3059_vm10, %v3693_v39, -inf }
 0xc79   : > { %3702 = vmax.xlane.f32.xlu0 %v3701_v45 }
 0xc7c   : > { %v7203_v48 = vpop.f32.mrb[54].mxu1 }
 0xc7d   : > { %v3975_v50 = vpop.f32.mrb[55].mxu1  ;;  %v3981_v62 = vadd.f32 %v7203_v48, %v9380_v58 }
 0xc7f   : > { %v3987_v14 = vsel %vm3059_vm10, %v3981_v62, -inf }
 0xc89   : > { %7742 = vrot.lane.b32.xlu1 %v9359_v55, %s10350_s23 }
 0xc8d   : > { %7747 = vrot.lane.b32.xlu1 %v9359_v55, %s10347_s27  ;;  %v3976_v55 = vadd.f32 %v3975_v50, %v9380_v58 }
 0xc8f   : > { %v3984_v17 = vsel %vm3059_vm10, %v3976_v55, -inf }
 0xd05   : > { %v3706_v49 = vpop.xlane.xlu1 %3705 }
 0xd06   : > { %v3708_v27 = vsub.f32 %v3698_v33, %v3706_v49  ;;  %v3703_v15 = vpop.xlane.xlu0 %3702 }
 0xd07   : > { %v3707_v46 = vsub.f32 %v3693_v39, %v3703_v15  ;;  %v7394_v39 = vpack.c.bf16 %v3052_v51, %v3051_v63  ;;  %v4176_v15 = vld [vmem:[%s10334_s2 + $0x46] ss:$0 sm:$0xff]  ;;  %v4378_v63 = vld [vmem:[%s10342_s10 + $0x88] sm:$0xff] }
 0xd08   : > { %v3711_v34 = vmul.f32 1.442695, %v3708_v27  ;;  %v4361_v51 = vld [vmem:[%s10342_s10] sm:$0xff] }
 0xd09   : > { %v3709_v38 = vmul.f32 1.442695, %v3707_v46  ;;  %v7743_v0 = vpop.permute.xlu1 %7742 }
 0xd0a   : > { %v7745_v7 = vunpack.i.h.bf16 %v7743_v0  ;;  %v7744_v1 = vunpack.i.l.bf16 %v7743_v0 }
 0xd0b   : > { %8057 = vpow2.f32 %v3709_v38 }
 0xd0c   : > { %v7376_v9 = vpack.c.bf16 %v7745_v7, %v7744_v1  ;;  %8059 = vpow2.f32 %v3711_v34 }
 0xd0d   : > { %v7748_v23 = vpop.permute.xlu1 %7747 }
 0xd0e   : > { %7377 = vmatprep.subr.bf16.mxu0 %v7376_v9  ;;  %v7750_v4 = vunpack.i.h.bf16 %v7748_v23  ;;  %v7749_v43 = vunpack.i.l.bf16 %v7748_v23 }
 0xd0f   : > { %7379 = vmatpush3.bf16.msra.mxu0 %v7376_v9 }
 0xd10   : > { %7381 = vmatprep.subr.bf16.mxu0 %v7380_v35  ;;  %v7390_v56 = vpack.c.bf16 %v7750_v4, %v7749_v43  ;;  %v4224_v4 = vld [vmem:[%s10341_s9 + $0x58] sm:$0xff] }
 0xd15   : > { %v8058_v52 = vpop.eup %8057 }
 0xd16   : > { %v3713_v53 = vsel %vm3059_vm10, %v8058_v52, 0.0  ;;  %v8060_v60 = vpop.eup %8059 }
 0xd17   : > { %3714 = vadd.xlane.f32.xlu0 %v3713_v53  ;;  %v3716_v37 = vsel %vm3059_vm10, %v8060_v60, 0.0 }
 0xd1b   : > { %3717 = vadd.xlane.f32.xlu0 %v3716_v37 }
 0xd1f   : > { %3985 = vmax.xlane.f32.xlu0 %v3984_v17 }
 0xd23   : > { %3988 = vmax.xlane.f32.xlu0 %v3987_v14 }
 0xda4   : > { %v3715_v8 = vpop.xlane.xlu0 %3714 }
 0xda5   : > { %8061 = vrcp.f32 %v3715_v8  ;;  %v4213_v8 = vld [vmem:[%s10341_s9] sm:$0xff] }
 0xda8   : > { %v3718_v12 = vpop.xlane.xlu0 %3717 }
 0xda9   : > { %8063 = vrcp.f32 %v3718_v12  ;;  %v4215_v12 = vld [vmem:[%s10341_s9 + $0x10] sm:$0xff] }
 0xdac   : > { %v3986_v16 = vpop.xlane.xlu0 %3985 }
 0xdad   : > { %v3990_v19 = vsub.f32 %v3976_v55, %v3986_v16  ;;  %v7400_v16 = vpack.c.bf16 %v4215_v12, %v4213_v8  ;;  %v4383_v8 = vld [vmem:[%s10342_s10 + $0xb0] sm:$0xff]  ;;  %v4384_v12 = vld [vmem:[%s10342_s10 + $0xb8] sm:$0xff] }
 0xdaf   : > { %v8062_v20 = vpop.eup %8061  ;;  %v3992_v21 = vmul.f32 1.442695, %v3990_v19  ;;  %v4218_v19 = vld [vmem:[%s10341_s9 + $0x28] sm:$0xff] }
 0xdb0   : > { %v3989_v24 = vpop.xlane.xlu0 %3988  ;;  %v3721_v22 = vmul.f32 %v8062_v20, %v8058_v52  ;;  %v4220_v20 = vld [vmem:[%s10341_s9 + $0x38] sm:$0xff] }
 0xdb1   : > { %8065 = vpow2.f32 %v3992_v21  ;;  %v3991_v29 = vsub.f32 %v3981_v62, %v3989_v24  ;;  %v7402_v23 = vpack.c.bf16 %v4220_v20, %v4218_v19  ;;  %v4217_v21 = vld [vmem:[%s10341_s9 + $0x20] sm:$0xff]  ;;  %v4219_v24 = vld [vmem:[%s10341_s9 + $0x30] sm:$0xff]  ;;  %v7426_v19 = vpack.c.bf16 %v4384_v12, %v4383_v8  ;;  %v4368_v20 = vld [vmem:[%s10342_s10 + $0x38] sm:$0xff] }
 0xdb2   : > { %7187 = vmatprep.mubr.msk.f32.mxu0 %vm3059_vm10, %v3721_v22  ;;  %v7404_v22 = vpack.c.bf16 %v4219_v24, %v4217_v21  ;;  %v4386_v21 = vld [vmem:[%s10342_s10 + $0xc8] sm:$0xff] }
 0xdb3   : > { %v8064_v2 = vpop.eup %8063  ;;  %v3994_v3 = vmul.f32 1.442695, %v3991_v29  ;;  %v4222_v29 = vld [vmem:[%s10341_s9 + $0x48] sm:$0xff] }
 0xdb4   : > { %v3722_v18 = vmul.f32 %v8064_v2, %v8060_v60  ;;  %v7406_v43 = vpack.c.bf16 %v4224_v4, %v4222_v29  ;;  %v4221_v2 = vld [vmem:[%s10341_s9 + $0x40] sm:$0xff]  ;;  %v4370_v4 = vld [vmem:[%s10342_s10 + $0x48] sm:$0xff] }
 0xdb5   : > { %8067 = vpow2.f32 %v3994_v3  ;;  %v4223_v3 = vld [vmem:[%s10341_s9 + $0x50] sm:$0xff]  ;;  %v4369_v29 = vld [vmem:[%s10342_s10 + $0x40] sm:$0xff] }
 0xdb6   : > { %7188 = vmatmul.mubr.msk.f32.vlgmr.msra.gmra.mrb[54].mxu0 %vm3059_vm10, %v3722_v18  ;;  %v4226_v18 = vld [vmem:[%s10341_s9 + $0x68] sm:$0xff] }
 0xdb7   : > { %7383 = vmatpush3.bf16.msra.mxu0 %v7380_v35  ;;  %v7398_v35 = vpack.c.bf16 %v4216_v42, %v4214_v10  ;;  %v4365_v10 = vld [vmem:[%s10342_s10 + $0x20] sm:$0xff]  ;;  %v4366_v42 = vld [vmem:[%s10342_s10 + $0x28] sm:$0xff] }
 0xdb8   : > { %7391 = vmatprep.subr.bf16.mxu0 %v7390_v56 }
 0xdb9   : > { %7399 = vmatprep.subr.bf16.mxu1 %v7398_v35  ;;  %v7424_v35 = vpack.c.bf16 %v4366_v42, %v4365_v10 }
 0xdba   : > { %7401 = vmatpush1.bf16.msra.mxu1 %v7400_v16  ;;  %v4367_v16 = vld [vmem:[%s10342_s10 + $0x30] sm:$0xff] }
 0xdbb   : > { %v8066_v13 = vpop.eup %8065  ;;  %7403 = vmatprep.subr.bf16.mxu1 %v7402_v23  ;;  %v4385_v23 = vld [vmem:[%s10342_s10 + $0xc0] sm:$0xff]  ;;  %v7428_v24 = vpack.c.bf16 %v4368_v20, %v4367_v16 }
 0xdbc   : > { %v3996_v26 = vsel %vm3059_vm10, %v8066_v13, 0.0 }
 0xdbd   : > { %3997 = vadd.xlane.f32.xlu0 %v3996_v26  ;;  %v4225_v26 = vld [vmem:[%s10341_s9 + $0x60] sm:$0xff] }
 0xdbe   : > { %7405 = vmatpush1.bf16.msra.mxu1 %v7404_v22  ;;  %v7430_v22 = vpack.c.bf16 %v4386_v21, %v4385_v23 }
 0xdbf   : > { %v8068_v28 = vpop.eup %8067  ;;  %7407 = vmatprep.subr.bf16.mxu1 %v7406_v43  ;;  %v4387_v43 = vld [vmem:[%s10342_s10 + $0xd0] sm:$0xff] }
 0xdc0   : > { %v3999_v30 = vsel %vm3059_vm10, %v8068_v28, 0.0 }
 0xdc1   : > { %4000 = vadd.xlane.f32.xlu0 %v3999_v30 }
 0xe4a   : > { %v3998_v11 = vpop.xlane.xlu0 %3997 }
 0xe4b   : > { %8069 = vrcp.f32 %v3998_v11 }
 0xe4e   : > { %v4001_v32 = vpop.xlane.xlu0 %4000 }
 0xe4f   : > { %8071 = vrcp.f32 %v4001_v32  ;;  %v4377_v32 = vld [vmem:[%s10342_s10 + $0x80] sm:$0xff] }
 0xe55   : > { %v8070_v47 = vpop.eup %8069 }
 0xe56   : > { %v4004_v45 = vmul.f32 %v8070_v47, %v8066_v13  ;;  %v4228_v13 = vld [vmem:[%s10341_s9 + $0x78] sm:$0xff]  ;;  %v7414_v47 = vpack.c.bf16 %v4378_v63, %v4377_v32  ;;  %v4373_v32 = vld [vmem:[%s10342_s10 + $0x60] sm:$0xff]  ;;  %v4374_v63 = vld [vmem:[%s10342_s10 + $0x68] sm:$0xff] }
 0xe57   : > { %v7410_v30 = vpack.c.bf16 %v4228_v13, %v4226_v18  ;;  %v4372_v13 = vld [vmem:[%s10342_s10 + $0x58] sm:$0xff] }
 0xe59   : > { %v8072_v41 = vpop.eup %8071 }
 0xe5a   : > { %v4005_v48 = vmul.f32 %v8072_v41, %v8068_v28  ;;  %v4227_v28 = vld [vmem:[%s10341_s9 + $0x70] sm:$0xff] }
 0xe5b   : > { %v7412_v11 = vpack.c.bf16 %v4227_v28, %v4225_v26  ;;  %v4389_v26 = vld [vmem:[%s10342_s10 + $0xe0] sm:$0xff]  ;;  %v4390_v28 = vld [vmem:[%s10342_s10 + $0xe8] sm:$0xff] }
 0xe89   : > { %v7189_v33 = vpop.f32.mrb[54].mxu0 }
 0xe8a   : > { %v3801_v36 = vpop.f32.mrb[55].mxu0 }
 0xe8b   : > { %7194 = vmatprep.mubr.msk.f32.mxu0 %vm3059_vm10, %v3801_v36 }
 0xe8c   : > { %7195 = vmatmul.mubr.msk.f32.vlgmr.msra.gmra.mrb[52].mxu0 %vm3059_vm10, %v7189_v33  ;;  %v4362_v33 = vld [vmem:[%s10342_s10 + $0x8] sm:$0xff] }
 0xe8d   : > { %7393 = vmatpush3.bf16.msra.mxu0 %v7390_v56  ;;  %7208 = vmatprep.mubr.msk.f32.mxu0 %vm3059_vm10, %v4004_v45  ;;  %v7408_v56 = vpack.c.bf16 %v4223_v3, %v4221_v2  ;;  %v7416_v36 = vpack.c.bf16 %v4362_v33, %v4361_v51  ;;  %v4388_v2 = vld [vmem:[%s10342_s10 + $0xd8] sm:$0xff]  ;;  %v7432_v3 = vpack.c.bf16 %v4370_v4, %v4369_v29  ;;  %v4391_v51 = vld [vmem:[%s10342_s10 + $0xf0] sm:$0xff] }
 0xe8e   : > { %7395 = vmatprep.subr.bf16.mxu0 %v7394_v39  ;;  %v7434_v18 = vpack.c.bf16 %v4388_v2, %v4387_v43  ;;  %v7440_v33 = vpack.c.bf16 %v4374_v63, %v4373_v32 }
 0xe8f   : > { %7409 = vmatpush1.bf16.msra.mxu1 %v7408_v56  ;;  %v4371_v56 = vld [vmem:[%s10342_s10 + $0x50] sm:$0xff] }
 0xe90   : > { %7209 = vmatmul.mubr.msk.f32.vlgmr.msra.gmra.mrb[56].mxu0 %vm3059_vm10, %v4005_v48  ;;  %7411 = vmatprep.subr.bf16.mxu1 %v7410_v30  ;;  %v7436_v30 = vpack.c.bf16 %v4372_v13, %v4371_v56 }
 0xe91   : > { %7397 = vmatpush3.bf16.msra.mxu0 %v7394_v39 }
 0xe92   : > { %7415 = vmatprep.subr.bf16.mxu0 %v7414_v47  ;;  %v4392_v47 = vld [vmem:[%s10342_s10 + $0xf8] sm:$0xff] }
 0xe93   : > { %7413 = vmatpush1.bf16.msra.mxu1 %v7412_v11  ;;  %v7438_v11 = vpack.c.bf16 %v4390_v28, %v4389_v26 }
 0xf63   : > { %v7210_v50 = vpop.f32.mrb[56].mxu0 }
 0xf64   : > { %v4084_v49 = vpop.f32.mrb[57].mxu0 }
 0xf65   : > { %7215 = vmatprep.mubr.msk.f32.mxu0 %vm3059_vm10, %v4084_v49 }
 0xf66   : > { %7216 = vmatmul.mubr.msk.f32.vlgmr.msra.gmra.mrb[52].mxu0 %vm3059_vm10, %v7210_v50 }
 0xf67   : > { %7417 = vmatpush3.bf16.msra.mxu0 %v7416_v36  ;;  %v7442_v36 = vpack.c.bf16 %v4392_v47, %v4391_v51 }
0x1039   : > { %v7217_v27 = vpop.f32.mrb[52].mxu0 }
0x103a   : > { %v7630_v46 = vadd.f32 %v7217_v27, %v9449_v54  ;;  %v4165_v34 = vpop.f32.mrb[53].mxu0 }
0x103b   : > { %v7631_v38 = vadd.f32 %v4165_v34, %v9451_v44  ;;  %v4182_v34 = vld [vmem:[%s10334_s2 + $0x45] ss:$0 sm:$0xff] }
0x103c   : > { %v4178_v0 = vadd.f32 %v7630_v46, %v4176_v15 }
0x103d   : > { %v4177_v7 = vadd.f32 %v7631_v38, %v4176_v15  ;;  %v4181_v15 = vld [vmem:[%s10334_s2 + $0x44] ss:$0 sm:$0xff] }
0x103e   : > { %v9495_v1 = vadd.f32 %v4178_v0, %v9050_v6 }
0x103f   : > { %v9498_v9 = vadd.f32 %v4177_v7, %v9285_v61 }
0x1040   : > { %v4186_v52 = vsel %vm2709_vm8, %v9495_v1, 0.0 }
0x1041   : > { %4187 = vadd.xlane.f32.xlu1 %v4186_v52  ;;  %v4183_v53 = vsel %vm2709_vm8, %v9498_v9, 0.0 }
0x1042   : > { %4184 = vadd.xlane.f32.xlu0 %v4183_v53 }
0x10ce   : > { %v4188_v54 = vpop.xlane.xlu1 %4187 }
0x10cf   : > { %v4190_v60 = vmul.f32 0.015625, %v4188_v54  ;;  %v4185_v55 = vpop.xlane.xlu0 %4184 }
0x10d0   : > { %v4189_v44 = vmul.f32 0.015625, %v4185_v55  ;;  %v4380_v55 = vld [vmem:[%s10342_s10 + $0x98] sm:$0xff] }
0x10d1   : > { %v9505_v37 = vsub.f32 %v9495_v1, %v4190_v60  ;;  %v4379_v60 = vld [vmem:[%s10342_s10 + $0x90] sm:$0xff] }
0x10d2   : > { %v4191_v6 = vsub.f32 %v9498_v9, %v4189_v44  ;;  %v7418_v44 = vpack.c.bf16 %v4380_v55, %v4379_v60 }
0x10d3   : > { %v4194_v17 = vmul.f32 %v9505_v37, %v9505_v37 }
0x10d4   : > { %v4193_v62 = vmul.f32 %v4191_v6, %v4191_v6  ;;  %7419 = vmatprep.subr.bf16.mxu0 %v7418_v44 }
0x10d5   : > { %v4198_v14 = vsel %vm2709_vm8, %v4194_v17, 0.0  ;;  %v4382_v17 = vld [vmem:[%s10342_s10 + $0xa8] sm:$0xff] }
0x10d6   : > { %v4195_v61 = vsel %vm2709_vm8, %v4193_v62, 0.0 }
0x10d7   : > { %4196 = vadd.xlane.f32.xlu0 %v4195_v61  ;;  %v4381_v61 = vld [vmem:[%s10342_s10 + $0xa0] sm:$0xff] }
0x10db   : > { %4199 = vadd.xlane.f32.xlu0 %v4198_v14  ;;  %v7422_v14 = vpack.c.bf16 %v4382_v17, %v4381_v61 }
0x1164   : > { %v4197_v39 = vpop.xlane.xlu0 %4196 }
0x1165   : > { %v4201_v41 = vmul.f32 0.015625, %v4197_v39  ;;  %v4375_v39 = vld [vmem:[%s10342_s10 + $0x70] sm:$0xff] }
0x1167   : > { %v4203_v45 = vadd.f32 1e-05, %v4201_v41  ;;  %v4376_v41 = vld [vmem:[%s10342_s10 + $0x78] sm:$0xff] }
0x1168   : > { %v4200_v48 = vpop.xlane.xlu0 %4199 }
0x1169   : > { %8073 = vrsqrt.f32 %v4203_v45  ;;  %v4202_v50 = vmul.f32 0.015625, %v4200_v48  ;;  %v7444_v45 = vpack.c.bf16 %v4376_v41, %v4375_v39  ;;  %v6676_v48 = vld [vmem:[%s10334_s2 + $0x47] ss:$8 sm:$0x3] }
0x116b   : > { %v4204_v49 = vadd.f32 1e-05, %v4202_v50  ;;  %v4235_v50 = vrot.slane %v6676_v48, %v8676_v57 }
0x116d   : > { %8075 = vrsqrt.f32 %v4204_v49  ;;  %v4239_v49 = vrot.slane %v6676_v48, %v8682_v59 }
0x1173   : > { %v8074_v27 = vpop.eup %8073 }
0x1174   : > { %v4207_v46 = vmul.f32 %v8074_v27, %v4191_v6  ;;  %v4364_v6 = vld [vmem:[%s10342_s10 + $0x18] sm:$0xff] }
0x1176   : > { %v4209_v38 = vmul.f32 %v4207_v46, %v4181_v15 }
0x1177   : > { %v8076_v0 = vpop.eup %8075 }
0x1178   : > { %v4211_v7 = vadd.f32 %v4209_v38, %v4182_v34  ;;  %v4208_v52 = vmul.f32 %v8076_v0, %v9505_v37  ;;  %v4363_v37 = vld [vmem:[%s10342_s10 + $0x10] sm:$0xff] }
0x1179   : > { %v7420_v62 = vpack.c.bf16 %v4364_v6, %v4363_v37 }
0x117a   : > { %6677 = vmatmul.mubr.msk.f32.vlgmr.msra.gmra.mrb[56].mxu1 %vm2709_vm8, %v4211_v7  ;;  %v4210_v53 = vmul.f32 %v4208_v52, %v4181_v15 }
0x117b   : > { %4318 = vmatprep.mubr.f32.mxu1 %v8207_v40  ;;  %7421 = vmatpush3.bf16.msra.mxu0 %v7420_v62 }
0x117c   : > { %v4212_v54 = vadd.f32 %v4210_v53, %v4182_v34  ;;  %7423 = vmatprep.subr.bf16.mxu0 %v7422_v14 }
0x117e   : > { %6678 = vmatmul.mubr.msk.f32.gmra.mrb[58].mxu1 %vm2709_vm8, %v4212_v54 }
0x117f   : > { %4594 = vmatprep.mubr.f32.mxu1 %v8207_v40  ;;  %7425 = vmatpush3.bf16.msra.mxu0 %v7424_v35 }
0x1180   : > { %7427 = vmatprep.subr.bf16.mxu0 %v7426_v19 }
0x1183   : > { %7429 = vmatpush3.bf16.msra.mxu0 %v7428_v24 }
0x1184   : > { %7431 = vmatprep.subr.bf16.mxu0 %v7430_v22 }
0x1187   : > { %7433 = vmatpush3.bf16.msra.mxu0 %v7432_v3 }
0x1188   : > { %7435 = vmatprep.subr.bf16.mxu0 %v7434_v18 }
0x118b   : > { %7437 = vmatpush3.bf16.msra.mxu0 %v7436_v30 }
0x118c   : > { %7439 = vmatprep.subr.bf16.mxu0 %v7438_v11 }
0x118f   : > { %7441 = vmatpush3.bf16.msra.mxu0 %v7440_v33  ;;  %v4470_v33 = vld [vmem:[%s10334_s2 + $0x60] ss:$0 sm:$0xff] }
0x1190   : > { %7443 = vmatprep.subr.bf16.mxu0 %v7442_v36 }
0x1193   : > { %7445 = vmatpush3.bf16.msra.mxu0 %v7444_v45 }
0x124d   : > { %v4314_v27 = vpop.f32.mrb[56].mxu1 }
0x124e   : > { %v4315_v15 = vadd.f32 %v4314_v27, %v4235_v50  ;;  %v4316_v46 = vpop.f32.mrb[57].mxu1 }
0x124f   : > { %v4317_v34 = vadd.f32 %v4316_v46, %v4239_v49 }
0x1250   : > { %v4329_v38 = vmul.f32 0.044715, %v4315_v15  ;;  %v4325_v43 = vmul.f32 0.5, %v4315_v15 }
0x1251   : > { %v4330_v0 = vmul.f32 0.044715, %v4317_v34  ;;  %v4320_v7 = vpop.f32.mrb[58].mxu1  ;;  %v4326_v29 = vmul.f32 0.5, %v4317_v34 }
0x1252   : > { %v4333_v52 = vmul.f32 %v4329_v38, %v4315_v15  ;;  %v4321_v53 = vadd.f32 %v4320_v7, %v4235_v50  ;;  %v4322_v54 = vpop.f32.mrb[59].mxu1 }
0x1253   : > { %v4334_v60 = vmul.f32 %v4330_v0, %v4317_v34  ;;  %v4323_v55 = vadd.f32 %v4322_v54, %v4239_v49 }
0x1254   : > { %v4337_v44 = vmul.f32 %v4333_v52, %v4315_v15  ;;  %v4331_v37 = vmul.f32 0.044715, %v4321_v53  ;;  %v4327_v30 = vmul.f32 0.5, %v4321_v53 }
0x1255   : > { %v4332_v6 = vmul.f32 0.044715, %v4323_v55  ;;  %v4338_v62 = vmul.f32 %v4334_v60, %v4317_v34  ;;  %v4328_v26 = vmul.f32 0.5, %v4323_v55  ;;  %v6680_v60 = vld [vmem:[%s10339_s7 + $0x88] sm:$0xff] }
0x1256   : > { %v4341_v61 = vadd.f32 %v4337_v44, %v4315_v15  ;;  %v4335_v17 = vmul.f32 %v4331_v37, %v4321_v53  ;;  %v6679_v37 = vld [vmem:[%s10339_s7 + $0x80] sm:$0xff] }
0x1257   : > { %v4336_v14 = vmul.f32 %v4332_v6, %v4323_v55  ;;  %v4342_v10 = vadd.f32 %v4338_v62, %v4317_v34  ;;  %v6681_v6 = vld [vmem:[%s10339_s7 + $0x90] sm:$0xff] }
0x1258   : > { %v4345_v42 = vmul.f32 0.7978846, %v4341_v61  ;;  %v4339_v35 = vmul.f32 %v4335_v17, %v4321_v53  ;;  %v7448_v62 = vpack.c.bf16 %v6681_v6, %v6679_v37  ;;  %v6684_v61 = vld [vmem:[%s10339_s7 + $0xa8] sm:$0xff]  ;;  %v6686_v17 = vld [vmem:[%s10339_s7 + $0xb8] sm:$0xff] }
0x1259   : > { %v4346_v8 = vmul.f32 0.7978846, %v4342_v10  ;;  %v4340_v12 = vmul.f32 %v4336_v14, %v4323_v55  ;;  %v7450_v14 = vpack.c.bf16 %v6686_v17, %v6684_v61  ;;  %v6683_v10 = vld [vmem:[%s10339_s7 + $0xa0] sm:$0xff] }
0x125a   : > { %8077 = vtanh.f32 %v4345_v42  ;;  %v4343_v16 = vadd.f32 %v4339_v35, %v4321_v53  ;;  %v6685_v42 = vld [vmem:[%s10339_s7 + $0xb0] sm:$0xff] }
0x125b   : > { %8079 = vtanh.f32 %v4346_v8  ;;  %v4344_v19 = vadd.f32 %v4340_v12, %v4323_v55  ;;  %v6682_v55 = vld [vmem:[%s10339_s7 + $0x98] sm:$0xff]  ;;  %v7452_v35 = vpack.c.bf16 %v6685_v42, %v6683_v10  ;;  %v6688_v8 = vld [vmem:[%s10339_s7 + $0xc8] sm:$0xff] }
0x125c   : > { %v4347_v20 = vmul.f32 0.7978846, %v4343_v16  ;;  %v7446_v44 = vpack.c.bf16 %v6682_v55, %v6680_v60  ;;  %v6690_v12 = vld [vmem:[%s10339_s7 + $0xd8] sm:$0xff] }
0x125d   : > { %v4348_v23 = vmul.f32 0.7978846, %v4344_v19  ;;  %v7454_v16 = vpack.c.bf16 %v6690_v12, %v6688_v8  ;;  %v6687_v19 = vld [vmem:[%s10339_s7 + $0xc0] sm:$0xff] }
0x125e   : > { %8081 = vtanh.f32 %v4347_v20  ;;  %7447 = vmatprep.subr.bf16.mxu1 %v7446_v44  ;;  %v6689_v20 = vld [vmem:[%s10339_s7 + $0xd0] sm:$0xff] }
0x125f   : > { %8083 = vtanh.f32 %v4348_v23  ;;  %7449 = vmatpush1.bf16.msra.mxu1 %v7448_v62  ;;  %v7456_v23 = vpack.c.bf16 %v6689_v20, %v6687_v19 }
0x1260   : > { %7451 = vmatprep.subr.bf16.mxu1 %v7450_v14 }
0x1263   : > { %7453 = vmatpush1.bf16.msra.mxu1 %v7452_v35 }
0x1264   : > { %v8078_v21 = vpop.eup %8077  ;;  %7455 = vmatprep.subr.bf16.mxu1 %v7454_v16 }
0x1265   : > { %v8080_v24 = vpop.eup %8079  ;;  %v4353_v22 = vadd.f32 1.0, %v8078_v21  ;;  %v6692_v21 = vld [vmem:[%s10339_s7 + $0xe8] sm:$0xff] }
0x1266   : > { %v4354_v4 = vadd.f32 1.0, %v8080_v24  ;;  %v6694_v24 = vld [vmem:[%s10339_s7 + $0xf8] sm:$0xff] }
0x1267   : > { %v4357_v56 = vmul.f32 %v4353_v22, %v4325_v43  ;;  %7457 = vmatpush1.bf16.msra.mxu1 %v7456_v23  ;;  %v7458_v22 = vpack.c.bf16 %v6694_v24, %v6692_v21 }
0x1268   : > { %v8082_v2 = vpop.eup %8081  ;;  %v4358_v3 = vmul.f32 %v4354_v4, %v4326_v29  ;;  %v6691_v29 = vld [vmem:[%s10339_s7 + $0xe0] sm:$0xff]  ;;  %v6693_v4 = vld [vmem:[%s10339_s7 + $0xf0] sm:$0xff] }
0x1269   : > { %v8084_v18 = vpop.eup %8083  ;;  %v4355_v13 = vadd.f32 1.0, %v8082_v2  ;;  %v7460_v43 = vpack.c.bf16 %v6693_v4, %v6691_v29  ;;  %7459 = vmatprep.subr.bf16.mxu1 %v7458_v22 }
0x126a   : > { %4457 = vmatprep.mubr.f32.mxu0 %v4358_v3  ;;  %v4356_v28 = vadd.f32 1.0, %v8084_v18 }
0x126b   : > { %4458 = vmatmul.mubr.f32.vlgmr.msra.gmra.mrb[58].mxu0 %v4357_v56  ;;  %v4359_v32 = vmul.f32 %v4355_v13, %v4327_v30  ;;  %7461 = vmatpush1.bf16.msra.mxu1 %v7460_v43  ;;  %v4475_v30 = vld [vmem:[%s10334_s2 + $0x61] ss:$0 sm:$0xff] }
0x126c   : > { %v4360_v11 = vmul.f32 %v4356_v28, %v4328_v26 }
0x126e   : > { %4462 = vmatprep.mubr.f32.mxu0 %v4360_v11 }
0x126f   : > { %4463 = vmatmul.mubr.f32.gmra.mrb[60].mxu0 %v4359_v32  ;;  %v4476_v32 = vld [vmem:[%s10334_s2 + $0x62] ss:$0 sm:$0xff] }
0x133e   : > { %v6972_v63 = vpop.f32.mrb[58].mxu0 }
0x133f   : > { %v6973_v51 = vpop.f32.mrb[59].mxu0 }
0x1340   : > { %v6974_v47 = vadd.f32 %v6973_v51, %v6972_v63 }
0x1342   : > { %v4468_v36 = vadd.f32 %v6974_v47, %v9498_v9  ;;  %v6975_v39 = vpop.f32.mrb[60].mxu0 }
0x1343   : > { %v6976_v41 = vpop.f32.mrb[61].mxu0 }
0x1344   : > { %v4471_v45 = vadd.f32 %v4470_v33, %v4468_v36  ;;  %v6977_v48 = vadd.f32 %v6976_v41, %v6975_v39 }
0x1346   : > { %v4469_v50 = vadd.f32 %v6977_v48, %v9495_v1  ;;  %v9678_v49 = vadd.f32 %v4471_v45, %v9281_v31 }
0x1348   : > { %v4472_v27 = vadd.f32 %v4470_v33, %v4469_v50  ;;  %v4477_v15 = vsel %vm2709_vm8, %v9678_v49, 0.0 }
0x1349   : > { %4478 = vadd.xlane.f32.xlu0 %v4477_v15 }
0x134a   : > { %v9683_v46 = vadd.f32 %v4472_v27, %v9047_v5 }
0x134c   : > { %v4480_v9 = vsel %vm2709_vm8, %v9683_v46, 0.0 }
0x134d   : > { %4481 = vadd.xlane.f32.xlu0 %v4480_v9 }
0x13d6   : > { %v4479_v34 = vpop.xlane.xlu0 %4478 }
0x13d7   : > { %v4483_v38 = vmul.f32 0.015625, %v4479_v34 }
0x13d9   : > { %v4485_v0 = vsub.f32 %v9678_v49, %v4483_v38 }
0x13da   : > { %v4482_v1 = vpop.xlane.xlu0 %4481 }
0x13db   : > { %v4484_v7 = vmul.f32 0.015625, %v4482_v1  ;;  %v4487_v31 = vmul.f32 %v4485_v0, %v4485_v0 }
0x13dd   : > { %v4486_v52 = vsub.f32 %v9683_v46, %v4484_v7  ;;  %v4489_v53 = vsel %vm2709_vm8, %v4487_v31, 0.0 }
0x13de   : > { %4490 = vadd.xlane.f32.xlu0 %v4489_v53 }
0x13df   : > { %v4488_v54 = vmul.f32 %v4486_v52, %v4486_v52 }
0x13e1   : > { %v4492_v5 = vsel %vm2709_vm8, %v4488_v54, 0.0 }
0x13e2   : > { %4493 = vadd.xlane.f32.xlu0 %v4492_v5 }
0x146b   : > { %v4491_v2 = vpop.xlane.xlu0 %4490 }
0x146c   : > { %v4495_v3 = vmul.f32 0.015625, %v4491_v2 }
0x146e   : > { %v4497_v18 = vadd.f32 1e-05, %v4495_v3 }
0x146f   : > { %v4494_v56 = vpop.xlane.xlu0 %4493 }
0x1470   : > { %8085 = vrsqrt.f32 %v4497_v18  ;;  %v4496_v13 = vmul.f32 0.015625, %v4494_v56 }
0x1472   : > { %v4498_v26 = vadd.f32 1e-05, %v4496_v13 }
0x1474   : > { %8087 = vrsqrt.f32 %v4498_v26 }
0x147a   : > { %v8086_v28 = vpop.eup %8085 }
0x147b   : > { %v4501_v11 = vmul.f32 %v8086_v28, %v4485_v0 }
0x147d   : > { %v4503_v63 = vmul.f32 %v4501_v11, %v4475_v30 }
0x147e   : > { %v8088_v51 = vpop.eup %8087 }
0x147f   : > { %v4505_v47 = vadd.f32 %v4503_v63, %v4476_v32  ;;  %v4502_v33 = vmul.f32 %v8088_v51, %v4486_v52 }
0x1481   : > { %6695 = vmatmul.mubr.msk.f32.vlgmr.msra.gmra.mrb[60].mxu1 %vm2709_vm8, %v4505_v47  ;;  %v4504_v36 = vmul.f32 %v4502_v33, %v4475_v30 }
0x1482   : > { %4600 = vmatprep.mubr.f32.mxu1 %v8207_v40 }
0x1483   : > { %v4506_v39 = vadd.f32 %v4504_v36, %v4476_v32 }
0x1485   : > { %6696 = vmatmul.mubr.msk.f32.gmra.mrb[62].mxu1 %vm2709_vm8, %v4506_v39 }
0x1554   : > { %v9748_v41 = vpop.f32.mrb[60].mxu1 }
0x1555   : > { %v4598_v45 = vpop.f32.mrb[61].mxu1  ;;  %7222 = vmatprep.mubr.msk.f32.mxu1 %vm3059_vm10, %v9748_v41 }
0x1558   : > { %v9752_v48 = vpop.f32.mrb[62].mxu1 }
0x1559   : > { %v4604_v50 = vpop.f32.mrb[63].mxu1  ;;  %v9756_v27 = vpack.i.bf16 %v9752_v48, %v9748_v41 }
0x155a   : > { %v7468_v15 = vpack.c.bf16 %v4604_v50, %v4598_v45  ;;  %v9758_v9 = vpack.i.bf16 %v4604_v50, %v4598_v45 }
0x155b   : > { %7757 = vrot.lane.b32.xlu1 %v9756_v27, %s8211_s16  ;;  %7752 = vrot.lane.b32.xlu0 %v9756_v27, %s10366_s22  ;;  %s10368_s16 = smov 32  }
0x155f   : > { %4808 = vrot.lane.b32.xlu0 %v9748_v41, %s10367_s21 }
0x1563   : > { %4810 = vrot.lane.b32.xlu0 %v9752_v48, %s10367_s21 }
0x15cd   : > { %v7758_v34 = vpop.permute.xlu1 %7757  ;;  %v7753_v38 = vpop.permute.xlu0 %7752 }
0x15ce   : > { %v7760_v0 = vunpack.i.h.bf16 %v7758_v34  ;;  %v7759_v1 = vunpack.i.l.bf16 %v7758_v34  ;;  %v7755_v7 = vunpack.i.h.bf16 %v7753_v38  ;;  %v7754_v31 = vunpack.i.l.bf16 %v7753_v38 }
0x15d0   : > { %v7472_v52 = vpack.c.bf16 %v7760_v0, %v7759_v1  ;;  %v7462_v53 = vpack.c.bf16 %v7755_v7, %v7754_v31 }
0x15d1   : > { %v4809_v54 = vpop.permute.xlu0 %4808 }
0x15d2   : > { %7464 = vmatprep.subr.msk.bf16.mxu1 %vm9369_vm11, %v7462_v53  ;;  %7474 = vmatprep.subr.msk.bf16.mxu0 %vm9369_vm11, %v7472_v52 }
0x15d3   : > { %7236 = vmatprep.mubr.msk.f32.mxu0 %vm3059_vm10, %v4809_v54  ;;  %7467 = vmatpush3.bf16.xpose.msk.msra.mxu1 %vm9369_vm11, %v7462_v53 }
0x15d4   : > { %7477 = vmatpush3.bf16.xpose.msk.msra.mxu0 %vm9369_vm11, %v7472_v52  ;;  %7469 = vmatprep.subr.bf16.mxu1 %v7468_v15 }
0x15d5   : > { %v4811_v5 = vpop.permute.xlu0 %4810 }
0x15da   : > { %7223 = vmatmul.mubr.msk.f32.vlgmr.msra.gmra.mrb[64].mxu1 %vm3059_vm10, %v9752_v48 }
0x15db   : > { %7237 = vmatmul.mubr.msk.f32.vlgmr.msra.gmra.mrb[62].mxu0 %vm3059_vm10, %v4811_v5  ;;  %7471 = vmatpush3.bf16.msra.mxu1 %v7468_v15 }
0x16ad   : > { %v7224_v60 = vpop.f32.mrb[64].mxu1 }
0x16ae   : > { %v4702_v55 = vadd.f32 %v7224_v60, %v9380_v58  ;;  %v7238_v44 = vpop.f32.mrb[62].mxu0  ;;  %v4696_v37 = vpop.f32.mrb[65].mxu1 }
0x16af   : > { %v4697_v6 = vadd.f32 %v4696_v37, %v9380_v58  ;;  %v4890_v62 = vpop.f32.mrb[63].mxu0  ;;  %v4896_v14 = vadd.f32 %v7238_v44, %v9380_v58 }
0x16b0   : > { %v4891_v61 = vadd.f32 %v4890_v62, %v9380_v58  ;;  %v4708_v17 = vsel %vm3059_vm10, %v4702_v55, -inf  ;;  %v6700_v62 = vld [vmem:[%s10340_s8 + $0x58] sm:$0xff] }
0x16b1   : > { %4709 = vmax.xlane.f32.xlu0 %v4708_v17  ;;  %v4705_v10 = vsel %vm3059_vm10, %v4697_v6, -inf  ;;  %v4902_v35 = vsel %vm3059_vm10, %v4896_v14, -inf  ;;  %v6698_v17 = vld [vmem:[%s10340_s8 + $0x48] sm:$0xff] }
0x16b2   : > { %4706 = vmax.xlane.f32.xlu1 %v4705_v10  ;;  %v4899_v42 = vsel %vm3059_vm10, %v4891_v61, -inf }
0x16b5   : > { %4900 = vmax.xlane.f32.xlu0 %v4899_v42 }
0x16b6   : > { %4903 = vmax.xlane.f32.xlu1 %v4902_v35 }
0x173e   : > { %v4710_v8 = vpop.xlane.xlu0 %4709 }
0x173f   : > { %v4712_v12 = vsub.f32 %v4702_v55, %v4710_v8  ;;  %v4707_v16 = vpop.xlane.xlu1 %4706 }
0x1740   : > { %v4711_v19 = vsub.f32 %v4697_v6, %v4707_v16  ;;  %v6699_v6 = vld [vmem:[%s10340_s8 + $0x50] sm:$0xff] }
0x1741   : > { %v4715_v20 = vmul.f32 1.442695, %v4712_v12 }
0x1742   : > { %v4713_v23 = vmul.f32 1.442695, %v4711_v19  ;;  %v4901_v21 = vpop.xlane.xlu0 %4900 }
0x1743   : > { %8089 = vpow2.f32 %v4715_v20  ;;  %v4905_v24 = vsub.f32 %v4891_v61, %v4901_v21  ;;  %v4904_v22 = vpop.xlane.xlu1 %4903  ;;  %v7482_v61 = vpack.c.bf16 %v6700_v62, %v6699_v6 }
0x1744   : > { %8091 = vpow2.f32 %v4713_v23  ;;  %v4906_v29 = vsub.f32 %v4896_v14, %v4904_v22  ;;  %v7486_v14 = vpack.c.bf16 %v6698_v17, %v6697_v25  ;;  %v6704_v25 = vld [vmem:[%s10340_s8 + $0x78] sm:$0xff] }
0x1745   : > { %v4907_v4 = vmul.f32 1.442695, %v4905_v24  ;;  %7483 = vmatprep.subr.bf16.mxu0 %v7482_v61 }
0x1746   : > { %v4909_v43 = vmul.f32 1.442695, %v4906_v29  ;;  %7485 = vmatpush3.bf16.msra.mxu0 %v7482_v61  ;;  %v6703_v61 = vld [vmem:[%s10340_s8 + $0x70] sm:$0xff] }
0x1747   : > { %8093 = vpow2.f32 %v4907_v4  ;;  %7487 = vmatprep.subr.bf16.mxu0 %v7486_v14 }
0x1748   : > { %8095 = vpow2.f32 %v4909_v43 }
0x174d   : > { %v8090_v2 = vpop.eup %8089 }
0x174e   : > { %v8092_v3 = vpop.eup %8091  ;;  %v4720_v18 = vsel %vm3059_vm10, %v8090_v2, 0.0 }
0x174f   : > { %4721 = vadd.xlane.f32.xlu1 %v4720_v18  ;;  %v4717_v56 = vsel %vm3059_vm10, %v8092_v3, 0.0 }
0x1750   : > { %4718 = vadd.xlane.f32.xlu0 %v4717_v56 }
0x1751   : > { %v8094_v13 = vpop.eup %8093 }
0x1752   : > { %v8096_v26 = vpop.eup %8095  ;;  %v4911_v28 = vsel %vm3059_vm10, %v8094_v13, 0.0 }
0x1753   : > { %v4914_v30 = vsel %vm3059_vm10, %v8096_v26, 0.0 }
0x1754   : > { %4912 = vadd.xlane.f32.xlu0 %v4911_v28  ;;  %4915 = vadd.xlane.f32.xlu1 %v4914_v30 }
0x1765   : > { %7767 = vrot.lane.b32.xlu1 %v9756_v27, %s10368_s16  ;;  %s445_s16 = scalar_lea.vmem [#allocation2], %s444_s30 }
0x1769   : > { %5172 = vrot.lane.b32.xlu1 %v9748_v41, %s10369_s17 }
0x176a   : > { %7762 = vrot.lane.b32.xlu0 %v9758_v9, %s10367_s21  ;;  %s6791_s21 = sshll.u32 %s8308_s29, 4  ;;  %s8216_s29 = smov [#allocation2]  }
0x176b   : > { %s10290_s27 = scalar_lea.hbm %s10345_s13, %s6791_s21  ;;  %s8141_s1 = sshll.u32 %s8216_s29, 4  ;;  %s8142_s1 = int_to_ptr.vmem [resolvable:$false] %s8141_s1 }
0x176c   : > { %s8143_s15 = scalar_lea.vmem %s8142_s1, 32 }
0x176d   : > { %7772 = vrot.lane.b32.xlu1 %v9756_v27, %s10370_s24 }
0x176e   : > { %5174 = vrot.lane.b32.xlu0 %v9752_v48, %s10369_s17 }
0x1771   : > { %5457 = vrot.lane.b32.xlu1 %v9752_v48, %s10371_s0 }
0x1772   : > { %5455 = vrot.lane.b32.xlu0 %v9748_v41, %s10371_s0 }
0x17dc   : > { %v4722_v11 = vpop.xlane.xlu1 %4721 }
0x17dd   : > { %8097 = vrcp.f32 %v4722_v11  ;;  %v4719_v32 = vpop.xlane.xlu0 %4718 }
0x17de   : > { %8099 = vrcp.f32 %v4719_v32 }
0x17e1   : > { %v4913_v63 = vpop.xlane.xlu0 %4912  ;;  %v4916_v51 = vpop.xlane.xlu1 %4915 }
0x17e2   : > { %8101 = vrcp.f32 %v4913_v63 }
0x17e3   : > { %8103 = vrcp.f32 %v4916_v51 }
0x17e5   : > { %v7763_v47 = vpop.permute.xlu0 %7762  ;;  %v7768_v33 = vpop.permute.xlu1 %7767 }
0x17e6   : > { %v7765_v36 = vunpack.i.h.bf16 %v7763_v47  ;;  %v7764_v39 = vunpack.i.l.bf16 %v7763_v47  ;;  %v7770_v15 = vunpack.i.h.bf16 %v7768_v33  ;;  %v7769_v48 = vunpack.i.l.bf16 %v7768_v33 }
0x17e7   : > { %v8098_v45 = vpop.eup %8097 }
0x17e8   : > { %v8100_v50 = vpop.eup %8099  ;;  %v7478_v27 = vpack.c.bf16 %v7765_v36, %v7764_v39  ;;  %v4726_v41 = vmul.f32 %v8098_v45, %v8090_v2  ;;  %v7490_v1 = vpack.c.bf16 %v7770_v15, %v7769_v48  ;;  %v6701_v36 = vld [vmem:[%s10340_s8 + $0x60] sm:$0xff]  ;;  %v6702_v39 = vld [vmem:[%s10340_s8 + $0x68] sm:$0xff] }
0x17e9   : > { %v5173_v34 = vpop.permute.xlu1 %5172  ;;  %v4725_v38 = vmul.f32 %v8100_v50, %v8092_v3  ;;  %v5175_v55 = vpop.permute.xlu0 %5174  ;;  %v7500_v45 = vpack.c.bf16 %v6702_v39, %v6701_v36  ;;  %v6742_v36 = vld [vmem:[%s10341_s9 + $0xa8] sm:$0xff]  ;;  %v6744_v39 = vld [vmem:[%s10341_s9 + $0xb8] sm:$0xff] }
0x17ea   : > { %7479 = vmatprep.subr.bf16.mxu1 %v7478_v27 }
0x17eb   : > { %7229 = vmatprep.mubr.msk.f32.mxu1 %vm3059_vm10, %v4725_v38 }
0x17ec   : > { %v8102_v0 = vpop.eup %8101  ;;  %7230 = vmatmul.mubr.msk.f32.vlgmr.msra.gmra.mrb[66].mxu1 %vm3059_vm10, %v4726_v41 }
0x17ed   : > { %v8104_v7 = vpop.eup %8103  ;;  %7481 = vmatpush3.bf16.msra.mxu1 %v7478_v27  ;;  %v4919_v31 = vmul.f32 %v8102_v0, %v8094_v13  ;;  %v7773_v53 = vpop.permute.xlu1 %7772 }
0x17ee   : > { %v4920_v52 = vmul.f32 %v8104_v7, %v8096_v26  ;;  %7492 = vmatprep.subr.msk.bf16.mxu1 %vm9369_vm11, %v7490_v1  ;;  %v7775_v54 = vunpack.i.h.bf16 %v7773_v53  ;;  %v7774_v5 = vunpack.i.l.bf16 %v7773_v53  ;;  %v5456_v44 = vpop.permute.xlu0 %5455 }
0x17ef   : > { %7243 = vmatprep.mubr.msk.f32.mxu1 %vm3059_vm10, %v4919_v31 }
0x17f0   : > { %7244 = vmatmul.mubr.msk.f32.vlgmr.msra.gmra.mrb[68].mxu1 %vm3059_vm10, %v4920_v52  ;;  %v7504_v60 = vpack.c.bf16 %v7775_v54, %v7774_v5 }
0x17f1   : > { %7264 = vmatprep.mubr.msk.f32.mxu1 %vm3059_vm10, %v5173_v34  ;;  %v5458_v37 = vpop.permute.xlu1 %5457 }
0x17f6   : > { %7495 = vmatpush3.bf16.xpose.msk.msra.mxu1 %vm9369_vm11, %v7490_v1 }
0x17f7   : > { %7506 = vmatprep.subr.msk.bf16.mxu1 %vm9369_vm11, %v7504_v60 }
0x17fd   : > { %7265 = vmatmul.mubr.msk.f32.vlgmr.msra.gmra.mrb[70].mxu1 %vm3059_vm10, %v5175_v55 }
0x17fe   : > { %7509 = vmatpush3.bf16.xpose.msk.msra.mxu1 %vm9369_vm11, %v7504_v60  ;;  %7285 = vmatprep.mubr.msk.f32.mxu1 %vm3059_vm10, %v5456_v44 }
0x1805   : > { %7286 = vmatmul.mubr.msk.f32.vlgmr.msra.gmra.mrb[72].mxu1 %vm3059_vm10, %v5458_v37 }
0x1806   : > { %5875 = vmatprep.mubr.f32.mxu1 %v8207_v40 }
0x18bf   : > { %v7231_v10 = vpop.f32.mrb[66].mxu1 }
0x18c0   : > { %v4799_v42 = vpop.f32.mrb[67].mxu1 }
0x18c3   : > { %v7245_v35 = vpop.f32.mrb[68].mxu1 }
0x18c4   : > { %v5001_v8 = vpop.f32.mrb[69].mxu1 }
0x18c5   : > { %7250 = vmatprep.mubr.msk.f32.mxu0 %vm3059_vm10, %v5001_v8 }
0x18c6   : > { %7251 = vmatmul.mubr.msk.f32.vlgmr.msra.gmra.mrb[64].mxu0 %vm3059_vm10, %v7245_v35 }
0x18c7   : > { %7257 = vmatprep.mubr.msk.f32.mxu0 %vm3059_vm10, %v4799_v42  ;;  %7489 = vmatpush3.bf16.msra.mxu0 %v7486_v14  ;;  %v7514_v42 = vpack.c.bf16 %v6704_v25, %v6703_v61 }
0x18ce   : > { %7258 = vmatmul.mubr.msk.f32.vlgmr.msra.gmra.mrb[64].mxu0 %vm3059_vm10, %v7231_v10 }
0x18d0   : > { %v7266_v12 = vpop.f32.mrb[70].mxu1 }
0x18d1   : > { %v5260_v16 = vadd.f32 %v7266_v12, %v9380_v58  ;;  %v5254_v19 = vpop.f32.mrb[71].mxu1 }
0x18d2   : > { %v5255_v20 = vadd.f32 %v5254_v19, %v9380_v58 }
0x18d3   : > { %v5266_v23 = vsel %vm3059_vm10, %v5260_v16, -inf }
0x18d4   : > { %5267 = vmax.xlane.f32.xlu1 %v5266_v23  ;;  %v5263_v21 = vsel %vm3059_vm10, %v5255_v20, -inf }
0x18d5   : > { %5264 = vmax.xlane.f32.xlu0 %v5263_v21 }
0x18d8   : > { %v7287_v24 = vpop.f32.mrb[72].mxu1 }
0x18d9   : > { %v5537_v22 = vpop.f32.mrb[73].mxu1  ;;  %v5543_v51 = vadd.f32 %v7287_v24, %v9380_v58 }
0x18db   : > { %v5549_v33 = vsel %vm3059_vm10, %v5543_v51, -inf }
0x18e5   : > { %7777 = vrot.lane.b32.xlu1 %v9758_v9, %s10369_s17  ;;  %s6390_s17 = sshll.u32 %s445_s16, 4  ;;  %s10292_s17 = int_to_ptr.vmem [resolvable:$true] %s6390_s17 }
0x18e6   : > { %s8137_s23 = scalar_lea.vmem %s10292_s17, 16  ;;  %p8144_p0 = scmp.lt.s32.totalorder %s10292_s17, %s8142_s1 }
0x18e7   : > { %p8138_p11 = scmp.ne.s32.totalorder %s10292_s17, %s8137_s23  ;;  %p8145_p1 = scmp.lt.s32.totalorder %s8143_s15, %s8137_s23 }
0x18e9   : > { %7782 = vrot.lane.b32.xlu1 %v9758_v9, %s10371_s0  ;;  %v5538_v9 = vadd.f32 %v5537_v22, %v9380_v58  ;;  %p8139_p12 = pnand %p8138_p11, %p8325_p5  ;;  %p8146_p2 = por %p8145_p1, %p8144_p0 }
0x18eb   : > { %v5546_v47 = vsel %vm3059_vm10, %v5538_v9, -inf  ;;  %p8140_p13 = pneg %p8139_p12 }
0x18ed   : > { %p8147_p3 = pnand %p8146_p2, %p8140_p13 }
0x1961   : > { %v5268_v29 = vpop.xlane.xlu1 %5267 }
0x1962   : > { %v5270_v4 = vsub.f32 %v5260_v16, %v5268_v29  ;;  %v5265_v43 = vpop.xlane.xlu0 %5264 }
0x1963   : > { %v5269_v2 = vsub.f32 %v5255_v20, %v5265_v43  ;;  %v5738_v20 = vld [vmem:[%s10334_s2 + $0x65] ss:$0 sm:$0xff] }
0x1964   : > { %v5273_v3 = vmul.f32 1.442695, %v5270_v4 }
0x1965   : > { %v5271_v18 = vmul.f32 1.442695, %v5269_v2  ;;  %v7778_v56 = vpop.permute.xlu1 %7777 }
0x1966   : > { %v7780_v13 = vunpack.i.h.bf16 %v7778_v56  ;;  %v7779_v26 = vunpack.i.l.bf16 %v7778_v56 }
0x1967   : > { %8105 = vpow2.f32 %v5271_v18 }
0x1968   : > { %v7496_v28 = vpack.c.bf16 %v7780_v13, %v7779_v26  ;;  %8107 = vpow2.f32 %v5273_v3 }
0x1969   : > { %v7783_v34 = vpop.permute.xlu1 %7782 }
0x196a   : > { %7497 = vmatprep.subr.bf16.mxu0 %v7496_v28  ;;  %v7785_v7 = vunpack.i.h.bf16 %v7783_v34  ;;  %v7784_v31 = vunpack.i.l.bf16 %v7783_v34 }
0x196b   : > { %7499 = vmatpush3.bf16.msra.mxu0 %v7496_v28 }
0x196c   : > { %7501 = vmatprep.subr.bf16.mxu0 %v7500_v45  ;;  %v7510_v5 = vpack.c.bf16 %v7785_v7, %v7784_v31  ;;  %v6752_v7 = vld [vmem:[%s10341_s9 + $0xf8] sm:$0xff]  ;;  %v6749_v31 = vld [vmem:[%s10341_s9 + $0xe0] sm:$0xff] }
0x1971   : > { %v8106_v30 = vpop.eup %8105 }
0x1972   : > { %v5275_v11 = vsel %vm3059_vm10, %v8106_v30, 0.0  ;;  %v8108_v32 = vpop.eup %8107 }
0x1973   : > { %5276 = vadd.xlane.f32.xlu0 %v5275_v11  ;;  %v5278_v63 = vsel %vm3059_vm10, %v8108_v32, 0.0 }
0x1977   : > { %5279 = vadd.xlane.f32.xlu0 %v5278_v63 }
0x197b   : > { %5547 = vmax.xlane.f32.xlu0 %v5546_v47  ;;  %v6739_v47 = vld [vmem:[%s10341_s9 + $0x90] sm:$0xff] }
0x197f   : > { %5550 = vmax.xlane.f32.xlu0 %v5549_v33 }
0x1a00   : > { %v5277_v50 = vpop.xlane.xlu0 %5276 }
0x1a01   : > { %8109 = vrcp.f32 %v5277_v50  ;;  %v6741_v50 = vld [vmem:[%s10341_s9 + $0xa0] sm:$0xff] }
0x1a04   : > { %v5280_v27 = vpop.xlane.xlu0 %5279 }
0x1a05   : > { %8111 = vrcp.f32 %v5280_v27  ;;  %v6743_v27 = vld [vmem:[%s10341_s9 + $0xb0] sm:$0xff] }
0x1a08   : > { %v5548_v58 = vpop.xlane.xlu0 %5547 }
0x1a09   : > { %v5552_v15 = vsub.f32 %v5538_v9, %v5548_v58  ;;  %v6740_v9 = vld [vmem:[%s10341_s9 + $0x98] sm:$0xff]  ;;  %v7524_v58 = vpack.c.bf16 %v6743_v27, %v6741_v50  ;;  %v6765_v50 = vld [vmem:[%s10342_s10 + $0x148] sm:$0xff]  ;;  %v6782_v27 = vld [vmem:[%s10342_s10 + $0x1d0] sm:$0xff] }
0x1a0b   : > { %v8110_v48 = vpop.eup %8109  ;;  %v5554_v38 = vmul.f32 1.442695, %v5552_v15  ;;  %v6746_v15 = vld [vmem:[%s10341_s9 + $0xc8] sm:$0xff] }
0x1a0c   : > { %v5551_v41 = vpop.xlane.xlu0 %5550  ;;  %v5283_v0 = vmul.f32 %v8110_v48, %v8106_v30  ;;  %v6748_v48 = vld [vmem:[%s10341_s9 + $0xd8] sm:$0xff] }
0x1a0d   : > { %8113 = vpow2.f32 %v5554_v38  ;;  %v5553_v1 = vsub.f32 %v5543_v51, %v5551_v41  ;;  %v6737_v51 = vld [vmem:[%s10341_s9 + $0x80] sm:$0xff]  ;;  %v7526_v34 = vpack.c.bf16 %v6748_v48, %v6746_v15  ;;  %v6747_v41 = vld [vmem:[%s10341_s9 + $0xd0] sm:$0xff] }
0x1a0e   : > { %7271 = vmatprep.mubr.msk.f32.mxu0 %vm3059_vm10, %v5283_v0  ;;  %v7520_v33 = vpack.c.bf16 %v6739_v47, %v6737_v51  ;;  %v6745_v38 = vld [vmem:[%s10341_s9 + $0xc0] sm:$0xff]  ;;  %v6763_v51 = vld [vmem:[%s10342_s10 + $0x138] sm:$0xff] }
0x1a0f   : > { %v8112_v52 = vpop.eup %8111  ;;  %v5556_v53 = vmul.f32 1.442695, %v5553_v1  ;;  %v7528_v0 = vpack.c.bf16 %v6747_v41, %v6745_v38  ;;  %v6750_v1 = vld [vmem:[%s10341_s9 + $0xe8] sm:$0xff]  ;;  %v6780_v47 = vld [vmem:[%s10342_s10 + $0x1c0] sm:$0xff]  ;;  %v6767_v38 = vld [vmem:[%s10342_s10 + $0x158] sm:$0xff] }
0x1a10   : > { %v5284_v54 = vmul.f32 %v8112_v52, %v8108_v32  ;;  %v6738_v32 = vld [vmem:[%s10341_s9 + $0x88] sm:$0xff]  ;;  %v7530_v52 = vpack.c.bf16 %v6752_v7, %v6750_v1  ;;  %v6784_v41 = vld [vmem:[%s10342_s10 + $0x1e0] sm:$0xff] }
0x1a11   : > { %8115 = vpow2.f32 %v5556_v53  ;;  %v7518_v63 = vpack.c.bf16 %v6740_v9, %v6738_v32  ;;  %v6751_v53 = vld [vmem:[%s10341_s9 + $0xf0] sm:$0xff]  ;;  %v6779_v32 = vld [vmem:[%s10342_s10 + $0x1b8] sm:$0xff] }
0x1a12   : > { %7272 = vmatmul.mubr.msk.f32.vlgmr.msra.gmra.mrb[66].mxu0 %vm3059_vm10, %v5284_v54  ;;  %v7532_v54 = vpack.c.bf16 %v6751_v53, %v6749_v31  ;;  %v6762_v9 = vld [vmem:[%s10342_s10 + $0x130] sm:$0xff]  ;;  %v6768_v31 = vld [vmem:[%s10342_s10 + $0x160] sm:$0xff] }
0x1a13   : > { %7503 = vmatpush3.bf16.msra.mxu0 %v7500_v45  ;;  %7519 = vmatprep.subr.bf16.mxu1 %v7518_v63  ;;  %v7522_v45 = vpack.c.bf16 %v6744_v39, %v6742_v36  ;;  %v7548_v36 = vpack.c.bf16 %v6763_v51, %v6762_v9  ;;  %v6786_v53 = vld [vmem:[%s10342_s10 + $0x1f0] sm:$0xff] }
0x1a14   : > { %7511 = vmatprep.subr.bf16.mxu0 %v7510_v5  ;;  %7521 = vmatpush1.bf16.msra.mxu1 %v7520_v33  ;;  %v6781_v33 = vld [vmem:[%s10342_s10 + $0x1c8] sm:$0xff] }
0x1a15   : > { %7523 = vmatprep.subr.bf16.mxu1 %v7522_v45  ;;  %v7550_v39 = vpack.c.bf16 %v6781_v33, %v6780_v47  ;;  %v6764_v45 = vld [vmem:[%s10342_s10 + $0x140] sm:$0xff] }
0x1a16   : > { %v7552_v15 = vpack.c.bf16 %v6765_v50, %v6764_v45 }
0x1a17   : > { %v8114_v60 = vpop.eup %8113 }
0x1a18   : > { %v5558_v55 = vsel %vm3059_vm10, %v8114_v60, 0.0  ;;  %7525 = vmatpush1.bf16.msra.mxu1 %v7524_v58  ;;  %v6783_v58 = vld [vmem:[%s10342_s10 + $0x1d8] sm:$0xff] }
0x1a19   : > { %5559 = vadd.xlane.f32.xlu0 %v5558_v55  ;;  %7527 = vmatprep.subr.bf16.mxu1 %v7526_v34  ;;  %v6756_v55 = vld [vmem:[%s10342_s10 + $0x100] sm:$0xff]  ;;  %v7554_v48 = vpack.c.bf16 %v6783_v58, %v6782_v27  ;;  %v6766_v34 = vld [vmem:[%s10342_s10 + $0x150] sm:$0xff] }
0x1a1a   : > { %v7556_v1 = vpack.c.bf16 %v6767_v38, %v6766_v34 }
0x1a1b   : > { %v8116_v44 = vpop.eup %8115 }
0x1a1c   : > { %v5561_v37 = vsel %vm3059_vm10, %v8116_v44, 0.0  ;;  %7529 = vmatpush1.bf16.msra.mxu1 %v7528_v0  ;;  %v6785_v0 = vld [vmem:[%s10342_s10 + $0x1e8] sm:$0xff] }
0x1a1d   : > { %5562 = vadd.xlane.f32.xlu0 %v5561_v37  ;;  %7531 = vmatprep.subr.bf16.mxu1 %v7530_v52  ;;  %v6757_v37 = vld [vmem:[%s10342_s10 + $0x108] sm:$0xff]  ;;  %v7558_v7 = vpack.c.bf16 %v6785_v0, %v6784_v41 }
0x1a1e   : > { %v6769_v52 = vld [vmem:[%s10342_s10 + $0x168] sm:$0xff] }
0x1a20   : > { %7533 = vmatpush1.bf16.msra.mxu1 %v7532_v54  ;;  %v6787_v54 = vld [vmem:[%s10342_s10 + $0x1f8] sm:$0xff] }
0x1aa6   : > { %v5560_v6 = vpop.xlane.xlu0 %5559 }
0x1aa7   : > { %8117 = vrcp.f32 %v5560_v6  ;;  %v7536_v6 = vpack.c.bf16 %v6757_v37, %v6756_v55  ;;  %v6770_v55 = vld [vmem:[%s10342_s10 + $0x170] sm:$0xff] }
0x1aaa   : > { %v5563_v62 = vpop.xlane.xlu0 %5562 }
0x1aab   : > { %8119 = vrcp.f32 %v5563_v62 }
0x1ab1   : > { %v8118_v17 = vpop.eup %8117 }
0x1ab2   : > { %v5566_v8 = vmul.f32 %v8118_v17, %v8114_v60  ;;  %v6773_v60 = vld [vmem:[%s10342_s10 + $0x188] sm:$0xff] }
0x1ab5   : > { %v8120_v35 = vpop.eup %8119 }
0x1ab6   : > { %v5567_v12 = vmul.f32 %v8120_v35, %v8116_v44  ;;  %v5743_v35 = vld [vmem:[%s10334_s2 + $0x63] ss:$0 sm:$0xff] }
0x1ae5   : > { %v7273_v14 = vpop.f32.mrb[66].mxu0 }
0x1ae6   : > { %v5363_v10 = vpop.f32.mrb[67].mxu0 }
0x1ae7   : > { %7278 = vmatprep.mubr.msk.f32.mxu0 %vm3059_vm10, %v5363_v10 }
0x1ae8   : > { %7279 = vmatmul.mubr.msk.f32.vlgmr.msra.gmra.mrb[64].mxu0 %vm3059_vm10, %v7273_v14 }
0x1ae9   : > { %7513 = vmatpush3.bf16.msra.mxu0 %v7510_v5  ;;  %7292 = vmatprep.mubr.msk.f32.mxu0 %vm3059_vm10, %v5566_v8  ;;  %v6772_v5 = vld [vmem:[%s10342_s10 + $0x180] sm:$0xff] }
0x1aea   : > { %7515 = vmatprep.subr.bf16.mxu0 %v7514_v42  ;;  %v7534_v44 = vpack.c.bf16 %v6773_v60, %v6772_v5  ;;  %v7560_v5 = vpack.c.bf16 %v6769_v52, %v6768_v31  ;;  %v7562_v60 = vpack.c.bf16 %v6787_v54, %v6786_v53  ;;  %v6034_v31 = vld [vmem:[%s10334_s2 + $0x67] ss:$0 sm:$0xff] }
0x1aec   : > { %7293 = vmatmul.mubr.msk.f32.vlgmr.msra.gmra.mrb[68].mxu0 %vm3059_vm10, %v5567_v12  ;;  %v5744_v12 = vld [vmem:[%s10334_s2 + $0x64] ss:$0 sm:$0xff] }
0x1aed   : > { %7517 = vmatpush3.bf16.msra.mxu0 %v7514_v42 }
0x1aee   : > { %7535 = vmatprep.subr.bf16.mxu0 %v7534_v44  ;;  %v6771_v44 = vld [vmem:[%s10342_s10 + $0x178] sm:$0xff] }
0x1aef   : > { %v7564_v37 = vpack.c.bf16 %v6771_v44, %v6770_v55 }
0x1bbf   : > { %v7294_v16 = vpop.f32.mrb[68].mxu0 }
0x1bc0   : > { %v5646_v19 = vpop.f32.mrb[69].mxu0 }
0x1bc1   : > { %7299 = vmatprep.mubr.msk.f32.mxu0 %vm3059_vm10, %v5646_v19 }
0x1bc2   : > { %7300 = vmatmul.mubr.msk.f32.vlgmr.msra.gmra.mrb[64].mxu0 %vm3059_vm10, %v7294_v16 }
0x1bc3   : > { %7537 = vmatpush3.bf16.msra.mxu0 %v7536_v6  ;;  %v6753_v6 = vld [vmem:[%s10334_s2 + $0x66] ss:$8 sm:$0x3] }
0x1c95   : > { %v7301_v23 = vpop.f32.mrb[64].mxu0 }
0x1c96   : > { %v5740_v21 = vadd.f32 %v7301_v23, %v5738_v20  ;;  %v5727_v24 = vpop.f32.mrb[65].mxu0 }
0x1c97   : > { %v5739_v22 = vadd.f32 %v5738_v20, %v5727_v24 }
0x1c98   : > { %v9879_v29 = vadd.f32 %v5740_v21, %v9683_v46 }
0x1c99   : > { %v9882_v4 = vadd.f32 %v5739_v22, %v9678_v49  ;;  %v6774_v22 = vld [vmem:[%s10342_s10 + $0x190] sm:$0xff] }
0x1c9a   : > { %v5748_v43 = vsel %vm2709_vm8, %v9879_v29, 0.0 }
0x1c9b   : > { %5749 = vadd.xlane.f32.xlu1 %v5748_v43  ;;  %v5745_v2 = vsel %vm2709_vm8, %v9882_v4, 0.0  ;;  %v6775_v43 = vld [vmem:[%s10342_s10 + $0x198] sm:$0xff] }
0x1c9c   : > { %5746 = vadd.xlane.f32.xlu0 %v5745_v2  ;;  %v7538_v2 = vpack.c.bf16 %v6775_v43, %v6774_v22 }
0x1c9e   : > { %7539 = vmatprep.subr.bf16.mxu0 %v7538_v2 }
0x1d28   : > { %v5750_v3 = vpop.xlane.xlu1 %5749 }
0x1d29   : > { %v5752_v18 = vmul.f32 0.015625, %v5750_v3  ;;  %v5747_v56 = vpop.xlane.xlu0 %5746  ;;  %v6758_v3 = vld [vmem:[%s10342_s10 + $0x110] sm:$0xff] }
0x1d2a   : > { %v5751_v13 = vmul.f32 0.015625, %v5747_v56 }
0x1d2b   : > { %v9889_v26 = vsub.f32 %v9879_v29, %v5752_v18  ;;  %v6759_v18 = vld [vmem:[%s10342_s10 + $0x118] sm:$0xff] }
0x1d2c   : > { %v5753_v46 = vsub.f32 %v9882_v4, %v5751_v13  ;;  %v7540_v56 = vpack.c.bf16 %v6759_v18, %v6758_v3  ;;  %v6776_v13 = vld [vmem:[%s10342_s10 + $0x1a0] sm:$0xff] }
0x1d2d   : > { %v5756_v30 = vmul.f32 %v9889_v26, %v9889_v26 }
0x1d2e   : > { %v5755_v28 = vmul.f32 %v5753_v46, %v5753_v46  ;;  %7541 = vmatpush3.bf16.msra.mxu0 %v7540_v56 }
0x1d2f   : > { %v5760_v11 = vsel %vm2709_vm8, %v5756_v30, 0.0 }
0x1d30   : > { %v5757_v49 = vsel %vm2709_vm8, %v5755_v28, 0.0  ;;  %v6760_v28 = vld [vmem:[%s10342_s10 + $0x120] sm:$0xff] }
0x1d31   : > { %5758 = vadd.xlane.f32.xlu0 %v5757_v49  ;;  %v6761_v49 = vld [vmem:[%s10342_s10 + $0x128] sm:$0xff] }
0x1d32   : > { %v7544_v30 = vpack.c.bf16 %v6761_v49, %v6760_v28 }
0x1d35   : > { %5761 = vadd.xlane.f32.xlu0 %v5760_v11  ;;  %v6778_v11 = vld [vmem:[%s10342_s10 + $0x1b0] sm:$0xff] }
0x1d36   : > { %v7546_v63 = vpack.c.bf16 %v6779_v32, %v6778_v11 }
0x1dbe   : > { %v5759_v62 = vpop.xlane.xlu0 %5758 }
0x1dbf   : > { %v5763_v61 = vmul.f32 0.015625, %v5759_v62  ;;  %v5798_v62 = vrot.slane %v6753_v6, %v8676_v57 }
0x1dc1   : > { %v5765_v25 = vadd.f32 1e-05, %v5763_v61  ;;  %v5802_v61 = vrot.slane %v6753_v6, %v8682_v59 }
0x1dc2   : > { %v5762_v17 = vpop.xlane.xlu0 %5761 }
0x1dc3   : > { %8121 = vrsqrt.f32 %v5765_v25  ;;  %v5764_v14 = vmul.f32 0.015625, %v5762_v17 }
0x1dc5   : > { %v5766_v10 = vadd.f32 1e-05, %v5764_v14 }
0x1dc7   : > { %8123 = vrsqrt.f32 %v5766_v10 }
0x1dcd   : > { %v8122_v42 = vpop.eup %8121 }
0x1dce   : > { %v5769_v8 = vmul.f32 %v8122_v42, %v5753_v46 }
0x1dd0   : > { %v5771_v16 = vmul.f32 %v5769_v8, %v5743_v35 }
0x1dd1   : > { %v8124_v19 = vpop.eup %8123 }
0x1dd2   : > { %v5773_v20 = vadd.f32 %v5771_v16, %v5744_v12  ;;  %v5770_v23 = vmul.f32 %v8124_v19, %v9889_v26  ;;  %v6777_v26 = vld [vmem:[%s10342_s10 + $0x1a8] sm:$0xff] }
0x1dd3   : > { %v7542_v46 = vpack.c.bf16 %v6777_v26, %v6776_v13 }
0x1dd4   : > { %6754 = vmatmul.mubr.msk.f32.vlgmr.msra.gmra.mrb[74].mxu1 %vm2709_vm8, %v5773_v20  ;;  %v5772_v21 = vmul.f32 %v5770_v23, %v5743_v35 }
0x1dd5   : > { %5881 = vmatprep.mubr.f32.mxu1 %v8207_v40  ;;  %7543 = vmatprep.subr.bf16.mxu0 %v7542_v46 }
0x1dd6   : > { %v5774_v24 = vadd.f32 %v5772_v21, %v5744_v12  ;;  %7545 = vmatpush3.bf16.msra.mxu0 %v7544_v30 }
0x1dd7   : > { %7547 = vmatprep.subr.bf16.mxu0 %v7546_v63 }
0x1dd8   : > { %6755 = vmatmul.mubr.msk.f32.gmra.mrb[76].mxu1 %vm2709_vm8, %v5774_v24 }
0x1dd9   : > { %6175 = vmatprep.mubr.f32.mxu1 %v8207_v40 }
0x1dda   : > { %7549 = vmatpush3.bf16.msra.mxu0 %v7548_v36 }
0x1ddb   : > { %7551 = vmatprep.subr.bf16.mxu0 %v7550_v39 }
0x1dde   : > { %7553 = vmatpush3.bf16.msra.mxu0 %v7552_v15 }
0x1ddf   : > { %7555 = vmatprep.subr.bf16.mxu0 %v7554_v48 }
0x1de2   : > { %7557 = vmatpush3.bf16.msra.mxu0 %v7556_v1 }
0x1de3   : > { %7559 = vmatprep.subr.bf16.mxu0 %v7558_v7 }
0x1de6   : > { %7561 = vmatpush3.bf16.msra.mxu0 %v7560_v5 }
0x1de7   : > { %7563 = vmatprep.subr.bf16.mxu0 %v7562_v60 }
0x1dea   : > { %7565 = vmatpush3.bf16.msra.mxu0 %v7564_v37 }
0x1ea7   : > { %v5877_v25 = vpop.f32.mrb[74].mxu1 }
0x1ea8   : > { %v5878_v17 = vadd.f32 %v5877_v25, %v5798_v62  ;;  %v5879_v14 = vpop.f32.mrb[75].mxu1 }
0x1ea9   : > { %v5880_v10 = vadd.f32 %v5879_v14, %v5802_v61 }
0x1eaa   : > { %v5892_v42 = vmul.f32 0.044715, %v5878_v17  ;;  %v5888_v36 = vmul.f32 0.5, %v5878_v17 }
0x1eab   : > { %v5893_v35 = vmul.f32 0.044715, %v5880_v10  ;;  %v5883_v8 = vpop.f32.mrb[76].mxu1  ;;  %v5889_v47 = vmul.f32 0.5, %v5880_v10 }
0x1eac   : > { %v5896_v12 = vmul.f32 %v5892_v42, %v5878_v17  ;;  %v5884_v16 = vadd.f32 %v5883_v8, %v5798_v62  ;;  %v5885_v19 = vpop.f32.mrb[77].mxu1  ;;  %v6093_v8 = vld [vmem:[%s10343_s11 + $0x88] sm:$0xff] }
0x1ead   : > { %v5897_v20 = vmul.f32 %v5893_v35, %v5880_v10  ;;  %v5886_v23 = vadd.f32 %v5885_v19, %v5802_v61  ;;  %v6092_v19 = vld [vmem:[%s10343_s11 + $0x80] sm:$0xff] }
0x1eae   : > { %v5900_v21 = vmul.f32 %v5896_v12, %v5878_v17  ;;  %v5894_v24 = vmul.f32 0.044715, %v5884_v16  ;;  %v5890_v34 = vmul.f32 0.5, %v5884_v16  ;;  %v6095_v12 = vld [vmem:[%s10343_s11 + $0x98] sm:$0xff] }
0x1eaf   : > { %v5895_v22 = vmul.f32 0.044715, %v5886_v23  ;;  %v5901_v43 = vmul.f32 %v5897_v20, %v5880_v10  ;;  %v5891_v15 = vmul.f32 0.5, %v5886_v23  ;;  %v6094_v20 = vld [vmem:[%s10343_s11 + $0x90] sm:$0xff] }
0x1eb0   : > { %v5904_v2 = vadd.f32 %v5900_v21, %v5878_v17  ;;  %v5898_v3 = vmul.f32 %v5894_v24, %v5884_v16  ;;  %v6097_v21 = vld [vmem:[%s10343_s11 + $0xa8] sm:$0xff]  ;;  %v6099_v24 = vld [vmem:[%s10343_s11 + $0xb8] sm:$0xff] }
0x1eb1   : > { %v5899_v18 = vmul.f32 %v5895_v22, %v5886_v23  ;;  %v5905_v56 = vadd.f32 %v5901_v43, %v5880_v10  ;;  %v7570_v22 = vpack.c.bf16 %v6099_v24, %v6097_v21  ;;  %v6096_v43 = vld [vmem:[%s10343_s11 + $0xa0] sm:$0xff] }
0x1eb2   : > { %v5908_v13 = vmul.f32 0.7978846, %v5904_v2  ;;  %v5902_v26 = vmul.f32 %v5898_v3, %v5884_v16  ;;  %v6098_v2 = vld [vmem:[%s10343_s11 + $0xb0] sm:$0xff] }
0x1eb3   : > { %v5909_v46 = vmul.f32 0.7978846, %v5905_v56  ;;  %v5903_v28 = vmul.f32 %v5899_v18, %v5886_v23  ;;  %v7572_v3 = vpack.c.bf16 %v6098_v2, %v6096_v43  ;;  %v6101_v18 = vld [vmem:[%s10343_s11 + $0xc8] sm:$0xff]  ;;  %v6103_v56 = vld [vmem:[%s10343_s11 + $0xd8] sm:$0xff] }
0x1eb4   : > { %8125 = vtanh.f32 %v5908_v13  ;;  %v5906_v49 = vadd.f32 %v5902_v26, %v5884_v16  ;;  %v7566_v16 = vpack.c.bf16 %v6095_v12, %v6093_v8  ;;  %v6100_v13 = vld [vmem:[%s10343_s11 + $0xc0] sm:$0xff]  ;;  %v7574_v26 = vpack.c.bf16 %v6103_v56, %v6101_v18  ;;  %v6283_v12 = vld [vmem:[%s10344_s12 + $0x50] sm:$0xff] }
0x1eb5   : > { %8127 = vtanh.f32 %v5909_v46  ;;  %v5907_v30 = vadd.f32 %v5903_v28, %v5886_v23  ;;  %v7568_v23 = vpack.c.bf16 %v6094_v20, %v6092_v19  ;;  %v6102_v46 = vld [vmem:[%s10343_s11 + $0xd0] sm:$0xff]  ;;  %v6105_v28 = vld [vmem:[%s10343_s11 + $0xe8] sm:$0xff]  ;;  %v6301_v19 = vld [vmem:[%s10344_s12 + $0xe0] sm:$0xff] }
0x1eb6   : > { %v5910_v11 = vmul.f32 0.7978846, %v5906_v49  ;;  %7567 = vmatprep.subr.bf16.mxu1 %v7566_v16  ;;  %v6107_v49 = vld [vmem:[%s10343_s11 + $0xf8] sm:$0xff]  ;;  %v6302_v20 = vld [vmem:[%s10344_s12 + $0xe8] sm:$0xff]  ;;  %v6038_v56 = vld [vmem:[%s10334_s2 + $0x27] ss:$0 sm:$0xff] }
0x1eb7   : > { %v5911_v32 = vmul.f32 0.7978846, %v5907_v30  ;;  %7569 = vmatpush1.bf16.msra.mxu1 %v7568_v23  ;;  %v7576_v30 = vpack.c.bf16 %v6102_v46, %v6100_v13  ;;  %v6284_v16 = vld [vmem:[%s10344_s12 + $0x58] sm:$0xff]  ;;  %v7622_v21 = vpack.c.bf16 %v6302_v20, %v6301_v19 }
0x1eb8   : > { %8129 = vtanh.f32 %v5910_v11  ;;  %7571 = vmatprep.subr.bf16.mxu1 %v7570_v22  ;;  %v7578_v11 = vpack.c.bf16 %v6107_v49, %v6105_v28  ;;  %v7620_v23 = vpack.c.bf16 %v6284_v16, %v6283_v12 }
0x1eb9   : > { %8131 = vtanh.f32 %v5911_v32  ;;  %v6104_v32 = vld [vmem:[%s10343_s11 + $0xe0] sm:$0xff] }
0x1ebb   : > { %7573 = vmatpush1.bf16.msra.mxu1 %v7572_v3  ;;  %v6037_v3 = vld [vmem:[%s10334_s2 + $0x26] ss:$0 sm:$0xff] }
0x1ebc   : > { %7575 = vmatprep.subr.bf16.mxu1 %v7574_v26 }
0x1ebe   : > { %v8126_v9 = vpop.eup %8125 }
0x1ebf   : > { %v8128_v63 = vpop.eup %8127  ;;  %v5916_v51 = vadd.f32 1.0, %v8126_v9  ;;  %v6106_v9 = vld [vmem:[%s10343_s11 + $0xf0] sm:$0xff]  ;;  %7577 = vmatpush1.bf16.msra.mxu1 %v7576_v30 }
0x1ec0   : > { %v5917_v33 = vadd.f32 1.0, %v8128_v63  ;;  %v6077_v63 = vld [vmem:[%s10343_s11 + $0x8] sm:$0xff]  ;;  %7579 = vmatprep.subr.bf16.mxu1 %v7578_v11 }
0x1ec1   : > { %v5920_v27 = vmul.f32 %v5916_v51, %v5888_v36  ;;  %v6079_v51 = vld [vmem:[%s10343_s11 + $0x18] sm:$0xff]  ;;  %v6289_v36 = vld [vmem:[%s10344_s12 + $0x80] sm:$0xff] }
0x1ec2   : > { %v8130_v39 = vpop.eup %8129  ;;  %v5921_v45 = vmul.f32 %v5917_v33, %v5889_v47  ;;  %v7580_v47 = vpack.c.bf16 %v6106_v9, %v6104_v32  ;;  %v7582_v33 = vpack.c.bf16 %v6079_v51, %v6077_v63  ;;  %v6078_v51 = vld [vmem:[%s10343_s11 + $0x10] sm:$0xff] }
0x1ec3   : > { %v8132_v50 = vpop.eup %8131  ;;  %v5918_v58 = vadd.f32 1.0, %v8130_v39  ;;  %v6290_v39 = vld [vmem:[%s10344_s12 + $0x88] sm:$0xff] }
0x1ec4   : > { %6021 = vmatprep.mubr.f32.mxu0 %v5921_v45  ;;  %v5919_v48 = vadd.f32 1.0, %v8132_v50  ;;  %7581 = vmatpush1.bf16.msra.mxu1 %v7580_v47  ;;  %v6273_v45 = vld [vmem:[%s10344_s12] sm:$0xff]  ;;  %v7598_v50 = vpack.c.bf16 %v6290_v39, %v6289_v36  ;;  %v6081_v47 = vld [vmem:[%s10343_s11 + $0x28] sm:$0xff] }
0x1ec5   : > { %6022 = vmatmul.mubr.f32.vlgmr.msra.gmra.mrb[70].mxu0 %v5920_v27  ;;  %v5922_v41 = vmul.f32 %v5918_v58, %v5890_v34  ;;  %7583 = vmatprep.subr.bf16.mxu1 %v7582_v33  ;;  %v6274_v27 = vld [vmem:[%s10344_s12 + $0x8] sm:$0xff]  ;;  %v6291_v58 = vld [vmem:[%s10344_s12 + $0x90] sm:$0xff]  ;;  %v6083_v33 = vld [vmem:[%s10343_s11 + $0x38] sm:$0xff] }
0x1ec6   : > { %v5923_v38 = vmul.f32 %v5919_v48, %v5891_v15  ;;  %v6292_v15 = vld [vmem:[%s10344_s12 + $0x98] sm:$0xff]  ;;  %v7600_v48 = vpack.c.bf16 %v6274_v27, %v6273_v45  ;;  %7599 = vmatprep.subr.bf16.mxu0 %v7598_v50  ;;  %v7586_v50 = vpack.c.bf16 %v6083_v33, %v6081_v47  ;;  %v6080_v27 = vld [vmem:[%s10343_s11 + $0x20] sm:$0xff] }
0x1ec7   : > { %v7602_v34 = vpack.c.bf16 %v6292_v15, %v6291_v58  ;;  %v6082_v58 = vld [vmem:[%s10343_s11 + $0x30] sm:$0xff]  ;;  %v6085_v15 = vld [vmem:[%s10343_s11 + $0x48] sm:$0xff] }
0x1ec8   : > { %6026 = vmatprep.mubr.f32.mxu0 %v5923_v38  ;;  %v6275_v38 = vld [vmem:[%s10344_s12 + $0x10] sm:$0xff]  ;;  %7601 = vmatpush3.bf16.msra.mxu0 %v7600_v48  ;;  %v6087_v48 = vld [vmem:[%s10343_s11 + $0x58] sm:$0xff] }
0x1ec9   : > { %6027 = vmatmul.mubr.f32.gmra.mrb[72].mxu0 %v5922_v41  ;;  %v6276_v41 = vld [vmem:[%s10344_s12 + $0x18] sm:$0xff]  ;;  %7603 = vmatprep.subr.bf16.mxu0 %v7602_v34  ;;  %v7588_v34 = vpack.c.bf16 %v6082_v58, %v6080_v27 }
0x1f98   : > { %v7058_v0 = vpop.f32.mrb[70].mxu0 }
0x1f99   : > { %v7059_v1 = vpop.f32.mrb[71].mxu0 }
0x1f9a   : > { %v7060_v7 = vadd.f32 %v7059_v1, %v7058_v0  ;;  %v6293_v0 = vld [vmem:[%s10344_s12 + $0xa0] sm:$0xff]  ;;  %v6294_v1 = vld [vmem:[%s10344_s12 + $0xa8] sm:$0xff] }
0x1f9c   : > { %v6032_v52 = vadd.f32 %v7060_v7, %v9882_v4  ;;  %v7061_v53 = vpop.f32.mrb[72].mxu0  ;;  %v7604_v7 = vpack.c.bf16 %v6276_v41, %v6275_v38  ;;  %v7590_v38 = vpack.c.bf16 %v6087_v48, %v6085_v15  ;;  %v6084_v41 = vld [vmem:[%s10343_s11 + $0x40] sm:$0xff] }
0x1f9d   : > { %v7062_v54 = vpop.f32.mrb[73].mxu0 }
0x1f9e   : > { %v7063_v5 = vadd.f32 %v7062_v54, %v7061_v53  ;;  %v6035_v60 = vadd.f32 %v6034_v31, %v6032_v52  ;;  %v6277_v52 = vld [vmem:[%s10344_s12 + $0x20] sm:$0xff]  ;;  %v6278_v53 = vld [vmem:[%s10344_s12 + $0x28] sm:$0xff]  ;;  %v6295_v54 = vld [vmem:[%s10344_s12 + $0xb0] sm:$0xff]  ;;  %7605 = vmatpush3.bf16.msra.mxu0 %v7604_v7 }
0x1f9f   : > { %v6089_v7 = vld [vmem:[%s10343_s11 + $0x68] sm:$0xff] }
0x1fa0   : > { %v6033_v55 = vadd.f32 %v7063_v5, %v9879_v29  ;;  %v6039_v44 = vsel %vm2709_vm8, %v6035_v60, 0.0  ;;  %v6296_v5 = vld [vmem:[%s10344_s12 + $0xb8] sm:$0xff] }
0x1fa1   : > { %6040 = vadd.xlane.f32.xlu0 %v6039_v44  ;;  %v6279_v44 = vld [vmem:[%s10344_s12 + $0x30] sm:$0xff] }
0x1fa2   : > { %v6036_v37 = vadd.f32 %v6034_v31, %v6033_v55  ;;  %v7606_v31 = vpack.c.bf16 %v6294_v1, %v6293_v0  ;;  %v7610_v55 = vpack.c.bf16 %v6296_v5, %v6295_v54  ;;  %v6086_v0 = vld [vmem:[%s10343_s11 + $0x50] sm:$0xff]  ;;  %v6088_v54 = vld [vmem:[%s10343_s11 + $0x60] sm:$0xff] }
0x1fa3   : > { %v6090_v5 = vld [vmem:[%s10343_s11 + $0x70] sm:$0xff] }
0x1fa4   : > { %v6042_v6 = vsel %vm2709_vm8, %v6036_v37, 0.0  ;;  %7607 = vmatprep.subr.bf16.mxu0 %v7606_v31  ;;  %v6091_v31 = vld [vmem:[%s10343_s11 + $0x78] sm:$0xff] }
0x1fa5   : > { %6043 = vadd.xlane.f32.xlu0 %v6042_v6  ;;  %v6297_v6 = vld [vmem:[%s10344_s12 + $0xc0] sm:$0xff] }
0x202e   : > { %v6041_v62 = vpop.xlane.xlu0 %6040 }
0x202f   : > { %v6045_v61 = vmul.f32 0.015625, %v6041_v62  ;;  %v6298_v62 = vld [vmem:[%s10344_s12 + $0xc8] sm:$0xff] }
0x2031   : > { %v10063_v25 = vsub.f32 %v6035_v60, %v6045_v61  ;;  %v7608_v60 = vpack.c.bf16 %v6278_v53, %v6277_v52  ;;  %v7594_v53 = vpack.c.bf16 %v6091_v31, %v6089_v7 }
0x2032   : > { %v6044_v17 = vpop.xlane.xlu0 %6043 }
0x2033   : > { %v6046_v14 = vmul.f32 0.015625, %v6044_v17  ;;  %v6049_v4 = vmul.f32 %v10063_v25, %v10063_v25  ;;  %7609 = vmatpush3.bf16.msra.mxu0 %v7608_v60  ;;  %v7614_v17 = vpack.c.bf16 %v6298_v62, %v6297_v6  ;;  %v7596_v60 = vpack.c.bf16 %v6090_v5, %v6088_v54  ;;  %v6303_v62 = vld [vmem:[%s10344_s12 + $0xf0] sm:$0xff] }
0x2034   : > { %7611 = vmatprep.subr.bf16.mxu0 %v7610_v55 }
0x2035   : > { %v10067_v10 = vsub.f32 %v6036_v37, %v6046_v14  ;;  %v6051_v29 = vsel %vm2709_vm8, %v6049_v4, 0.0  ;;  %v6280_v37 = vld [vmem:[%s10344_s12 + $0x38] sm:$0xff]  ;;  %v6281_v14 = vld [vmem:[%s10344_s12 + $0x40] sm:$0xff]  ;;  %v6282_v4 = vld [vmem:[%s10344_s12 + $0x48] sm:$0xff] }
0x2036   : > { %6052 = vadd.xlane.f32.xlu0 %v6051_v29  ;;  %v7612_v61 = vpack.c.bf16 %v6280_v37, %v6279_v44  ;;  %v6299_v29 = vld [vmem:[%s10344_s12 + $0xd0] sm:$0xff]  ;;  %v6286_v37 = vld [vmem:[%s10344_s12 + $0x68] sm:$0xff] }
0x2037   : > { %v6050_v42 = vmul.f32 %v10067_v10, %v10067_v10 }
0x2038   : > { %7613 = vmatpush3.bf16.msra.mxu0 %v7612_v61  ;;  %v6304_v61 = vld [vmem:[%s10344_s12 + $0xf8] sm:$0xff] }
0x2039   : > { %v6054_v35 = vsel %vm2709_vm8, %v6050_v42, 0.0  ;;  %v6300_v42 = vld [vmem:[%s10344_s12 + $0xd8] sm:$0xff]  ;;  %7615 = vmatprep.subr.bf16.mxu0 %v7614_v17  ;;  %v7626_v17 = vpack.c.bf16 %v6304_v61, %v6303_v62 }
0x203a   : > { %6055 = vadd.xlane.f32.xlu0 %v6054_v35  ;;  %v7616_v35 = vpack.c.bf16 %v6282_v4, %v6281_v14  ;;  %v7618_v8 = vpack.c.bf16 %v6300_v42, %v6299_v29  ;;  %v6287_v14 = vld [vmem:[%s10344_s12 + $0x70] sm:$0xff]  ;;  %v6288_v4 = vld [vmem:[%s10344_s12 + $0x78] sm:$0xff]  ;;  %v6790_v42 = vld [vmem:[%s10334_s2 + $0x40] ss:$8 sm:$0x3] }
0x203b   : > { %v7628_v29 = vpack.c.bf16 %v6288_v4, %v6287_v14 }
0x203c   : > { %7617 = vmatpush3.bf16.msra.mxu0 %v7616_v35  ;;  %v6262_v35 = vrot.slane %v6790_v42, %v8676_v57 }
0x203d   : > { %7619 = vmatprep.subr.bf16.mxu0 %v7618_v8  ;;  %v6266_v8 = vrot.slane %v6790_v42, %v8682_v59 }
0x2040   : > { %7621 = vmatpush3.bf16.msra.mxu0 %v7620_v23 }
0x2041   : > { %7623 = vmatprep.subr.bf16.mxu0 %v7622_v21 }
0x20c3   : > { %v6053_v24 = vpop.xlane.xlu0 %6052 }
0x20c4   : > { %v6057_v22 = vmul.f32 0.015625, %v6053_v24 }
0x20c6   : > { %v6059_v43 = vadd.f32 1e-05, %v6057_v22  ;;  %v6305_v22 = vld [vmem:[%s10334_s2 + $0x41] ss:$0 sm:$0xff] }
0x20c7   : > { %v6056_v13 = vpop.xlane.xlu0 %6055 }
0x20c8   : > { %8133 = vrsqrt.f32 %v6059_v43  ;;  %v6058_v28 = vmul.f32 0.015625, %v6056_v13 }
0x20ca   : > { %v6060_v11 = vadd.f32 1e-05, %v6058_v28 }
0x20cc   : > { %8135 = vrsqrt.f32 %v6060_v11 }
0x20d2   : > { %v8134_v2 = vpop.eup %8133 }
0x20d3   : > { %v6063_v18 = vmul.f32 %v8134_v2, %v10063_v25  ;;  %v6076_v25 = vld [vmem:[%s10343_s11] sm:$0xff] }
0x20d4   : > { %v7584_v39 = vpack.c.bf16 %v6078_v51, %v6076_v25 }
0x20d5   : > { %v6065_v26 = vmul.f32 %v6063_v18, %v6037_v3 }
0x20d6   : > { %v8136_v1 = vpop.eup %8135 }
0x20d7   : > { %v6067_v46 = vadd.f32 %v6065_v26, %v6038_v56  ;;  %v6064_v52 = vmul.f32 %v8136_v1, %v10067_v10  ;;  %v6285_v10 = vld [vmem:[%s10344_s12 + $0x60] sm:$0xff] }
0x20d8   : > { %v7624_v6 = vpack.c.bf16 %v6286_v37, %v6285_v10 }
0x20d9   : > { %v6069_v49 = vsel %vm2709_vm8, %v6067_v46, -inf  ;;  %v6066_v55 = vmul.f32 %v6064_v52, %v6037_v3 }
0x20da   : > { %v6070_v30 = vrot.slane %v6069_v49, 4  ;;  %7625 = vmatpush3.bf16.msra.mxu0 %v7624_v6 }
0x20db   : > { %v6068_v44 = vadd.f32 %v6066_v55, %v6038_v56  ;;  %7627 = vmatprep.subr.bf16.mxu0 %v7626_v17 }
0x20dc   : > { %v6071_v32 = vmax.f32 %v6069_v49, %v6070_v30 }
0x20de   : > { %v6072_v9 = vrot.slane %v6071_v32, 2  ;;  %7629 = vmatpush3.bf16.msra.mxu0 %v7628_v29 }
0x20e0   : > { %v6073_v63 = vmax.f32 %v6071_v32, %v6072_v9 }
0x20e2   : > { %v6074_v36 = vrot.slane %v6073_v63, 1 }
0x20e4   : > { %v6075_v45 = vmax.f32 %v6073_v63, %v6074_v36 }
0x20e6   : > { %6788 = vmatmul.mubr.msk.f32.vlgmr.msra.gmra.mrb[78].mxu1 %vm2709_vm8, %v6075_v45 }
0x20e7   : > { %7585 = vmatpush1.bf16.msra.mxu1 %v7584_v39  ;;  %6249 = vmatprep.mubr.f32.mxu1 %v8207_v40  ;;  %v7592_v40 = vpack.c.bf16 %v6086_v0, %v6084_v41 }
0x20e8   : > { %7587 = vmatprep.subr.bf16.mxu1 %v7586_v50 }
0x20eb   : > { %7589 = vmatpush1.bf16.msra.mxu1 %v7588_v34 }
0x20ec   : > { %7591 = vmatprep.subr.bf16.mxu1 %v7590_v38 }
0x20ef   : > { %7593 = vmatpush1.bf16.msra.mxu1 %v7592_v40 }
0x20f0   : > { %7595 = vmatprep.subr.bf16.mxu1 %v7594_v53 }
0x20f3   : > { %7597 = vmatpush1.bf16.msra.mxu1 %v7596_v60 }
0x20f6   : > { %6789 = vmatmul.mubr.msk.f32.vlgmr.msra.gmra.mrb[78].mxu1 %vm2709_vm8, %v6068_v44 }
0x21c9   : > { %v6251_v12 = vpop.f32.mrb[78].mxu1 }
0x21ca   : > { %v6269_v16 = vadd.f32 %v6262_v35, %v6251_v12  ;;  %v6253_v19 = vpop.f32.mrb[79].mxu1 }
0x21cb   : > { %v6270_v20 = vadd.f32 %v6266_v8, %v6253_v19 }
0x21cc   : > { %v6271_v21 = vmax.f32 %v6269_v16, 0.0 }
0x21cd   : > { %v6272_v23 = vmax.f32 %v6270_v20, 0.0 }
0x21cf   : > { %6370 = vmatprep.mubr.f32.mxu0 %v6272_v23 }
0x21d0   : > { %6371 = vmatmul.mubr.f32.vlgmr.msra.gmra.mrb[74].mxu0 %v6271_v21 }
0x22a3   : > { %v7096_v24 = vpop.f32.mrb[74].mxu0 }
0x22a4   : > { %v7097_v43 = vpop.f32.mrb[75].mxu0 }
0x22a5   : > { %v7098_v57 = vadd.f32 %v7097_v43, %v7096_v24 }
0x22a7   : > { %v6373_v59 = vadd.f32 %v7098_v57, %v6305_v22 }
0x22a9   : > { %6376 = vst [vmem:[%s445_s16] sm:$0x1] %v6373_v59 }
0x22aa   : > { %8150 = shalt.err (!%p8147_p3)
}
0x22ab   : > { %s8151_s30 = scalar_lea.hbm %s10290_s27, 16  ;;  %s8155_s16 = scalar_lea.hbm %s10345_s13, 32 }
0x22ac   : > { %p8152_p4 = scmp.ne.s32.totalorder %s10290_s27, %s8151_s30  ;;  %p8156_p9 = scmp.lt.u32.totalorder %s10290_s27, %s10345_s13 }
0x22ad   : > { %p8157_p10 = scmp.lt.u32.totalorder %s8155_s16, %s8151_s30  ;;  %p8159_p12 = scmp.lt.u32.totalorder %s8151_s30, %s10290_s27 }
0x22ae   : > { %p8153_p7 = pnand %p8152_p4, %p8325_p5 }
0x22af   : > { %p8158_p11 = por %p8157_p10, %p8156_p9 }
0x22b0   : > { %p8154_p8 = pneg %p8153_p7 }
0x22b1   : > { %p8160_p13 = por %p8159_p12, %p8158_p11 }
0x22b3   : > { %p8161_p0 = pnand %p8160_p13, %p8154_p8 }
0x22b5   : > { %8164 = shalt.err (!%p8161_p0)
}
0x22b6   : > { %7644 = dma.vmem_to_hbm [thread:$0]  (%p8325_p5), %s10292_s17, 16, %s10290_s27, %s6378_s20  }
0x22b7 PF: > { %p7650_p1 = scmp.ge.s32.totalorder %s8199_s28, 2  ;;  %s6402_s23 = sand.u32 1, %s8187_s25  }
0x22b8   : > { %s6403_s29 = scalar_lea.sflag [#allocation3], %s6402_s23 }
0x22b9   : > { %p7647_p2 = pnand %p7650_p1, %p8329_p6 }
0x22bb   : > { %8182 = dma.done.wait (!%p7647_p2), %s6403_s29, 16  }
0x22bc   : > { %8184 = vsyncadd (!%p7647_p2), %s6403_s29, 4294967280  ;;  %s10372_s1 = sld [smem:[#allocation5_spill]]  ;;  %s10373_s27 = sld [smem:[#allocation6_spill]] }
0x22bd   : > { %p23_p3 = scmp.ge.s32.totalorder %s8312_s14, 4   ;;  %s10374_s25 = smov %s8191_s26 }
0x22be   : > { %s10376_s28 = smov %s8312_s14 }
0x22bf   :  { %25 = sbr.rel (!%p23_p3) target bundleno = 6 (0x6), region = 119 }
0x22c2   : > { %s10375_s26 = smov %s10372_s1 }
0x22c6   :  { %6407 = vsyncpa [#allocation3], 1 }
0x22c7   :  { %6409 = vsyncpa [#allocation3 + $0x1], 1 }

</bundles_post_ra>
